<compile_context>
chip_gen: v7x
topology: tpu7x:2x2x1
jax: 0.10.0
libtpu: 0.0.40
codegen_flags: <defaults>
</compile_context>

<pallas_src>
import jax
import jax.numpy as jnp
from jax.experimental import pallas as pl
from jax.experimental.pallas import tpu as pltpu

FC1_DIMS = 1024
FC2_DIMS = 512

TB = 128        # batch tile (multiple of 8 sublanes, matches MXU M)
LANE = 128      # TPU lane width


def _round_up(n, m):
    return ((n + m - 1) // m) * m


def _mlp_kernel(x_ref, w1_ref, b1_ref, w2_ref, b2_ref, w3_ref, b3_ref, o_ref):
    # fc1 + relu  (bf16 MXU inputs, f32 accumulation, f32 bias/ReLU)
    h1 = jnp.dot(x_ref[...].astype(jnp.bfloat16), w1_ref[...],
                 preferred_element_type=jnp.float32)
    h1 = jnp.maximum(h1 + b1_ref[...], 0.0)
    # fc2 + relu
    h2 = jnp.dot(h1.astype(jnp.bfloat16), w2_ref[...],
                 preferred_element_type=jnp.float32)
    h2 = jnp.maximum(h2 + b2_ref[...], 0.0)
    # fc3 (no activation)
    out = jnp.dot(h2.astype(jnp.bfloat16), w3_ref[...],
                  preferred_element_type=jnp.float32)
    o_ref[...] = (out + b3_ref[...]).astype(o_ref.dtype)


def network_forward(x, params):
    """Fused MLP forward. x: (B, obs_dim) f32. Returns (B, A) f32."""
    w1, b1 = params["w1"], params["b1"]
    w2, b2 = params["w2"], params["b2"]
    w3, b3 = params["w3"], params["b3"]

    B, obs_dim = x.shape
    A = w3.shape[1]

    # --- padded, MXU/lane-friendly shapes -------------------------------
    k_pad = _round_up(max(obs_dim, 1), LANE)       # K of fc1 -> 128
    a_pad = _round_up(max(A, 1), LANE)             # output lanes -> 128 mult
    b_pad = _round_up(max(B, 1), TB)               # batch -> multiple of TB

    xp = jnp.zeros((b_pad, k_pad), jnp.float32).at[:B, :obs_dim].set(x)

    w1p = jnp.zeros((k_pad, FC1_DIMS), jnp.float32).at[:obs_dim, :].set(w1)
    w1p = w1p.astype(jnp.bfloat16)
    w2p = w2.astype(jnp.bfloat16)
    w3p = jnp.zeros((FC2_DIMS, a_pad), jnp.float32).at[:, :A].set(w3)
    w3p = w3p.astype(jnp.bfloat16)

    b1p = b1.astype(jnp.float32)                                   # (1, 1024)
    b2p = b2.astype(jnp.float32)                                   # (1, 512)
    b3p = jnp.zeros((1, a_pad), jnp.float32).at[:, :A].set(b3)     # (1, a_pad)

    grid = (b_pad // TB,)

    moving = lambda shape: pl.BlockSpec(shape, lambda i: (i, 0))
    resident = lambda shape: pl.BlockSpec(shape, lambda i: (0, 0))

    out_padded = pl.pallas_call(
        _mlp_kernel,
        out_shape=jax.ShapeDtypeStruct((b_pad, a_pad), jnp.float32),
        grid=grid,
        in_specs=[
            moving((TB, k_pad)),                 # x tile moves with the grid
            resident((k_pad, FC1_DIMS)),         # weights/biases stay resident
            resident((1, FC1_DIMS)),
            resident((FC1_DIMS, FC2_DIMS)),
            resident((1, FC2_DIMS)),
            resident((FC2_DIMS, a_pad)),
            resident((1, a_pad)),
        ],
        out_specs=moving((TB, a_pad)),
        compiler_params=pltpu.CompilerParams(
            dimension_semantics=("parallel",),   # megacore sharding on v7x
            vmem_limit_bytes=48 << 20,           # headroom for v7x 64 MiB VMEM
        ),
    )(xp, w1p, b1p, w2p, b2p, w3p, b3p)

    return out_padded[:B, :A]


def init_params(key, obs_dim, action_space):
    """Mimics nn.Linear default init: U(-1/sqrt(fan_in), 1/sqrt(fan_in))."""
    def linear(key, fan_in, fan_out):
        kw, kb = jax.random.split(key)
        bound = 1.0 / jnp.sqrt(jnp.float32(fan_in))
        # stored as (in, out) so kernel computes x @ W
        w = jax.random.uniform(kw, (fan_in, fan_out), jnp.float32, -bound, bound)
        b = jax.random.uniform(kb, (1, fan_out), jnp.float32, -bound, bound)
        return w, b

    k1, k2, k3 = jax.random.split(key, 3)
    w1, b1 = linear(k1, obs_dim, FC1_DIMS)
    w2, b2 = linear(k2, FC1_DIMS, FC2_DIMS)
    w3, b3 = linear(k3, FC2_DIMS, action_space)
    return {"w1": w1, "b1": b1, "w2": w2, "b2": b2, "w3": w3, "b3": b3}


def _reference_forward(x, params):
    """Pure-JAX reference mirroring the kernel's bf16-MXU / f32-accum math."""
    w1 = params["w1"].astype(jnp.bfloat16)
    w2 = params["w2"].astype(jnp.bfloat16)
    w3 = params["w3"].astype(jnp.bfloat16)
    h1 = jnp.dot(x.astype(jnp.bfloat16), w1,
                 preferred_element_type=jnp.float32) + params["b1"]
    h1 = jnp.maximum(h1, 0.0)
    h2 = jnp.dot(h1.astype(jnp.bfloat16), w2,
                 preferred_element_type=jnp.float32) + params["b2"]
    h2 = jnp.maximum(h2, 0.0)
    return jnp.dot(h2.astype(jnp.bfloat16), w3,
                   preferred_element_type=jnp.float32) + params["b3"]


if __name__ == "__main__":
    # Small synthetic shapes consistent with the module:
    # observation_space.shape = (obs_dim,), action_space.n = num_actions
    batch = 2
    obs_dim = 8
    num_actions = 4

    key = jax.random.PRNGKey(0)
    k_params, k_x = jax.random.split(key)
    params = init_params(k_params, obs_dim, num_actions)
    x = jax.random.normal(k_x, (batch, obs_dim), jnp.float32)

    out = network_forward(x, params)
    out = jax.block_until_ready(out)

    ref = _reference_forward(x, params)
    assert out.shape == (batch, num_actions)
    assert jnp.allclose(out, ref, atol=2e-2, rtol=2e-2), (
        f"max abs err {jnp.max(jnp.abs(out - ref))}")

    print("KERNEL_OK")
</pallas_src>

<mosaic_0001>
module attributes {stable_mosaic.version = 11 : i64} {
  func.func @_mlp_kernel(%arg0: i32, %arg1: memref<128x128xf32, #tpu.memory_space<vmem>>, %arg2: memref<128x1024xbf16, #tpu.memory_space<vmem>>, %arg3: memref<1x1024xf32, #tpu.memory_space<vmem>>, %arg4: memref<1024x512xbf16, #tpu.memory_space<vmem>>, %arg5: memref<1x512xf32, #tpu.memory_space<vmem>>, %arg6: memref<512x128xbf16, #tpu.memory_space<vmem>>, %arg7: memref<1x128xf32, #tpu.memory_space<vmem>>, %arg8: memref<128x128xf32, #tpu.memory_space<vmem>>) attributes {dimension_semantics = [#tpu.dimension_semantics<parallel>], iteration_bounds = array<i64: 1>, scalar_prefetch = 0 : i64, scratch_operands = 0 : i64, tpu.core_type = #tpu.core_type<tc>, window_params = [{transform_indices = @transform_0, window_bounds = array<i64: 128, 128>}, {pipeline_mode = #tpu.pipeline_mode<synchronous>, transform_indices = @transform_1, window_bounds = array<i64: 128, 1024>}, {pipeline_mode = #tpu.pipeline_mode<synchronous>, transform_indices = @transform_2, window_bounds = array<i64: 1, 1024>}, {pipeline_mode = #tpu.pipeline_mode<synchronous>, transform_indices = @transform_3, window_bounds = array<i64: 1024, 512>}, {pipeline_mode = #tpu.pipeline_mode<synchronous>, transform_indices = @transform_4, window_bounds = array<i64: 1, 512>}, {pipeline_mode = #tpu.pipeline_mode<synchronous>, transform_indices = @transform_5, window_bounds = array<i64: 512, 128>}, {pipeline_mode = #tpu.pipeline_mode<synchronous>, transform_indices = @transform_6, window_bounds = array<i64: 1, 128>}, {transform_indices = @transform_7, window_bounds = array<i64: 128, 128>}]} {
    %c0 = arith.constant 0 : index
    %c0_0 = arith.constant 0 : index
    %0 = vector.load %arg1[%c0, %c0_0] : memref<128x128xf32, #tpu.memory_space<vmem>>, vector<128x128xf32>
    %1 = arith.truncf %0 : vector<128x128xf32> to vector<128x128xbf16>
    %c0_1 = arith.constant 0 : index
    %c0_2 = arith.constant 0 : index
    %2 = vector.load %arg2[%c0_1, %c0_2] : memref<128x1024xbf16, #tpu.memory_space<vmem>>, vector<128x1024xbf16>
    %cst = arith.constant dense<0.000000e+00> : vector<128x1024xf32>
    %3 = tpu.matmul %1, %2, %cst {dimension_numbers = #tpu.dot_dimension_numbers<[1], [0], [0], [1], [0, 0, 1, 1], [], []>} : vector<128x128xbf16>, vector<128x1024xbf16>, vector<128x1024xf32> -> vector<128x1024xf32>
    %c0_3 = arith.constant 0 : index
    %c0_4 = arith.constant 0 : index
    %4 = vector.load %arg3[%c0_3, %c0_4] : memref<1x1024xf32, #tpu.memory_space<vmem>>, vector<1x1024xf32>
    %5 = vector.broadcast %4 : vector<1x1024xf32> to vector<128x1024xf32>
    %6 = arith.addf %3, %5 : vector<128x1024xf32>
    %cst_5 = arith.constant 0.000000e+00 : f32
    %7 = vector.broadcast %cst_5 : f32 to vector<128x1024xf32>
    %8 = arith.maximumf %6, %7 : vector<128x1024xf32>
    %9 = arith.truncf %8 : vector<128x1024xf32> to vector<128x1024xbf16>
    %c0_6 = arith.constant 0 : index
    %c0_7 = arith.constant 0 : index
    %10 = vector.load %arg4[%c0_6, %c0_7] : memref<1024x512xbf16, #tpu.memory_space<vmem>>, vector<1024x512xbf16>
    %cst_8 = arith.constant dense<0.000000e+00> : vector<128x512xf32>
    %11 = tpu.matmul %9, %10, %cst_8 {dimension_numbers = #tpu.dot_dimension_numbers<[1], [0], [0], [1], [0, 0, 1, 1], [], []>} : vector<128x1024xbf16>, vector<1024x512xbf16>, vector<128x512xf32> -> vector<128x512xf32>
    %c0_9 = arith.constant 0 : index
    %c0_10 = arith.constant 0 : index
    %12 = vector.load %arg5[%c0_9, %c0_10] : memref<1x512xf32, #tpu.memory_space<vmem>>, vector<1x512xf32>
    %13 = vector.broadcast %12 : vector<1x512xf32> to vector<128x512xf32>
    %14 = arith.addf %11, %13 : vector<128x512xf32>
    %cst_11 = arith.constant 0.000000e+00 : f32
    %15 = vector.broadcast %cst_11 : f32 to vector<128x512xf32>
    %16 = arith.maximumf %14, %15 : vector<128x512xf32>
    %17 = arith.truncf %16 : vector<128x512xf32> to vector<128x512xbf16>
    %c0_12 = arith.constant 0 : index
    %c0_13 = arith.constant 0 : index
    %18 = vector.load %arg6[%c0_12, %c0_13] : memref<512x128xbf16, #tpu.memory_space<vmem>>, vector<512x128xbf16>
    %cst_14 = arith.constant dense<0.000000e+00> : vector<128x128xf32>
    %19 = tpu.matmul %17, %18, %cst_14 {dimension_numbers = #tpu.dot_dimension_numbers<[1], [0], [0], [1], [0, 0, 1, 1], [], []>} : vector<128x512xbf16>, vector<512x128xbf16>, vector<128x128xf32> -> vector<128x128xf32>
    %c0_15 = arith.constant 0 : index
    %c0_16 = arith.constant 0 : index
    %20 = vector.load %arg7[%c0_15, %c0_16] : memref<1x128xf32, #tpu.memory_space<vmem>>, vector<1x128xf32>
    %21 = vector.broadcast %20 : vector<1x128xf32> to vector<128x128xf32>
    %22 = arith.addf %19, %21 : vector<128x128xf32>
    %c0_17 = arith.constant 0 : index
    %c0_18 = arith.constant 0 : index
    %23 = vector.load %arg8[%c0_17, %c0_18] : memref<128x128xf32, #tpu.memory_space<vmem>>, vector<128x128xf32>
    tpu.vector_store %arg8[%c0_17, %c0_18], %22 {strides = array<i32>} : memref<128x128xf32, #tpu.memory_space<vmem>>, vector<128x128xf32>,
    return
  }
  func.func @transform_0(%arg0: i32) -> (i32, i32) {
    %c0_i32 = arith.constant 0 : i32
    %c0_i32_0 = arith.constant 0 : i32
    return %arg0, %c0_i32 : i32, i32
  }
  func.func @transform_1(%arg0: i32) -> (i32, i32) {
    %c0_i32 = arith.constant 0 : i32
    %c0_i32_0 = arith.constant 0 : i32
    %c0_i32_1 = arith.constant 0 : i32
    return %c0_i32, %c0_i32_0 : i32, i32
  }
  func.func @transform_2(%arg0: i32) -> (i32, i32) {
    %c0_i32 = arith.constant 0 : i32
    %c0_i32_0 = arith.constant 0 : i32
    %c0_i32_1 = arith.constant 0 : i32
    return %c0_i32, %c0_i32_0 : i32, i32
  }
  func.func @transform_3(%arg0: i32) -> (i32, i32) {
    %c0_i32 = arith.constant 0 : i32
    %c0_i32_0 = arith.constant 0 : i32
    %c0_i32_1 = arith.constant 0 : i32
    return %c0_i32, %c0_i32_0 : i32, i32
  }
  func.func @transform_4(%arg0: i32) -> (i32, i32) {
    %c0_i32 = arith.constant 0 : i32
    %c0_i32_0 = arith.constant 0 : i32
    %c0_i32_1 = arith.constant 0 : i32
    return %c0_i32, %c0_i32_0 : i32, i32
  }
  func.func @transform_5(%arg0: i32) -> (i32, i32) {
    %c0_i32 = arith.constant 0 : i32
    %c0_i32_0 = arith.constant 0 : i32
    %c0_i32_1 = arith.constant 0 : i32
    return %c0_i32, %c0_i32_0 : i32, i32
  }
  func.func @transform_6(%arg0: i32) -> (i32, i32) {
    %c0_i32 = arith.constant 0 : i32
    %c0_i32_0 = arith.constant 0 : i32
    %c0_i32_1 = arith.constant 0 : i32
    return %c0_i32, %c0_i32_0 : i32, i32
  }
  func.func @transform_7(%arg0: i32) -> (i32, i32) {
    %c0_i32 = arith.constant 0 : i32
    %c0_i32_0 = arith.constant 0 : i32
    return %arg0, %c0_i32 : i32, i32
  }
}

</mosaic_0001>

<bundles_post_ra>
// kernel: tpu_custom_call.1
= control target key start
LH: loop header
LB: loop body
LE: loop exit
PB: predicated region body
PF: predicated region fallthrough
CT: control target
= control target key end

     0   :  { %12 = vsyncpa [#allocation3], 0  ;;  %s6227_s0 = inlined_call_operand.hbm [shape: f32[128,128], index: 0, kind: input, shape index: {}]   ;;  %s6228_s1 = inlined_call_operand.hbm [shape: bf16[128,1024], index: 1, kind: input, shape index: {}]   ;;  %s6229_s2 = inlined_call_operand.hbm [shape: f32[1,1024], index: 2, kind: input, shape index: {}]   ;;  %s6230_s3 = inlined_call_operand.hbm [shape: bf16[1024,512], index: 3, kind: input, shape index: {}]   ;;  %s6231_s4 = inlined_call_operand.vmem [shape: f32[1,512], index: 4, kind: input, shape index: {}]   ;;  %s6232_s5 = inlined_call_operand.hbm [shape: bf16[512,128], index: 5, kind: input, shape index: {}]   ;;  %s6233_s6 = inlined_call_operand.vmem [shape: f32[1,128], index: 6, kind: input, shape index: {}]   ;;  %s6234_s7 = inlined_call_operand.hbm [shape: f32[128,128], index: 7, kind: output, shape index: {}]  }
   0x1   :  { %13 = vsyncpa [#allocation6], 0 }
   0x2   :  { %14 = vsyncpa [#allocation9], 0 }
   0x3   :  { %15 = vsyncpa [#allocation4], 0  ;;  %s5546_s24 = smov [#allocation5]   ;;  %s5406_s28 = scalar_lea.hbm %s6228_s1, 8192 }
   0x4   :  { %s33_s25 = sshll.u32 %s5546_s24, 4  ;;  %p5407_p0 = scmp.ne.s32.totalorder %s6228_s1, %s5406_s28  ;;  %s34_s25 = int_to_ptr.vmem [resolvable:$true] %s33_s25 }
   0x5   :  { %p5410_p1 = scmp.lt.u32.totalorder %s5406_s28, %s6228_s1 }
   0x7   :  { %p5412_p2 = pnand %p5410_p1, %p5407_p0 }
   0x9   :  { %5415 = shalt.err (!%p5412_p2)
}
   0xa   :  { %s5416_s10 = scalar_lea.vmem %s34_s25, 8192  ;;  %p5421_p4 = scmp.lt.s32.totalorder %s34_s25, %s34_s25 }
   0xb   :  { %p5417_p3 = scmp.ne.s32.totalorder %s34_s25, %s5416_s10  ;;  %p5422_p5 = scmp.lt.s32.totalorder %s5416_s10, %s5416_s10 }
   0xd   :  { %p5423_p6 = por %p5422_p5, %p5421_p4 }
   0xf   :  { %p5424_p7 = pnand %p5423_p6, %p5417_p3 }
  0x11   :  { %5427 = shalt.err (!%p5424_p7)
}
  0x12   :  { %s5547_s11 = smov 512   ;;  %s5548_s12 = smov 32  }
  0x13   :  { %39 = dma.hbm_to_vmem [thread:$0]  %s6228_s1, 8192, %s34_s25, [#allocation6], %s5547_s11, %s5547_s11, %s5548_s12  }
  0x14   :  { %s5549_s15 = smov [#allocation8]   ;;  %s5428_s19 = scalar_lea.hbm %s6230_s3, 32768 }
  0x15   :  { %s55_s16 = sshll.u32 %s5549_s15, 4  ;;  %p5429_p8 = scmp.ne.s32.totalorder %s6230_s3, %s5428_s19  ;;  %s56_s16 = int_to_ptr.vmem [resolvable:$true] %s55_s16 }
  0x16   :  { %p5432_p9 = scmp.lt.u32.totalorder %s5428_s19, %s6230_s3 }
  0x18   :  { %p5434_p10 = pnand %p5432_p9, %p5429_p8 }
  0x1a   :  { %5437 = shalt.err (!%p5434_p10)
}
  0x1b   :  { %s5438_s24 = scalar_lea.vmem %s56_s16, 32768  ;;  %p5443_p12 = scmp.lt.s32.totalorder %s56_s16, %s56_s16 }
  0x1c   :  { %p5439_p11 = scmp.ne.s32.totalorder %s56_s16, %s5438_s24  ;;  %p5444_p13 = scmp.lt.s32.totalorder %s5438_s24, %s5438_s24 }
  0x1e   :  { %p5445_p0 = por %p5444_p13, %p5443_p12 }
  0x20   :  { %p5446_p1 = pnand %p5445_p0, %p5439_p11 }
  0x22   :  { %5449 = shalt.err (!%p5446_p1)
}
  0x23   :  { %s5550_s1 = smov 256   ;;  %s5551_s25 = smov 16  }
  0x24   :  { %61 = dma.hbm_to_vmem [thread:$0]  %s6230_s3, 32768, %s56_s16, [#allocation9], %s5550_s1, %s5550_s1, %s5551_s25  }
  0x25   :  { %s5552_s28 = smov [#allocation2]   ;;  %s5450_s9 = scalar_lea.hbm %s6227_s0, 2048 }
  0x26   :  { %s21_s29 = sshll.u32 %s5552_s28, 4  ;;  %p5451_p2 = scmp.ne.s32.totalorder %s6227_s0, %s5450_s9  ;;  %s22_s29 = int_to_ptr.vmem [resolvable:$true] %s21_s29 }
  0x27   :  { %p5454_p3 = scmp.lt.u32.totalorder %s5450_s9, %s6227_s0 }
  0x29   :  { %p5456_p4 = pnand %p5454_p3, %p5451_p2 }
  0x2b   :  { %5459 = shalt.err (!%p5456_p4)
}
  0x2c   :  { %s5460_s14 = scalar_lea.vmem %s22_s29, 2048  ;;  %p5465_p6 = scmp.lt.s32.totalorder %s22_s29, %s22_s29 }
  0x2d   :  { %p5461_p5 = scmp.ne.s32.totalorder %s22_s29, %s5460_s14  ;;  %p5466_p7 = scmp.lt.s32.totalorder %s5460_s14, %s5460_s14 }
  0x2f   :  { %p5467_p8 = por %p5466_p7, %p5465_p6 }
  0x31   :  { %p5468_p9 = pnand %p5467_p8, %p5461_p5 }
  0x33   :  { %5471 = shalt.err (!%p5468_p9)
}
  0x34   :  { %s5553_s3 = smov 128   ;;  %s5554_s15 = smov 8  }
  0x35   :  { %27 = dma.hbm_to_vmem [thread:$0]  %s6227_s0, 2048, %s22_s29, [#allocation3], %s5553_s3, %s5553_s3, %s5554_s15  }
  0x36   :  { %s5555_s18 = smov [#allocation7]   ;;  %s5556_s20 = smov [#allocation10]  }
  0x37   :  { %s46_s19 = sshll.u32 %s5555_s18, 4  ;;  %s69_s21 = sshll.u32 %s5556_s20, 4  ;;  %s47_s19 = int_to_ptr.vmem [resolvable:$true] %s46_s19  ;;  %s70_s21 = int_to_ptr.vmem [resolvable:$true] %s69_s21 }
  0x38   :  { %s5472_s24 = scalar_lea.hbm %s6229_s2, 128 }
  0x39   :  { %p5473_p10 = scmp.ne.s32.totalorder %s6229_s2, %s5472_s24  ;;  %p5476_p11 = scmp.lt.u32.totalorder %s5472_s24, %s6229_s2 }
  0x3b   :  { %p5478_p12 = pnand %p5476_p11, %p5473_p10 }
  0x3d   :  { %5481 = shalt.err (!%p5478_p12)
}
  0x3e   :  { %s5482_s0 = scalar_lea.vmem %s47_s19, 128  ;;  %p5487_p0 = scmp.lt.s32.totalorder %s47_s19, %s47_s19 }
  0x3f   :  { %p5483_p13 = scmp.ne.s32.totalorder %s47_s19, %s5482_s0  ;;  %p5488_p1 = scmp.lt.s32.totalorder %s5482_s0, %s5482_s0 }
  0x41   :  { %p5489_p2 = por %p5488_p1, %p5487_p0 }
  0x43   :  { %p5490_p3 = pnand %p5489_p2, %p5483_p13 }
  0x45   :  { %5493 = shalt.err (!%p5490_p3)
}
  0x46   :  { %49 = dma.hbm_to_vmem [thread:$0]  %s6229_s2, 128, %s47_s19, [#allocation6]  }
  0x47   :  { %s5494_s9 = scalar_lea.hbm %s6232_s5, 4096 }
  0x48   :  { %p5495_p4 = scmp.ne.s32.totalorder %s6232_s5, %s5494_s9  ;;  %p5498_p5 = scmp.lt.u32.totalorder %s5494_s9, %s6232_s5 }
  0x4a   :  { %p5500_p6 = pnand %p5498_p5, %p5495_p4 }
  0x4c   :  { %5503 = shalt.err (!%p5500_p6)
}
  0x4d   :  { %s5504_s14 = scalar_lea.vmem %s70_s21, 4096  ;;  %p5509_p8 = scmp.lt.s32.totalorder %s70_s21, %s70_s21 }
  0x4e   :  { %p5505_p7 = scmp.ne.s32.totalorder %s70_s21, %s5504_s14  ;;  %p5510_p9 = scmp.lt.s32.totalorder %s5504_s14, %s5504_s14 }
  0x50   :  { %p5511_p10 = por %p5510_p9, %p5509_p8 }
  0x52   :  { %p5512_p11 = pnand %p5511_p10, %p5505_p7 }
  0x54   :  { %5515 = shalt.err (!%p5512_p11)
}
  0x55   :  { %s5557_s2 = smov 64   ;;  %s5558_s16 = smov 4  }
  0x56   :  { %75 = dma.hbm_to_vmem [thread:$0]  %s6232_s5, 4096, %s70_s21, [#allocation9], %s5557_s2, %s5557_s2, %s5558_s16  }
  0x57   :  { %5538 = dma.done.wait [#allocation3], 2048  }
  0x58   :  { %5539 = vsyncadd [#allocation3], 4294965248 }
  0x59   :  { %5540 = dma.done.wait [#allocation6], 8320  }
  0x5a   :  { %5541 = vsyncadd [#allocation6], 4294958976 }
  0x5b   :  { %5542 = dma.done.wait [#allocation9], 36864  }
  0x5c   :  { %5543 = vsyncadd [#allocation9], 4294930432  ;;  %v5559_v0 = vmov 0   ;;  %v118_v1 = vld [vmem:[#allocation5] sm:$0xff]  ;;  %v119_v15 = vld [vmem:[#allocation5 + $0x8] sm:$0xff] }
  0x5d   :  { %576 = vmatprep.mubr.bf16.mxu0 %v5559_v0  ;;  %689 = vmatprep.mubr.bf16.mxu1 %v5559_v0  ;;  %v122_v2 = vld [vmem:[#allocation5 + $0x20] sm:$0xff]  ;;  %v123_v16 = vld [vmem:[#allocation5 + $0x28] sm:$0xff]  ;;  %v120_v57 = vld [vmem:[#allocation5 + $0x10] sm:$0xff] }
  0x5e   :  { %v126_v3 = vld [vmem:[#allocation5 + $0x40] sm:$0xff]  ;;  %v4239_v4 = vcombine.high %v118_v1, %v122_v2  ;;  %v4238_v5 = vcombine.low %v118_v1, %v122_v2  ;;  %v4241_v19 = vcombine.high %v119_v15, %v123_v16  ;;  %v4240_v20 = vcombine.low %v119_v15, %v123_v16  ;;  %v127_v21 = vld [vmem:[#allocation5 + $0x48] sm:$0xff]  ;;  %v124_v58 = vld [vmem:[#allocation5 + $0x30] sm:$0xff] }
  0x5f   :  { %v130_v6 = vld [vmem:[#allocation5 + $0x60] sm:$0xff]  ;;  %v131_v22 = vld [vmem:[#allocation5 + $0x68] sm:$0xff]  ;;  %v4243_v1 = vcombine.high %v120_v57, %v124_v58  ;;  %v140_v15 = vld [vmem:[#allocation5 + $0xb0] sm:$0xff] }
  0x60   :  { %v4247_v7 = vcombine.high %v126_v3, %v130_v6  ;;  %v134_v8 = vld [vmem:[#allocation5 + $0x80] sm:$0xff]  ;;  %544 = vmatprep.subr.bf16.mxu0 %v4239_v4  ;;  %v4246_v10 = vcombine.low %v126_v3, %v130_v6  ;;  %v4249_v24 = vcombine.high %v127_v21, %v131_v22  ;;  %v135_v25 = vld [vmem:[#allocation5 + $0x88] sm:$0xff]  ;;  %657 = vmatprep.subr.bf16.mxu1 %v4241_v19  ;;  %v132_v6 = vld [vmem:[#allocation5 + $0x70] sm:$0xff] }
  0x61   :  { %v138_v9 = vld [vmem:[#allocation5 + $0xa0] sm:$0xff]  ;;  %545 = vmatpush1.bf16.msra.mxu0 %v4238_v5  ;;  %v139_v26 = vld [vmem:[#allocation5 + $0xa8] sm:$0xff]  ;;  %658 = vmatpush1.bf16.msra.mxu1 %v4240_v20  ;;  %v4248_v28 = vcombine.low %v127_v21, %v131_v22  ;;  %v128_v5 = vld [vmem:[#allocation5 + $0x50] sm:$0xff] }
  0x62   :  { %546 = vmatprep.subr.bf16.mxu0 %v4247_v7  ;;  %v4255_v11 = vcombine.high %v134_v8, %v138_v9  ;;  %v142_v12 = vld [vmem:[#allocation5 + $0xc0] sm:$0xff]  ;;  %v4254_v14 = vcombine.low %v134_v8, %v138_v9  ;;  %659 = vmatprep.subr.bf16.mxu1 %v4249_v24  ;;  %v4257_v31 = vcombine.high %v135_v25, %v139_v26  ;;  %v143_v33 = vld [vmem:[#allocation5 + $0xc8] sm:$0xff]  ;;  %v97_v16 = vld [vmem:[#allocation2 + $0x18] sm:$0xff] }
  0x63   :  { %v146_v13 = vld [vmem:[#allocation5 + $0xe0] sm:$0xff]  ;;  %v147_v34 = vld [vmem:[#allocation5 + $0xe8] sm:$0xff]  ;;  %v4256_v36 = vcombine.low %v135_v25, %v139_v26  ;;  %v4242_v9 = vcombine.low %v120_v57, %v124_v58  ;;  %v144_v21 = vld [vmem:[#allocation5 + $0xd0] sm:$0xff] }
  0x64   :  { %v4263_v17 = vcombine.high %v142_v12, %v146_v13  ;;  %v150_v18 = vld [vmem:[#allocation5 + $0x100] sm:$0xff]  ;;  %v4262_v27 = vcombine.low %v142_v12, %v146_v13  ;;  %v4265_v39 = vcombine.high %v143_v33, %v147_v34  ;;  %v151_v41 = vld [vmem:[#allocation5 + $0x108] sm:$0xff]  ;;  %v4264_v44 = vcombine.low %v143_v33, %v147_v34  ;;  %v121_v12 = vld [vmem:[#allocation5 + $0x18] sm:$0xff] }
  0x65   :  { %547 = vmatpush1.bf16.msra.mxu0 %v4246_v10  ;;  %v154_v23 = vld [vmem:[#allocation5 + $0x120] sm:$0xff]  ;;  %660 = vmatpush1.bf16.msra.mxu1 %v4248_v28  ;;  %v155_v42 = vld [vmem:[#allocation5 + $0x128] sm:$0xff]  ;;  %v96_v10 = vld [vmem:[#allocation2 + $0x10] sm:$0xff] }
  0x66   :  { %548 = vmatprep.subr.bf16.mxu0 %v4255_v11  ;;  %v4271_v29 = vcombine.high %v150_v18, %v154_v23  ;;  %v158_v30 = vld [vmem:[#allocation5 + $0x140] sm:$0xff]  ;;  %v4270_v35 = vcombine.low %v150_v18, %v154_v23  ;;  %661 = vmatprep.subr.bf16.mxu1 %v4257_v31  ;;  %v4273_v47 = vcombine.high %v151_v41, %v155_v42  ;;  %v159_v49 = vld [vmem:[#allocation5 + $0x148] sm:$0xff]  ;;  %v125_v13 = vld [vmem:[#allocation5 + $0x38] sm:$0xff] }
  0x67   :  { %v162_v32 = vld [vmem:[#allocation5 + $0x160] sm:$0xff]  ;;  %v163_v50 = vld [vmem:[#allocation5 + $0x168] sm:$0xff]  ;;  %v4272_v52 = vcombine.low %v151_v41, %v155_v42  ;;  %v4251_v11 = vcombine.high %v128_v5, %v132_v6  ;;  %v4250_v18 = vcombine.low %v128_v5, %v132_v6  ;;  %v4245_v19 = vcombine.high %v121_v12, %v125_v13  ;;  %v148_v22 = vld [vmem:[#allocation5 + $0xf0] sm:$0xff] }
  0x68   :  { %v4279_v37 = vcombine.high %v158_v30, %v162_v32  ;;  %v166_v38 = vld [vmem:[#allocation5 + $0x180] sm:$0xff]  ;;  %v4278_v43 = vcombine.low %v158_v30, %v162_v32  ;;  %v4281_v54 = vcombine.high %v159_v49, %v163_v50  ;;  %v167_v55 = vld [vmem:[#allocation5 + $0x188] sm:$0xff]  ;;  %v4280_v62 = vcombine.low %v159_v49, %v163_v50  ;;  %v129_v24 = vld [vmem:[#allocation5 + $0x58] sm:$0xff] }
  0x69   :  { %549 = vmatpush1.bf16.msra.mxu0 %v4254_v14  ;;  %v170_v40 = vld [vmem:[#allocation5 + $0x1a0] sm:$0xff]  ;;  %662 = vmatpush1.bf16.msra.mxu1 %v4256_v36  ;;  %v171_v56 = vld [vmem:[#allocation5 + $0x1a8] sm:$0xff]  ;;  %v136_v14 = vld [vmem:[#allocation5 + $0x90] sm:$0xff]  ;;  %v5670_v23 = vpack.c.bf16 %v97_v16, %v96_v10  ;;  %v4266_v36 = vcombine.low %v144_v21, %v148_v22 }
  0x6a   :  { %550 = vmatprep.subr.bf16.mxu0 %v4263_v17  ;;  %v4287_v45 = vcombine.high %v166_v38, %v170_v40  ;;  %v174_v46 = vld [vmem:[#allocation5 + $0x1c0] sm:$0xff]  ;;  %663 = vmatprep.subr.bf16.mxu1 %v4265_v39  ;;  %v4286_v51 = vcombine.low %v166_v38, %v170_v40  ;;  %v95_v61 = vld [vmem:[#allocation2 + $0x8] sm:$0xff]  ;;  %v4289_v63 = vcombine.high %v167_v55, %v171_v56  ;;  %v133_v25 = vld [vmem:[#allocation5 + $0x78] sm:$0xff] }
  0x6b   :  { %v178_v48 = vld [vmem:[#allocation5 + $0x1e0] sm:$0xff]  ;;  %v175_v2 = vld [vmem:[#allocation5 + $0x1c8] sm:$0xff]  ;;  %v4288_v7 = vcombine.low %v167_v55, %v171_v56  ;;  %v4259_v20 = vcombine.high %v136_v14, %v140_v15  ;;  %v4258_v26 = vcombine.low %v136_v14, %v140_v15  ;;  %v152_v30 = vld [vmem:[#allocation5 + $0x110] sm:$0xff]  ;;  %v4253_v32 = vcombine.high %v129_v24, %v133_v25 }
  0x6c   :  { %v4295_v53 = vcombine.high %v174_v46, %v178_v48  ;;  %v94_v59 = vld [vmem:[#allocation2] sm:$0xff]  ;;  %v4294_v60 = vcombine.low %v174_v46, %v178_v48  ;;  %v179_v3 = vld [vmem:[#allocation5 + $0x1e8] sm:$0xff]  ;;  %v156_v31 = vld [vmem:[#allocation5 + $0x130] sm:$0xff] }
  0x6d   :  { %551 = vmatpush1.bf16.msra.mxu0 %v4262_v27  ;;  %664 = vmatpush1.bf16.msra.mxu1 %v4264_v44  ;;  %v5666_v4 = vpack.c.bf16 %v95_v61, %v94_v59  ;;  %v4297_v8 = vcombine.high %v175_v2, %v179_v3  ;;  %v4296_v17 = vcombine.low %v175_v2, %v179_v3  ;;  %v98_v28 = vld [vmem:[#allocation2 + $0x20] sm:$0xff]  ;;  %v137_v33 = vld [vmem:[#allocation5 + $0x98] sm:$0xff]  ;;  %v160_v39 = vld [vmem:[#allocation5 + $0x150] sm:$0xff] }
  0x6e   :  { %552 = vmatprep.subr.bf16.mxu0 %v4271_v29  ;;  %665 = vmatprep.subr.bf16.mxu1 %v4273_v47  ;;  %v4244_v27 = vcombine.low %v121_v12, %v125_v13  ;;  %v4267_v29 = vcombine.high %v144_v21, %v148_v22  ;;  %v141_v34 = vld [vmem:[#allocation5 + $0xb8] sm:$0xff]  ;;  %v4275_v38 = vcombine.high %v152_v30, %v156_v31  ;;  %v164_v40 = vld [vmem:[#allocation5 + $0x170] sm:$0xff]  ;;  %v102_v3 = vld [vmem:[#allocation2 + $0x40] sm:$0xff] }
  0x6f   :  { %v4261_v41 = vcombine.high %v137_v33, %v141_v34  ;;  %v149_v44 = vld [vmem:[#allocation5 + $0xf8] sm:$0xff]  ;;  %v4260_v46 = vcombine.low %v137_v33, %v141_v34  ;;  %v100_v47 = vld [vmem:[#allocation2 + $0x30] sm:$0xff]  ;;  %v4283_v48 = vcombine.high %v160_v39, %v164_v40  ;;  %v4282_v55 = vcombine.low %v160_v39, %v164_v40 }
  0x70   :  { %v168_v49 = vld [vmem:[#allocation5 + $0x190] sm:$0xff]  ;;  %v4992_v13 = vld [vmem:[#allocation8 + $0x4] ss:$16 sps:$4 sm:$0xff]   ;;  %v4996_v33 = vld [vmem:[#allocation8 + $0x20] ss:$16 sps:$4 sm:$0xff]  }
  0x71   :  { %553 = vmatpush1.bf16.msra.mxu0 %v4270_v35  ;;  %666 = vmatpush1.bf16.msra.mxu1 %v4272_v52  ;;  %v99_v35 = vld [vmem:[#allocation2 + $0x28] sm:$0xff]  ;;  %v172_v50 = vld [vmem:[#allocation5 + $0x1b0] sm:$0xff]  ;;  %v153_v52 = vld [vmem:[#allocation5 + $0x118] sm:$0xff] }
  0x72   :  { %554 = vmatprep.subr.bf16.mxu0 %v4279_v37  ;;  %667 = vmatprep.subr.bf16.mxu1 %v4281_v54  ;;  %v4252_v37 = vcombine.low %v129_v24, %v133_v25  ;;  %v5676_v42 = vpack.c.bf16 %v99_v35, %v98_v28  ;;  %v101_v54 = vld [vmem:[#allocation2 + $0x38] sm:$0xff]  ;;  %v4291_v57 = vcombine.high %v168_v49, %v172_v50  ;;  %v176_v58 = vld [vmem:[#allocation5 + $0x1d0] sm:$0xff]  ;;  %v106_v25 = vld [vmem:[#allocation2 + $0x60] sm:$0xff] }
  0x73   :  { %v180_v59 = vld [vmem:[#allocation5 + $0x1f0] sm:$0xff]  ;;  %v5682_v61 = vpack.c.bf16 %v101_v54, %v100_v47  ;;  %v177_v15 = vld [vmem:[#allocation5 + $0x1d8] sm:$0xff] }
  0x74   :  { %v4299_v5 = vcombine.high %v176_v58, %v180_v59  ;;  %v4298_v10 = vcombine.low %v176_v58, %v180_v59  ;;  %v181_v16 = vld [vmem:[#allocation5 + $0x1f8] sm:$0xff]  ;;  %v4995_v21 = vld [vmem:[#allocation8 + $0xc] ss:$16 sps:$4 sm:$0xff]   ;;  %v4993_v35 = vld [vmem:[#allocation8 + $0x8] ss:$16 sps:$4 sm:$0xff]  }
  0x75   :  { %555 = vmatpush1.bf16.msra.mxu0 %v4278_v43  ;;  %668 = vmatpush1.bf16.msra.mxu1 %v4280_v62  ;;  %v145_v43 = vld [vmem:[#allocation5 + $0xd8] sm:$0xff]  ;;  %v4300_v22 = vcombine.low %v177_v15, %v181_v16  ;;  %v108_v28 = vld [vmem:[#allocation2 + $0x70] sm:$0xff] }
  0x76   :  { %556 = vmatprep.subr.bf16.mxu0 %v4287_v45  ;;  %669 = vmatprep.subr.bf16.mxu1 %v4289_v63  ;;  %v4274_v45 = vcombine.low %v152_v30, %v156_v31  ;;  %v4268_v56 = vcombine.low %v145_v43, %v149_v44  ;;  %v161_v62 = vld [vmem:[#allocation5 + $0x158] sm:$0xff]  ;;  %v4999_v39 = vld [vmem:[#allocation8 + $0x28] ss:$16 sps:$4 sm:$0xff]   ;;  %v5007_v40 = vld [vmem:[#allocation8 + $0x4c] ss:$16 sps:$4 sm:$0xff]  }
  0x77   :  { %v165_v63 = vld [vmem:[#allocation5 + $0x178] sm:$0xff]  ;;  %v5011_v47 = vld [vmem:[#allocation8 + $0x68] ss:$16 sps:$4 sm:$0xff]   ;;  %v5031_v54 = vld [vmem:[#allocation8 + $0xcc] ss:$16 sps:$4 sm:$0xff]  }
  0x78   :  { %v4285_v6 = vcombine.high %v161_v62, %v165_v63  ;;  %v4990_v31 = vld [vmem:[#allocation8] ss:$16 sps:$4 sm:$0xff]   ;;  %v5004_v34 = vld [vmem:[#allocation8 + $0x44] ss:$16 sps:$4 sm:$0xff]   ;;  %v5037_v58 = vld [vmem:[#allocation8 + $0xec] ss:$16 sps:$4 sm:$0xff]  }
  0x79   :  { %557 = vmatpush1.bf16.msra.mxu0 %v4286_v51  ;;  %670 = vmatpush1.bf16.msra.mxu1 %v4288_v7  ;;  %v4269_v51 = vcombine.high %v145_v43, %v149_v44  ;;  %v169_v7 = vld [vmem:[#allocation5 + $0x198] sm:$0xff]  ;;  %v5005_v43 = vld [vmem:[#allocation8 + $0x48] ss:$16 sps:$4 sm:$0xff]   ;;  %v5013_v44 = vld [vmem:[#allocation8 + $0x6c] ss:$16 sps:$4 sm:$0xff]  }
  0x7a   :  { %558 = vmatprep.subr.bf16.mxu0 %v4295_v53  ;;  %671 = vmatprep.subr.bf16.mxu1 %v4297_v8  ;;  %v157_v53 = vld [vmem:[#allocation5 + $0x138] sm:$0xff] }
  0x7b   :  { %v4276_v2 = vcombine.low %v153_v52, %v157_v53  ;;  %v173_v8 = vld [vmem:[#allocation5 + $0x1b8] sm:$0xff] }
  0x7c   :  { %v4293_v12 = vcombine.high %v169_v7, %v173_v8  ;;  %v5040_v59 = vld [vmem:[#allocation8 + $0x104] ss:$16 sps:$4 sm:$0xff]  }
  0x7d   :  { %559 = vmatpush1.bf16.msra.mxu0 %v4294_v60  ;;  %672 = vmatpush1.bf16.msra.mxu1 %v4296_v17  ;;  %v4277_v60 = vcombine.high %v153_v52, %v157_v53  ;;  %v4292_v17 = vcombine.low %v169_v7, %v173_v8  ;;  %v5028_v52 = vld [vmem:[#allocation8 + $0xc4] ss:$16 sps:$4 sm:$0xff]   ;;  %v5026_v53 = vld [vmem:[#allocation8 + $0xc0] ss:$16 sps:$4 sm:$0xff]   ;;  %v5055_v7 = vld [vmem:[#allocation8 + $0x14c] ss:$16 sps:$4 sm:$0xff]  }
  0x7e   :  { %770 = vmatprep.subr.bf16.mxu0 %v4243_v1  ;;  %883 = vmatprep.subr.bf16.mxu1 %v4245_v19  ;;  %v4290_v1 = vcombine.low %v168_v49, %v172_v50  ;;  %v105_v19 = vld [vmem:[#allocation2 + $0x58] sm:$0xff]  ;;  %v5017_v49 = vld [vmem:[#allocation8 + $0x88] ss:$16 sps:$4 sm:$0xff]  }
  0x7f   :  { %v5020_v50 = vld [vmem:[#allocation8 + $0xa0] ss:$16 sps:$4 sm:$0xff]   ;;  %v5058_v8 = vld [vmem:[#allocation8 + $0x164] ss:$16 sps:$4 sm:$0xff]  }
  0x80   :  { %577 = vmatmul.mubr.bf16.vlgmr.msra.gmra.mrb[0].mxu0 %v5666_v4  ;;  %690 = vmatmul.mubr.bf16.vlgmr.msra.gmra.mrb[0].mxu1 %v5666_v4 }
  0x81   :  { %586 = vmatprep.mubr.bf16.mxu0 %v5559_v0  ;;  %771 = vmatpush1.bf16.msra.mxu0 %v4242_v9  ;;  %v103_v9 = vld [vmem:[#allocation2 + $0x48] sm:$0xff] }
  0x82   :  { %772 = vmatprep.subr.bf16.mxu0 %v4251_v11  ;;  %699 = vmatprep.mubr.bf16.mxu1 %v5559_v0  ;;  %v4284_v11 = vcombine.low %v161_v62, %v165_v63  ;;  %v5688_v14 = vpack.c.bf16 %v103_v9, %v102_v3  ;;  %v5043_v62 = vld [vmem:[#allocation8 + $0x10c] ss:$16 sps:$4 sm:$0xff]   ;;  %v5046_v63 = vld [vmem:[#allocation8 + $0x124] ss:$16 sps:$4 sm:$0xff]   ;;  %v5053_v9 = vld [vmem:[#allocation8 + $0x148] ss:$16 sps:$4 sm:$0xff]  }
  0x83   :  { %884 = vmatpush1.bf16.msra.mxu1 %v4244_v27  ;;  %v5049_v3 = vld [vmem:[#allocation8 + $0x12c] ss:$16 sps:$4 sm:$0xff]  }
  0x84   :  { %885 = vmatprep.subr.bf16.mxu1 %v4253_v32  ;;  %v4998_v32 = vld [vmem:[#allocation8 + $0x24] ss:$16 sps:$4 sm:$0xff]  }
  0x85   :  { %773 = vmatpush1.bf16.msra.mxu0 %v4250_v18  ;;  %v104_v18 = vld [vmem:[#allocation2 + $0x50] sm:$0xff] }
  0x86   :  { %774 = vmatprep.subr.bf16.mxu0 %v4259_v20  ;;  %v4301_v20 = vcombine.high %v177_v15, %v181_v16  ;;  %v5694_v24 = vpack.c.bf16 %v105_v19, %v104_v18  ;;  %v5067_v15 = vld [vmem:[#allocation8 + $0x18c] ss:$16 sps:$4 sm:$0xff]   ;;  %v5070_v16 = vld [vmem:[#allocation8 + $0x1a4] ss:$16 sps:$4 sm:$0xff]   ;;  %v5068_v18 = vld [vmem:[#allocation8 + $0x1a0] ss:$16 sps:$4 sm:$0xff]  }
  0x87   :  { %886 = vmatpush1.bf16.msra.mxu1 %v4252_v37  ;;  %v5002_v37 = vld [vmem:[#allocation8 + $0x40] ss:$16 sps:$4 sm:$0xff]   ;;  %v5073_v19 = vld [vmem:[#allocation8 + $0x1ac] ss:$16 sps:$4 sm:$0xff]  }
  0x88   :  { %587 = vmatmul.mubr.bf16.gmra.mrb[4].mxu0 %v5670_v23  ;;  %887 = vmatprep.subr.bf16.mxu1 %v4261_v41  ;;  %v5008_v41 = vld [vmem:[#allocation8 + $0x60] ss:$16 sps:$4 sm:$0xff]  }
  0x89   :  { %596 = vmatprep.mubr.bf16.mxu0 %v5559_v0  ;;  %775 = vmatpush1.bf16.msra.mxu0 %v4258_v26  ;;  %v107_v26 = vld [vmem:[#allocation2 + $0x68] sm:$0xff] }
  0x8a   :  { %776 = vmatprep.subr.bf16.mxu0 %v4267_v29  ;;  %700 = vmatmul.mubr.bf16.gmra.mrb[4].mxu1 %v5670_v23  ;;  %v5700_v27 = vpack.c.bf16 %v107_v26, %v106_v25  ;;  %v109_v29 = vld [vmem:[#allocation2 + $0x78] sm:$0xff]  ;;  %v5077_v26 = vld [vmem:[#allocation8 + $0x1c8] ss:$16 sps:$4 sm:$0xff]  }
  0x8b   :  { %709 = vmatprep.mubr.bf16.mxu1 %v5559_v0  ;;  %888 = vmatpush1.bf16.msra.mxu1 %v4260_v46  ;;  %v5706_v30 = vpack.c.bf16 %v109_v29, %v108_v28  ;;  %v5014_v46 = vld [vmem:[#allocation8 + $0x80] ss:$16 sps:$4 sm:$0xff]   ;;  %v5082_v25 = vld [vmem:[#allocation8 + $0x1e4] ss:$16 sps:$4 sm:$0xff]   ;;  %v5085_v28 = vld [vmem:[#allocation8 + $0x1ec] ss:$16 sps:$4 sm:$0xff]  }
  0x8c   :  { %889 = vmatprep.subr.bf16.mxu1 %v4269_v51  ;;  %v5025_v51 = vld [vmem:[#allocation8 + $0xac] ss:$16 sps:$4 sm:$0xff]   ;;  %v5080_v29 = vld [vmem:[#allocation8 + $0x1e0] ss:$16 sps:$4 sm:$0xff]  }
  0x8d   :  { %777 = vmatpush1.bf16.msra.mxu0 %v4266_v36  ;;  %v5001_v36 = vld [vmem:[#allocation8 + $0x2c] ss:$16 sps:$4 sm:$0xff]  }
  0x8e   :  { %778 = vmatprep.subr.bf16.mxu0 %v4275_v38  ;;  %v5010_v38 = vld [vmem:[#allocation8 + $0x64] ss:$16 sps:$4 sm:$0xff]  }
  0x8f   :  { %890 = vmatpush1.bf16.msra.mxu1 %v4268_v56  ;;  %v5029_v56 = vld [vmem:[#allocation8 + $0xc8] ss:$16 sps:$4 sm:$0xff]  }
  0x90   :  { %597 = vmatmul.mubr.bf16.gmra.mrb[8].mxu0 %v5676_v42  ;;  %891 = vmatprep.subr.bf16.mxu1 %v4277_v60  ;;  %v5038_v60 = vld [vmem:[#allocation8 + $0x100] ss:$16 sps:$4 sm:$0xff]  }
  0x91   :  { %606 = vmatprep.mubr.bf16.mxu0 %v5559_v0  ;;  %779 = vmatpush1.bf16.msra.mxu0 %v4274_v45  ;;  %v5016_v45 = vld [vmem:[#allocation8 + $0x84] ss:$16 sps:$4 sm:$0xff]  }
  0x92   :  { %780 = vmatprep.subr.bf16.mxu0 %v4283_v48  ;;  %710 = vmatmul.mubr.bf16.gmra.mrb[8].mxu1 %v5676_v42  ;;  %v5022_v48 = vld [vmem:[#allocation8 + $0xa4] ss:$16 sps:$4 sm:$0xff]  }
  0x93   :  { %719 = vmatprep.mubr.bf16.mxu1 %v5559_v0  ;;  %892 = vmatpush1.bf16.msra.mxu1 %v4276_v2  ;;  %v5044_v2 = vld [vmem:[#allocation8 + $0x120] ss:$16 sps:$4 sm:$0xff]  }
  0x94   :  { %893 = vmatprep.subr.bf16.mxu1 %v4285_v6  ;;  %v5050_v6 = vld [vmem:[#allocation8 + $0x140] ss:$16 sps:$4 sm:$0xff]  }
  0x95   :  { %781 = vmatpush1.bf16.msra.mxu0 %v4282_v55  ;;  %v5034_v55 = vld [vmem:[#allocation8 + $0xe4] ss:$16 sps:$4 sm:$0xff]  }
  0x96   :  { %782 = vmatprep.subr.bf16.mxu0 %v4291_v57  ;;  %v5032_v57 = vld [vmem:[#allocation8 + $0xe0] ss:$16 sps:$4 sm:$0xff]  }
  0x97   :  { %894 = vmatpush1.bf16.msra.mxu1 %v4284_v11  ;;  %v5061_v11 = vld [vmem:[#allocation8 + $0x16c] ss:$16 sps:$4 sm:$0xff]  }
  0x98   :  { %607 = vmatmul.mubr.bf16.gmra.mrb[12].mxu0 %v5682_v61  ;;  %895 = vmatprep.subr.bf16.mxu1 %v4293_v12  ;;  %v5064_v12 = vld [vmem:[#allocation8 + $0x184] ss:$16 sps:$4 sm:$0xff]  }
  0x99   :  { %616 = vmatprep.mubr.bf16.mxu0 %v5559_v0  ;;  %783 = vmatpush1.bf16.msra.mxu0 %v4290_v1  ;;  %v5041_v1 = vld [vmem:[#allocation8 + $0x108] ss:$16 sps:$4 sm:$0xff]  }
  0x9a   :  { %784 = vmatprep.subr.bf16.mxu0 %v4299_v5  ;;  %720 = vmatmul.mubr.bf16.gmra.mrb[12].mxu1 %v5682_v61  ;;  %v5052_v5 = vld [vmem:[#allocation8 + $0x144] ss:$16 sps:$4 sm:$0xff]  }
  0x9b   :  { %729 = vmatprep.mubr.bf16.mxu1 %v5559_v0  ;;  %896 = vmatpush1.bf16.msra.mxu1 %v4292_v17  ;;  %v5065_v17 = vld [vmem:[#allocation8 + $0x188] ss:$16 sps:$4 sm:$0xff]  }
  0x9c   :  { %897 = vmatprep.subr.bf16.mxu1 %v4301_v20  ;;  %v5076_v20 = vld [vmem:[#allocation8 + $0x1c4] ss:$16 sps:$4 sm:$0xff]  }
  0x9d   :  { %785 = vmatpush1.bf16.msra.mxu0 %v4298_v10  ;;  %v5056_v10 = vld [vmem:[#allocation8 + $0x160] ss:$16 sps:$4 sm:$0xff]  }
  0x9e   :  { %2746 = vmatprep.subr.bf16.mxu0 %v4992_v13  ;;  %v5059_v13 = vld [vmem:[#allocation8 + $0x168] ss:$16 sps:$4 sm:$0xff]  }
  0x9f   :  { %898 = vmatpush1.bf16.msra.mxu1 %v4300_v22  ;;  %v5079_v22 = vld [vmem:[#allocation8 + $0x1cc] ss:$16 sps:$4 sm:$0xff]  }
  0xa0   :  { %617 = vmatmul.mubr.bf16.gmra.mrb[16].mxu0 %v5688_v14  ;;  %3198 = vmatprep.subr.bf16.mxu1 %v4995_v21  ;;  %v5071_v21 = vld [vmem:[#allocation8 + $0x1a8] ss:$16 sps:$4 sm:$0xff]  }
  0xa1   :  { %626 = vmatprep.mubr.bf16.mxu0 %v5559_v0 }
  0xa2   :  { %730 = vmatmul.mubr.bf16.gmra.mrb[16].mxu1 %v5688_v14 }
  0xa3   :  { %739 = vmatprep.mubr.bf16.mxu1 %v5559_v0 }
  0xa8   :  { %627 = vmatmul.mubr.bf16.gmra.mrb[20].mxu0 %v5694_v24 }
  0xa9   :  { %636 = vmatprep.mubr.bf16.mxu0 %v5559_v0 }
  0xaa   :  { %740 = vmatmul.mubr.bf16.gmra.mrb[20].mxu1 %v5694_v24 }
  0xab   :  { %749 = vmatprep.mubr.bf16.mxu1 %v5559_v0 }
  0xb0   :  { %637 = vmatmul.mubr.bf16.gmra.mrb[24].mxu0 %v5700_v27 }
  0xb1   :  { %646 = vmatprep.mubr.bf16.mxu0 %v5559_v0 }
  0xb2   :  { %750 = vmatmul.mubr.bf16.gmra.mrb[24].mxu1 %v5700_v27 }
  0xb3   :  { %759 = vmatprep.mubr.bf16.mxu1 %v5559_v0 }
  0xb8   :  { %647 = vmatmul.mubr.bf16.gmra.mrb[28].mxu0 %v5706_v30 }
  0xb9   :  { %802 = vmatprep.mubr.bf16.mxu0 %v5559_v0 }
  0xba   :  { %760 = vmatmul.mubr.bf16.gmra.mrb[28].mxu1 %v5706_v30 }
  0xbb   :  { %915 = vmatprep.mubr.bf16.mxu1 %v5559_v0 }
  0xc0   :  { %803 = vmatmul.mubr.bf16.vlgmr.msra.gmra.mrb[32].mxu0 %v5666_v4 }
  0xc1   :  { %812 = vmatprep.mubr.bf16.mxu0 %v5559_v0  ;;  %2747 = vmatpush1.bf16.msra.mxu0 %v4990_v31  ;;  %v5088_v31 = vld [vmem:[#allocation8 + $0x204] ss:$16 sps:$4 sm:$0xff]  }
  0xc2   :  { %2748 = vmatprep.subr.bf16.mxu0 %v4998_v32  ;;  %916 = vmatmul.mubr.bf16.vlgmr.msra.gmra.mrb[32].mxu1 %v5666_v4  ;;  %v5019_v4 = vld [vmem:[#allocation8 + $0x8c] ss:$16 sps:$4 sm:$0xff]  }
  0xc3   :  { %3199 = vmatpush1.bf16.msra.mxu1 %v4993_v35  ;;  %925 = vmatprep.mubr.bf16.mxu1 %v5559_v0  ;;  %v5091_v32 = vld [vmem:[#allocation8 + $0x20c] ss:$16 sps:$4 sm:$0xff]  }
  0xc4   :  { %3200 = vmatprep.subr.bf16.mxu1 %v5001_v36  ;;  %v5747_v35 = vld [vmem:[#allocation7] sm:$0xff] }
  0xc5   :  { %2749 = vmatpush1.bf16.msra.mxu0 %v4996_v33 }
  0xc6   :  { %2750 = vmatprep.subr.bf16.mxu0 %v5004_v34 }
  0xc7   :  { %3201 = vmatpush1.bf16.msra.mxu1 %v4999_v39 }
  0xc8   :  { %813 = vmatmul.mubr.bf16.gmra.mrb[36].mxu0 %v5670_v23  ;;  %3202 = vmatprep.subr.bf16.mxu1 %v5007_v40 }
  0xc9   :  { %822 = vmatprep.mubr.bf16.mxu0 %v5559_v0  ;;  %2751 = vmatpush1.bf16.msra.mxu0 %v5002_v37 }
  0xca   :  { %2752 = vmatprep.subr.bf16.mxu0 %v5010_v38  ;;  %926 = vmatmul.mubr.bf16.gmra.mrb[36].mxu1 %v5670_v23  ;;  %v5023_v23 = vld [vmem:[#allocation8 + $0xa8] ss:$16 sps:$4 sm:$0xff]  }
  0xcb   :  { %3203 = vmatpush1.bf16.msra.mxu1 %v5005_v43  ;;  %935 = vmatprep.mubr.bf16.mxu1 %v5559_v0 }
  0xcc   :  { %3204 = vmatprep.subr.bf16.mxu1 %v5013_v44 }
  0xcd   :  { %2753 = vmatpush1.bf16.msra.mxu0 %v5008_v41 }
  0xce   :  { %2754 = vmatprep.subr.bf16.mxu0 %v5016_v45 }
  0xcf   :  { %3205 = vmatpush1.bf16.msra.mxu1 %v5011_v47 }
  0xd0   :  { %823 = vmatmul.mubr.bf16.gmra.mrb[40].mxu0 %v5676_v42  ;;  %3206 = vmatprep.subr.bf16.mxu1 %v5019_v4 }
  0xd1   :  { %832 = vmatprep.mubr.bf16.mxu0 %v5559_v0  ;;  %2755 = vmatpush1.bf16.msra.mxu0 %v5014_v46 }
  0xd2   :  { %2756 = vmatprep.subr.bf16.mxu0 %v5022_v48  ;;  %936 = vmatmul.mubr.bf16.gmra.mrb[40].mxu1 %v5676_v42  ;;  %v5035_v42 = vld [vmem:[#allocation8 + $0xe8] ss:$16 sps:$4 sm:$0xff]  }
  0xd3   :  { %3207 = vmatpush1.bf16.msra.mxu1 %v5017_v49  ;;  %945 = vmatprep.mubr.bf16.mxu1 %v5559_v0 }
  0xd4   :  { %3208 = vmatprep.subr.bf16.mxu1 %v5025_v51 }
  0xd5   :  { %2757 = vmatpush1.bf16.msra.mxu0 %v5020_v50 }
  0xd6   :  { %2758 = vmatprep.subr.bf16.mxu0 %v5028_v52 }
  0xd7   :  { %3209 = vmatpush1.bf16.msra.mxu1 %v5023_v23 }
  0xd8   :  { %833 = vmatmul.mubr.bf16.gmra.mrb[44].mxu0 %v5682_v61  ;;  %3210 = vmatprep.subr.bf16.mxu1 %v5031_v54 }
  0xd9   :  { %842 = vmatprep.mubr.bf16.mxu0 %v5559_v0  ;;  %2759 = vmatpush1.bf16.msra.mxu0 %v5026_v53 }
  0xda   :  { %2760 = vmatprep.subr.bf16.mxu0 %v5034_v55  ;;  %946 = vmatmul.mubr.bf16.gmra.mrb[44].mxu1 %v5682_v61  ;;  %v5047_v61 = vld [vmem:[#allocation8 + $0x128] ss:$16 sps:$4 sm:$0xff]  }
  0xdb   :  { %3211 = vmatpush1.bf16.msra.mxu1 %v5029_v56  ;;  %955 = vmatprep.mubr.bf16.mxu1 %v5559_v0  ;;  %v5086_v56 = vld [vmem:[#allocation8 + $0x200] ss:$16 sps:$4 sm:$0xff]  }
  0xdc   :  { %3212 = vmatprep.subr.bf16.mxu1 %v5037_v58 }
  0xdd   :  { %2761 = vmatpush1.bf16.msra.mxu0 %v5032_v57  ;;  %v5089_v57 = vld [vmem:[#allocation8 + $0x208] ss:$16 sps:$4 sm:$0xff]  }
  0xde   :  { %2762 = vmatprep.subr.bf16.mxu0 %v5040_v59 }
  0xdf   :  { %3213 = vmatpush1.bf16.msra.mxu1 %v5035_v42 }
  0xe0   :  { %843 = vmatmul.mubr.bf16.gmra.mrb[48].mxu0 %v5688_v14  ;;  %3214 = vmatprep.subr.bf16.mxu1 %v5043_v62  ;;  %v5097_v62 = vld [vmem:[#allocation8 + $0x22c] ss:$16 sps:$4 sm:$0xff]  }
  0xe1   :  { %852 = vmatprep.mubr.bf16.mxu0 %v5559_v0  ;;  %2763 = vmatpush1.bf16.msra.mxu0 %v5038_v60  ;;  %v5094_v60 = vld [vmem:[#allocation8 + $0x224] ss:$16 sps:$4 sm:$0xff]  }
  0xe2   :  { %2764 = vmatprep.subr.bf16.mxu0 %v5046_v63  ;;  %956 = vmatmul.mubr.bf16.gmra.mrb[48].mxu1 %v5688_v14  ;;  %v5062_v14 = vld [vmem:[#allocation8 + $0x180] ss:$16 sps:$4 sm:$0xff]  }
  0xe3   :  { %3215 = vmatpush1.bf16.msra.mxu1 %v5041_v1  ;;  %965 = vmatprep.mubr.bf16.mxu1 %v5559_v0 }
  0xe4   :  { %3216 = vmatprep.subr.bf16.mxu1 %v5049_v3 }
  0xe5   :  { %2765 = vmatpush1.bf16.msra.mxu0 %v5044_v2 }
  0xe6   :  { %2766 = vmatprep.subr.bf16.mxu0 %v5052_v5 }
  0xe7   :  { %3217 = vmatpush1.bf16.msra.mxu1 %v5047_v61 }
  0xe8   :  { %853 = vmatmul.mubr.bf16.gmra.mrb[52].mxu0 %v5694_v24  ;;  %3218 = vmatprep.subr.bf16.mxu1 %v5055_v7 }
  0xe9   :  { %862 = vmatprep.mubr.bf16.mxu0 %v5559_v0  ;;  %2767 = vmatpush1.bf16.msra.mxu0 %v5050_v6 }
  0xea   :  { %2768 = vmatprep.subr.bf16.mxu0 %v5058_v8  ;;  %966 = vmatmul.mubr.bf16.gmra.mrb[52].mxu1 %v5694_v24  ;;  %v5074_v24 = vld [vmem:[#allocation8 + $0x1c0] ss:$16 sps:$4 sm:$0xff]  }
  0xeb   :  { %3219 = vmatpush1.bf16.msra.mxu1 %v5053_v9  ;;  %975 = vmatprep.mubr.bf16.mxu1 %v5559_v0  ;;  %v5092_v8 = vld [vmem:[#allocation8 + $0x220] ss:$16 sps:$4 sm:$0xff]  }
  0xec   :  { %3220 = vmatprep.subr.bf16.mxu1 %v5061_v11 }
  0xed   :  { %2769 = vmatpush1.bf16.msra.mxu0 %v5056_v10 }
  0xee   :  { %2770 = vmatprep.subr.bf16.mxu0 %v5064_v12 }
  0xef   :  { %3221 = vmatpush1.bf16.msra.mxu1 %v5059_v13  ;;  %v5095_v13 = vld [vmem:[#allocation8 + $0x228] ss:$16 sps:$4 sm:$0xff]  }
  0xf0   :  { %863 = vmatmul.mubr.bf16.gmra.mrb[56].mxu0 %v5700_v27  ;;  %3222 = vmatprep.subr.bf16.mxu1 %v5067_v15 }
  0xf1   :  { %872 = vmatprep.mubr.bf16.mxu0 %v5559_v0  ;;  %2771 = vmatpush1.bf16.msra.mxu0 %v5062_v14  ;;  %v5100_v14 = vld [vmem:[#allocation8 + $0x244] ss:$16 sps:$4 sm:$0xff]  }
  0xf2   :  { %2772 = vmatprep.subr.bf16.mxu0 %v5070_v16  ;;  %976 = vmatmul.mubr.bf16.gmra.mrb[56].mxu1 %v5700_v27  ;;  %v5083_v27 = vld [vmem:[#allocation8 + $0x1e8] ss:$16 sps:$4 sm:$0xff]  }
  0xf3   :  { %3223 = vmatpush1.bf16.msra.mxu1 %v5065_v17  ;;  %985 = vmatprep.mubr.bf16.mxu1 %v5559_v0  ;;  %v184_v0 = vlaneseq }
  0xf4   :  { %3224 = vmatprep.subr.bf16.mxu1 %v5073_v19  ;;  %v5103_v19 = vld [vmem:[#allocation8 + $0x24c] ss:$16 sps:$4 sm:$0xff]  }
  0xf5   :  { %2773 = vmatpush1.bf16.msra.mxu0 %v5068_v18  ;;  %v5744_v33 = vshrl.u32 %v184_v0, 7 }
  0xf6   :  { %2774 = vmatprep.subr.bf16.mxu0 %v5076_v20 }
  0xf7   :  { %3225 = vmatpush1.bf16.msra.mxu1 %v5071_v21  ;;  %v186_v34 = vsub.s32 0, %v5744_v33  ;;  %v190_v36 = vsub.s32 1, %v5744_v33  ;;  %v194_v41 = vsub.s32 2, %v5744_v33  ;;  %v198_v45 = vsub.s32 3, %v5744_v33 }
  0xf8   :  { %873 = vmatmul.mubr.bf16.gmra.mrb[60].mxu0 %v5706_v30  ;;  %3226 = vmatprep.subr.bf16.mxu1 %v5079_v22 }
  0xf9   :  { %2775 = vmatpush1.bf16.msra.mxu0 %v5074_v24  ;;  %v5758_v37 = vrot.slane %v5747_v35, %v190_v36  ;;  %v5769_v50 = vrot.slane %v5747_v35, %v194_v41  ;;  %v5774_v23 = vrot.slane %v5747_v35, %v198_v45 }
  0xfa   :  { %2776 = vmatprep.subr.bf16.mxu0 %v5082_v25  ;;  %986 = vmatmul.mubr.bf16.gmra.mrb[60].mxu1 %v5706_v30  ;;  %v5753_v30 = vrot.slane %v5747_v35, %v186_v34 }
  0xfb   :  { %3227 = vmatpush1.bf16.msra.mxu1 %v5077_v26 }
  0xfc   :  { %3228 = vmatprep.subr.bf16.mxu1 %v5085_v28 }
  0xfd   :  { %2777 = vmatpush1.bf16.msra.mxu0 %v5080_v29 }
  0xfe   :  { %2859 = vmatprep.subr.bf16.mxu0 %v5088_v31  ;;  %v5098_v31 = vld [vmem:[#allocation8 + $0x240] ss:$16 sps:$4 sm:$0xff]  }
  0xff   :  { %3229 = vmatpush1.bf16.msra.mxu1 %v5083_v27  ;;  %v5101_v27 = vld [vmem:[#allocation8 + $0x248] ss:$16 sps:$4 sm:$0xff]  }
 0x100   :  { %3311 = vmatprep.subr.bf16.mxu1 %v5091_v32 }
 0x153   :  { %v578_v38 = vpop.f32.mrb[0].mxu0  ;;  %v691_v58 = vpop.f32.mrb[0].mxu1 }
 0x154   :  { %v579_v39 = vadd.f32 %v578_v38, %v5753_v30  ;;  %v580_v40 = vpop.f32.mrb[1].mxu0  ;;  %v692_v63 = vadd.f32 %v691_v58, %v5769_v50  ;;  %v693_v1 = vpop.f32.mrb[1].mxu1  ;;  %v5107_v58 = vld [vmem:[#allocation8 + $0x268] ss:$16 sps:$4 sm:$0xff]  }
 0x155   :  { %v581_v43 = vadd.f32 %v580_v40, %v5758_v37  ;;  %v582_v44 = vpop.f32.mrb[2].mxu0  ;;  %v694_v5 = vadd.f32 %v693_v1, %v5774_v23  ;;  %v695_v61 = vpop.f32.mrb[2].mxu1  ;;  %v5106_v40 = vld [vmem:[#allocation8 + $0x264] ss:$16 sps:$4 sm:$0xff]   ;;  %v5115_v1 = vld [vmem:[#allocation8 + $0x28c] ss:$16 sps:$4 sm:$0xff]  }
 0x156   :  { %v583_v46 = vadd.f32 %v582_v44, %v5753_v30  ;;  %v584_v47 = vpop.f32.mrb[3].mxu0  ;;  %v996_v4 = vmax.f32 %v579_v39, 0.0  ;;  %v998_v9 = vmax.f32 %v692_v63, 0.0  ;;  %v696_v10 = vadd.f32 %v695_v61, %v5769_v50  ;;  %v697_v11 = vpop.f32.mrb[3].mxu1 }
 0x157   :  { %v585_v48 = vadd.f32 %v584_v47, %v5758_v37  ;;  %v997_v51 = vmax.f32 %v581_v43, 0.0  ;;  %v999_v15 = vmax.f32 %v694_v5, 0.0  ;;  %v698_v16 = vadd.f32 %v697_v11, %v5774_v23  ;;  %v5109_v43 = vld [vmem:[#allocation8 + $0x26c] ss:$16 sps:$4 sm:$0xff]   ;;  %v5113_v11 = vld [vmem:[#allocation8 + $0x288] ss:$16 sps:$4 sm:$0xff]  }
 0x158   :  { %v1004_v49 = vmax.f32 %v583_v46, 0.0  ;;  %v1006_v20 = vmax.f32 %v696_v10, 0.0  ;;  %v5110_v10 = vld [vmem:[#allocation8 + $0x280] ss:$16 sps:$4 sm:$0xff]  }
 0x159   :  { %v1005_v52 = vmax.f32 %v585_v48, 0.0  ;;  %v1007_v24 = vmax.f32 %v698_v16, 0.0  ;;  %v5118_v16 = vld [vmem:[#allocation8 + $0x2a4] ss:$16 sps:$4 sm:$0xff]  }
 0x15a   :  { %v1124_v53 = vpack.c.bf16 %v1004_v49, %v996_v4  ;;  %v5784_v26 = vpack.c.bf16 %v1006_v20, %v998_v9 }
 0x15b   :  { %v1125_v54 = vpack.c.bf16 %v1005_v52, %v997_v51  ;;  %v588_v55 = vpop.f32.mrb[4].mxu0  ;;  %v5786_v32 = vpack.c.bf16 %v1007_v24, %v999_v15 }
 0x15c   :  { %v589_v59 = vadd.f32 %v588_v55, %v5753_v30  ;;  %v590_v42 = vpop.f32.mrb[5].mxu0 }
 0x15d   :  { %v591_v2 = vadd.f32 %v590_v42, %v5758_v37  ;;  %v592_v3 = vpop.f32.mrb[6].mxu0  ;;  %2778 = vmatprep.mubr.bf16.mxu0 %v1125_v54  ;;  %3230 = vmatprep.mubr.bf16.mxu1 %v1125_v54  ;;  %v701_v0 = vpop.f32.mrb[4].mxu1 }
 0x15e   :  { %v593_v6 = vadd.f32 %v592_v3, %v5753_v30  ;;  %v594_v7 = vpop.f32.mrb[7].mxu0  ;;  %2779 = vmatmul.mubr.bf16.vlgmr.msra.gmra.mrb[64].mxu0 %v1124_v53  ;;  %3231 = vmatmul.mubr.bf16.vlgmr.msra.gmra.mrb[64].mxu1 %v1124_v53  ;;  %v1012_v17 = vmax.f32 %v589_v59, 0.0  ;;  %v702_v44 = vadd.f32 %v701_v0, %v5769_v50  ;;  %v703_v46 = vpop.f32.mrb[5].mxu1  ;;  %v5104_v53 = vld [vmem:[#allocation8 + $0x260] ss:$16 sps:$4 sm:$0xff]  }
 0x15f   :  { %v595_v12 = vadd.f32 %v594_v7, %v5758_v37  ;;  %2860 = vmatpush1.bf16.msra.mxu0 %v5086_v56  ;;  %3312 = vmatpush1.bf16.msra.mxu1 %v5089_v57  ;;  %v1013_v21 = vmax.f32 %v591_v2, 0.0  ;;  %v704_v4 = vadd.f32 %v703_v46, %v5774_v23  ;;  %v705_v49 = vpop.f32.mrb[6].mxu1  ;;  %v5112_v59 = vld [vmem:[#allocation8 + $0x284] ss:$16 sps:$4 sm:$0xff]  }
 0x160   :  { %v1020_v18 = vmax.f32 %v593_v6, 0.0  ;;  %2861 = vmatprep.subr.bf16.mxu0 %v5094_v60  ;;  %3313 = vmatprep.subr.bf16.mxu1 %v5097_v62  ;;  %v1014_v54 = vmax.f32 %v702_v44, 0.0  ;;  %v706_v55 = vadd.f32 %v705_v49, %v5769_v50  ;;  %v707_v56 = vpop.f32.mrb[7].mxu1 }
 0x161   :  { %v1021_v22 = vmax.f32 %v595_v12, 0.0  ;;  %v1015_v42 = vmax.f32 %v704_v4, 0.0  ;;  %v708_v60 = vadd.f32 %v707_v56, %v5774_v23 }
 0x162   :  { %v1132_v25 = vpack.c.bf16 %v1020_v18, %v1012_v17  ;;  %v1022_v2 = vmax.f32 %v706_v55, 0.0  ;;  %v5121_v17 = vld [vmem:[#allocation8 + $0x2ac] ss:$16 sps:$4 sm:$0xff]  }
 0x163   :  { %v1133_v28 = vpack.c.bf16 %v1021_v22, %v1013_v21  ;;  %2862 = vmatpush1.bf16.msra.mxu0 %v5092_v8  ;;  %v598_v29 = vpop.f32.mrb[8].mxu0  ;;  %3314 = vmatpush1.bf16.msra.mxu1 %v5095_v13  ;;  %v1023_v61 = vmax.f32 %v708_v60, 0.0 }
 0x164   :  { %v599_v38 = vadd.f32 %v598_v29, %v5753_v30  ;;  %v600_v39 = vpop.f32.mrb[9].mxu0  ;;  %2863 = vmatprep.subr.bf16.mxu0 %v5100_v14  ;;  %3315 = vmatprep.subr.bf16.mxu1 %v5103_v19  ;;  %v5796_v7 = vpack.c.bf16 %v1022_v2, %v1014_v54  ;;  %v5116_v29 = vld [vmem:[#allocation8 + $0x2a0] ss:$16 sps:$4 sm:$0xff]  }
 0x165   :  { %v601_v47 = vadd.f32 %v600_v39, %v5758_v37  ;;  %v602_v48 = vpop.f32.mrb[10].mxu0  ;;  %2788 = vmatprep.mubr.bf16.mxu0 %v1133_v28  ;;  %3240 = vmatprep.mubr.bf16.mxu1 %v1133_v28  ;;  %v5798_v12 = vpack.c.bf16 %v1023_v61, %v1015_v42  ;;  %v711_v13 = vpop.f32.mrb[8].mxu1  ;;  %v5119_v39 = vld [vmem:[#allocation8 + $0x2a8] ss:$16 sps:$4 sm:$0xff]  }
 0x166   :  { %v603_v51 = vadd.f32 %v602_v48, %v5753_v30  ;;  %v604_v52 = vpop.f32.mrb[11].mxu0  ;;  %2789 = vmatmul.mubr.bf16.gmra.mrb[68].mxu0 %v1132_v25  ;;  %3241 = vmatmul.mubr.bf16.gmra.mrb[68].mxu1 %v1132_v25  ;;  %v1028_v62 = vmax.f32 %v599_v38, 0.0  ;;  %v712_v18 = vadd.f32 %v711_v13, %v5769_v50  ;;  %v713_v19 = vpop.f32.mrb[9].mxu1  ;;  %v5127_v48 = vld [vmem:[#allocation8 + $0x2cc] ss:$16 sps:$4 sm:$0xff]  }
 0x167   :  { %v605_v57 = vadd.f32 %v604_v52, %v5758_v37  ;;  %2864 = vmatpush1.bf16.msra.mxu0 %v5098_v31  ;;  %3316 = vmatpush1.bf16.msra.mxu1 %v5101_v27  ;;  %v1029_v3 = vmax.f32 %v601_v47, 0.0  ;;  %v714_v22 = vadd.f32 %v713_v19, %v5774_v23  ;;  %v715_v24 = vpop.f32.mrb[10].mxu1 }
 0x168   :  { %v1036_v63 = vmax.f32 %v603_v51, 0.0  ;;  %2865 = vmatprep.subr.bf16.mxu0 %v5106_v40  ;;  %3317 = vmatprep.subr.bf16.mxu1 %v5109_v43  ;;  %v1030_v31 = vmax.f32 %v712_v18, 0.0  ;;  %v716_v27 = vadd.f32 %v715_v24, %v5769_v50  ;;  %v717_v0 = vpop.f32.mrb[11].mxu1  ;;  %v5124_v40 = vld [vmem:[#allocation8 + $0x2c4] ss:$16 sps:$4 sm:$0xff]  }
 0x169   :  { %v1037_v5 = vmax.f32 %v605_v57, 0.0  ;;  %v1031_v43 = vmax.f32 %v714_v22, 0.0  ;;  %v718_v44 = vadd.f32 %v717_v0, %v5774_v23  ;;  %v5122_v57 = vld [vmem:[#allocation8 + $0x2c0] ss:$16 sps:$4 sm:$0xff]   ;;  %v5136_v18 = vld [vmem:[#allocation8 + $0x304] ss:$16 sps:$4 sm:$0xff]  }
 0x16a   :  { %v1140_v6 = vpack.c.bf16 %v1036_v63, %v1028_v62  ;;  %v1038_v4 = vmax.f32 %v716_v27, 0.0  ;;  %v5130_v63 = vld [vmem:[#allocation8 + $0x2e4] ss:$16 sps:$4 sm:$0xff]   ;;  %v5139_v24 = vld [vmem:[#allocation8 + $0x30c] ss:$16 sps:$4 sm:$0xff]  }
 0x16b   :  { %v1141_v8 = vpack.c.bf16 %v1037_v5, %v1029_v3  ;;  %2866 = vmatpush1.bf16.msra.mxu0 %v5104_v53  ;;  %v608_v9 = vpop.f32.mrb[12].mxu0  ;;  %3318 = vmatpush1.bf16.msra.mxu1 %v5107_v58  ;;  %v1039_v52 = vmax.f32 %v718_v44, 0.0  ;;  %v5125_v58 = vld [vmem:[#allocation8 + $0x2c8] ss:$16 sps:$4 sm:$0xff]  }
 0x16c   :  { %v609_v14 = vadd.f32 %v608_v9, %v5753_v30  ;;  %v610_v15 = vpop.f32.mrb[13].mxu0  ;;  %2867 = vmatprep.subr.bf16.mxu0 %v5112_v59  ;;  %3319 = vmatprep.subr.bf16.mxu1 %v5115_v1  ;;  %v5808_v54 = vpack.c.bf16 %v1038_v4, %v1030_v31  ;;  %v5133_v1 = vld [vmem:[#allocation8 + $0x2ec] ss:$16 sps:$4 sm:$0xff]   ;;  %v5142_v4 = vld [vmem:[#allocation8 + $0x324] ss:$16 sps:$4 sm:$0xff]  }
 0x16d   :  { %v611_v20 = vadd.f32 %v610_v15, %v5758_v37  ;;  %v612_v21 = vpop.f32.mrb[14].mxu0  ;;  %2798 = vmatprep.mubr.bf16.mxu0 %v1141_v8  ;;  %3250 = vmatprep.mubr.bf16.mxu1 %v1141_v8  ;;  %v5810_v59 = vpack.c.bf16 %v1039_v52, %v1031_v43  ;;  %v721_v42 = vpop.f32.mrb[12].mxu1  ;;  %v5137_v43 = vld [vmem:[#allocation8 + $0x308] ss:$16 sps:$4 sm:$0xff]  }
 0x16e   :  { %v613_v25 = vadd.f32 %v612_v21, %v5753_v30  ;;  %v614_v28 = vpop.f32.mrb[15].mxu0  ;;  %2799 = vmatmul.mubr.bf16.gmra.mrb[72].mxu0 %v1140_v6  ;;  %3251 = vmatmul.mubr.bf16.gmra.mrb[72].mxu1 %v1140_v6  ;;  %v1044_v46 = vmax.f32 %v609_v14, 0.0  ;;  %v722_v2 = vadd.f32 %v721_v42, %v5769_v50  ;;  %v723_v3 = vpop.f32.mrb[13].mxu1 }
 0x16f   :  { %v615_v38 = vadd.f32 %v614_v28, %v5758_v37  ;;  %2868 = vmatpush1.bf16.msra.mxu0 %v5110_v10  ;;  %3320 = vmatpush1.bf16.msra.mxu1 %v5113_v11  ;;  %v1045_v49 = vmax.f32 %v611_v20, 0.0  ;;  %v724_v6 = vadd.f32 %v723_v3, %v5774_v23  ;;  %v725_v8 = vpop.f32.mrb[14].mxu1  ;;  %v5128_v11 = vld [vmem:[#allocation8 + $0x2e0] ss:$16 sps:$4 sm:$0xff]   ;;  %v5143_v3 = vld [vmem:[#allocation8 + $0x328] ss:$16 sps:$4 sm:$0xff]  }
 0x170   :  { %v1052_v47 = vmax.f32 %v613_v25, 0.0  ;;  %2869 = vmatprep.subr.bf16.mxu0 %v5118_v16  ;;  %3321 = vmatprep.subr.bf16.mxu1 %v5121_v17  ;;  %v1046_v13 = vmax.f32 %v722_v2, 0.0  ;;  %v726_v14 = vadd.f32 %v725_v8, %v5769_v50  ;;  %v727_v15 = vpop.f32.mrb[15].mxu1  ;;  %v5131_v17 = vld [vmem:[#allocation8 + $0x2e8] ss:$16 sps:$4 sm:$0xff]  }
 0x171   :  { %v1053_v51 = vmax.f32 %v615_v38, 0.0  ;;  %v1047_v19 = vmax.f32 %v724_v6, 0.0  ;;  %v728_v20 = vadd.f32 %v727_v15, %v5774_v23 }
 0x172   :  { %v1148_v53 = vpack.c.bf16 %v1052_v47, %v1044_v46  ;;  %v1054_v25 = vmax.f32 %v726_v14, 0.0 }
 0x173   :  { %v1149_v55 = vpack.c.bf16 %v1053_v51, %v1045_v49  ;;  %2870 = vmatpush1.bf16.msra.mxu0 %v5116_v29  ;;  %v618_v56 = vpop.f32.mrb[16].mxu0  ;;  %3322 = vmatpush1.bf16.msra.mxu1 %v5119_v39  ;;  %v1055_v31 = vmax.f32 %v728_v20, 0.0  ;;  %v5145_v49 = vld [vmem:[#allocation8 + $0x32c] ss:$16 sps:$4 sm:$0xff]   ;;  %v5146_v20 = vld [vmem:[#allocation8 + $0x340] ss:$16 sps:$4 sm:$0xff]  }
 0x174   :  { %v619_v60 = vadd.f32 %v618_v56, %v5753_v30  ;;  %v620_v62 = vpop.f32.mrb[17].mxu0  ;;  %2871 = vmatprep.subr.bf16.mxu0 %v5124_v40  ;;  %3323 = vmatprep.subr.bf16.mxu1 %v5127_v48  ;;  %v5820_v0 = vpack.c.bf16 %v1054_v25, %v1046_v13  ;;  %v5134_v40 = vld [vmem:[#allocation8 + $0x300] ss:$16 sps:$4 sm:$0xff]  }
 0x175   :  { %v621_v5 = vadd.f32 %v620_v62, %v5758_v37  ;;  %v622_v61 = vpop.f32.mrb[18].mxu0  ;;  %2808 = vmatprep.mubr.bf16.mxu0 %v1149_v55  ;;  %3260 = vmatprep.mubr.bf16.mxu1 %v1149_v55  ;;  %v5822_v44 = vpack.c.bf16 %v1055_v31, %v1047_v19  ;;  %v731_v46 = vpop.f32.mrb[16].mxu1  ;;  %v5157_v31 = vld [vmem:[#allocation8 + $0x36c] ss:$16 sps:$4 sm:$0xff]  }
 0x176   :  { %v623_v9 = vadd.f32 %v622_v61, %v5753_v30  ;;  %v624_v10 = vpop.f32.mrb[19].mxu0  ;;  %2809 = vmatmul.mubr.bf16.gmra.mrb[76].mxu0 %v1148_v53  ;;  %3261 = vmatmul.mubr.bf16.gmra.mrb[76].mxu1 %v1148_v53  ;;  %v1060_v21 = vmax.f32 %v619_v60, 0.0  ;;  %v732_v51 = vadd.f32 %v731_v46, %v5769_v50  ;;  %v733_v52 = vpop.f32.mrb[17].mxu1  ;;  %v5140_v60 = vld [vmem:[#allocation8 + $0x320] ss:$16 sps:$4 sm:$0xff]  }
 0x177   :  { %v625_v16 = vadd.f32 %v624_v10, %v5758_v37  ;;  %2872 = vmatpush1.bf16.msra.mxu0 %v5122_v57  ;;  %3324 = vmatpush1.bf16.msra.mxu1 %v5125_v58  ;;  %v1061_v28 = vmax.f32 %v621_v5, 0.0  ;;  %v734_v56 = vadd.f32 %v733_v52, %v5774_v23  ;;  %v735_v57 = vpop.f32.mrb[18].mxu1  ;;  %v5148_v5 = vld [vmem:[#allocation8 + $0x344] ss:$16 sps:$4 sm:$0xff]   ;;  %v5151_v10 = vld [vmem:[#allocation8 + $0x34c] ss:$16 sps:$4 sm:$0xff]  }
 0x178   :  { %v1068_v22 = vmax.f32 %v623_v9, 0.0  ;;  %2873 = vmatprep.subr.bf16.mxu0 %v5130_v63  ;;  %3325 = vmatprep.subr.bf16.mxu1 %v5133_v1  ;;  %v1062_v62 = vmax.f32 %v732_v51, 0.0  ;;  %v736_v63 = vadd.f32 %v735_v57, %v5769_v50  ;;  %v737_v1 = vpop.f32.mrb[19].mxu1 }
 0x179   :  { %v1069_v29 = vmax.f32 %v625_v16, 0.0  ;;  %v1063_v61 = vmax.f32 %v734_v56, 0.0  ;;  %v738_v6 = vadd.f32 %v737_v1, %v5774_v23  ;;  %v5160_v56 = vld [vmem:[#allocation8 + $0x384] ss:$16 sps:$4 sm:$0xff]  }
 0x17a   :  { %v1156_v27 = vpack.c.bf16 %v1068_v22, %v1060_v21  ;;  %v5149_v21 = vld [vmem:[#allocation8 + $0x348] ss:$16 sps:$4 sm:$0xff]  }
 0x17b   :  { %v1157_v38 = vpack.c.bf16 %v1069_v29, %v1061_v28  ;;  %2874 = vmatpush1.bf16.msra.mxu0 %v5128_v11  ;;  %v628_v39 = vpop.f32.mrb[20].mxu0  ;;  %3326 = vmatpush1.bf16.msra.mxu1 %v5131_v17  ;;  %v1070_v11 = vmax.f32 %v736_v63, 0.0  ;;  %v1071_v15 = vmax.f32 %v738_v6, 0.0  ;;  %v5154_v29 = vld [vmem:[#allocation8 + $0x364] ss:$16 sps:$4 sm:$0xff]  }
 0x17c   :  { %v629_v47 = vadd.f32 %v628_v39, %v5753_v30  ;;  %v630_v48 = vpop.f32.mrb[21].mxu0  ;;  %2875 = vmatprep.subr.bf16.mxu0 %v5136_v18  ;;  %3327 = vmatprep.subr.bf16.mxu1 %v5139_v24 }
 0x17d   :  { %v631_v53 = vadd.f32 %v630_v48, %v5758_v37  ;;  %v632_v55 = vpop.f32.mrb[22].mxu0  ;;  %2818 = vmatprep.mubr.bf16.mxu0 %v1157_v38  ;;  %3270 = vmatprep.mubr.bf16.mxu1 %v1157_v38  ;;  %v5832_v17 = vpack.c.bf16 %v1070_v11, %v1062_v62  ;;  %v5834_v22 = vpack.c.bf16 %v1071_v15, %v1063_v61  ;;  %v741_v24 = vpop.f32.mrb[20].mxu1  ;;  %v5163_v62 = vld [vmem:[#allocation8 + $0x38c] ss:$16 sps:$4 sm:$0xff]   ;;  %v5158_v61 = vld [vmem:[#allocation8 + $0x380] ss:$16 sps:$4 sm:$0xff]  }
 0x17e   :  { %v633_v58 = vadd.f32 %v632_v55, %v5753_v30  ;;  %v634_v42 = vpop.f32.mrb[23].mxu0  ;;  %2819 = vmatmul.mubr.bf16.gmra.mrb[80].mxu0 %v1156_v27  ;;  %3271 = vmatmul.mubr.bf16.gmra.mrb[80].mxu1 %v1156_v27  ;;  %v1076_v8 = vmax.f32 %v629_v47, 0.0  ;;  %v742_v27 = vadd.f32 %v741_v24, %v5769_v50  ;;  %v743_v38 = vpop.f32.mrb[21].mxu1  ;;  %v5155_v55 = vld [vmem:[#allocation8 + $0x368] ss:$16 sps:$4 sm:$0xff]  }
 0x17f   :  { %v635_v2 = vadd.f32 %v634_v42, %v5758_v37  ;;  %2876 = vmatpush1.bf16.msra.mxu0 %v5134_v40  ;;  %3328 = vmatpush1.bf16.msra.mxu1 %v5137_v43  ;;  %v1077_v13 = vmax.f32 %v631_v53, 0.0  ;;  %v744_v43 = vadd.f32 %v743_v38, %v5774_v23  ;;  %v745_v46 = vpop.f32.mrb[22].mxu1  ;;  %v5166_v11 = vld [vmem:[#allocation8 + $0x3a4] ss:$16 sps:$4 sm:$0xff]  }
 0x180   :  { %v1084_v9 = vmax.f32 %v633_v58, 0.0  ;;  %2877 = vmatprep.subr.bf16.mxu0 %v5142_v4  ;;  %3329 = vmatprep.subr.bf16.mxu1 %v5145_v49  ;;  %v5152_v4 = vld [vmem:[#allocation8 + $0x360] ss:$16 sps:$4 sm:$0xff]   ;;  %v1078_v49 = vmax.f32 %v742_v27, 0.0  ;;  %v746_v51 = vadd.f32 %v745_v46, %v5769_v50  ;;  %v747_v52 = vpop.f32.mrb[23].mxu1 }
 0x181   :  { %v1085_v14 = vmax.f32 %v635_v2, 0.0  ;;  %v1079_v57 = vmax.f32 %v744_v43, 0.0  ;;  %v748_v58 = vadd.f32 %v747_v52, %v5774_v23 }
 0x182   :  { %v1164_v16 = vpack.c.bf16 %v1084_v9, %v1076_v8  ;;  %v1086_v63 = vmax.f32 %v746_v51, 0.0 }
 0x183   :  { %v1165_v18 = vpack.c.bf16 %v1085_v14, %v1077_v13  ;;  %2878 = vmatpush1.bf16.msra.mxu0 %v5140_v60  ;;  %v638_v19 = vpop.f32.mrb[24].mxu0  ;;  %3330 = vmatpush1.bf16.msra.mxu1 %v5143_v3  ;;  %v1087_v3 = vmax.f32 %v748_v58, 0.0 }
 0x184   :  { %v639_v25 = vadd.f32 %v638_v19, %v5753_v30  ;;  %v640_v28 = vpop.f32.mrb[25].mxu0  ;;  %2879 = vmatprep.subr.bf16.mxu0 %v5148_v5  ;;  %3331 = vmatprep.subr.bf16.mxu1 %v5151_v10  ;;  %v5844_v6 = vpack.c.bf16 %v1086_v63, %v1078_v49  ;;  %v5161_v10 = vld [vmem:[#allocation8 + $0x388] ss:$16 sps:$4 sm:$0xff]  }
 0x185   :  { %v641_v39 = vadd.f32 %v640_v28, %v5758_v37  ;;  %v642_v40 = vpop.f32.mrb[26].mxu0  ;;  %2828 = vmatprep.mubr.bf16.mxu0 %v1165_v18  ;;  %3280 = vmatprep.mubr.bf16.mxu1 %v1165_v18  ;;  %v5846_v13 = vpack.c.bf16 %v1087_v3, %v1079_v57  ;;  %v751_v14 = vpop.f32.mrb[24].mxu1  ;;  %v5169_v18 = vld [vmem:[#allocation8 + $0x3ac] ss:$16 sps:$4 sm:$0xff]  }
 0x186   :  { %v643_v47 = vadd.f32 %v642_v40, %v5753_v30  ;;  %v644_v48 = vpop.f32.mrb[27].mxu0  ;;  %2829 = vmatmul.mubr.bf16.gmra.mrb[84].mxu0 %v1164_v16  ;;  %3281 = vmatmul.mubr.bf16.gmra.mrb[84].mxu1 %v1164_v16  ;;  %v1092_v42 = vmax.f32 %v639_v25, 0.0  ;;  %v752_v19 = vadd.f32 %v751_v14, %v5769_v50 }
 0x187   :  { %v645_v53 = vadd.f32 %v644_v48, %v5758_v37  ;;  %2880 = vmatpush1.bf16.msra.mxu0 %v5146_v20  ;;  %3332 = vmatpush1.bf16.msra.mxu1 %v5149_v21  ;;  %v1093_v1 = vmax.f32 %v641_v39, 0.0  ;;  %v753_v20 = vpop.f32.mrb[25].mxu1  ;;  %v202_v21 = vsub.s32 4, %v5744_v33  ;;  %v5164_v39 = vld [vmem:[#allocation8 + $0x3a0] ss:$16 sps:$4 sm:$0xff]  }
 0x188   :  { %v1100_v60 = vmax.f32 %v643_v47, 0.0  ;;  %2881 = vmatprep.subr.bf16.mxu0 %v5154_v29  ;;  %3333 = vmatprep.subr.bf16.mxu1 %v5157_v31  ;;  %v754_v28 = vadd.f32 %v753_v20, %v5774_v23  ;;  %v755_v29 = vpop.f32.mrb[26].mxu1  ;;  %v206_v31 = vsub.s32 5, %v5744_v33  ;;  %v1094_v40 = vmax.f32 %v752_v19, 0.0  ;;  %v5167_v48 = vld [vmem:[#allocation8 + $0x3a8] ss:$16 sps:$4 sm:$0xff]  }
 0x189   :  { %v1101_v2 = vmax.f32 %v645_v53, 0.0  ;;  %v756_v43 = vadd.f32 %v755_v29, %v5769_v50  ;;  %v757_v46 = vpop.f32.mrb[27].mxu1 }
 0x18a   :  { %v1172_v5 = vpack.c.bf16 %v1100_v60, %v1092_v42  ;;  %v1095_v49 = vmax.f32 %v754_v28, 0.0  ;;  %v758_v51 = vadd.f32 %v757_v46, %v5774_v23 }
 0x18b   :  { %v1173_v8 = vpack.c.bf16 %v1101_v2, %v1093_v1  ;;  %2882 = vmatpush1.bf16.msra.mxu0 %v5152_v4  ;;  %v648_v9 = vpop.f32.mrb[28].mxu0  ;;  %3334 = vmatpush1.bf16.msra.mxu1 %v5155_v55  ;;  %v5172_v4 = vld [vmem:[#allocation8 + $0x3c4] ss:$16 sps:$4 sm:$0xff]   ;;  %v1102_v55 = vmax.f32 %v756_v43, 0.0  ;;  %v5170_v1 = vld [vmem:[#allocation8 + $0x3c0] ss:$16 sps:$4 sm:$0xff]  }
 0x18c   :  { %v649_v15 = vadd.f32 %v648_v9, %v5753_v30  ;;  %v650_v16 = vpop.f32.mrb[29].mxu0  ;;  %2883 = vmatprep.subr.bf16.mxu0 %v5160_v56  ;;  %3335 = vmatprep.subr.bf16.mxu1 %v5163_v62  ;;  %v5859_v56 = vrot.slane %v5747_v35, %v202_v21  ;;  %v1103_v42 = vmax.f32 %v758_v51, 0.0  ;;  %v5173_v2 = vld [vmem:[#allocation8 + $0x3c8] ss:$16 sps:$4 sm:$0xff]  }
 0x18d   :  { %v651_v24 = vadd.f32 %v650_v16, %v5758_v37  ;;  %v652_v25 = vpop.f32.mrb[30].mxu0  ;;  %2838 = vmatprep.mubr.bf16.mxu0 %v1173_v8  ;;  %3290 = vmatprep.mubr.bf16.mxu1 %v1173_v8  ;;  %v5864_v62 = vpack.c.bf16 %v1102_v55, %v1094_v40  ;;  %v5178_v8 = vld [vmem:[#allocation8 + $0x3e4] ss:$16 sps:$4 sm:$0xff]   ;;  %v5181_v16 = vld [vmem:[#allocation8 + $0x3ec] ss:$16 sps:$4 sm:$0xff]  }
 0x18e   :  { %v653_v27 = vadd.f32 %v652_v25, %v5753_v30  ;;  %v654_v38 = vpop.f32.mrb[31].mxu0  ;;  %2839 = vmatmul.mubr.bf16.gmra.mrb[88].mxu0 %v1172_v5  ;;  %3291 = vmatmul.mubr.bf16.gmra.mrb[88].mxu1 %v1172_v5  ;;  %v1108_v52 = vmax.f32 %v649_v15, 0.0  ;;  %v5175_v30 = vld [vmem:[#allocation8 + $0x3cc] ss:$16 sps:$4 sm:$0xff]   ;;  %v5866_v3 = vpack.c.bf16 %v1103_v42, %v1095_v49  ;;  %v761_v5 = vpop.f32.mrb[28].mxu1  ;;  %v210_v15 = vsub.s32 6, %v5744_v33 }
 0x18f   :  { %v655_v47 = vadd.f32 %v654_v38, %v5758_v37  ;;  %2884 = vmatpush1.bf16.msra.mxu0 %v5158_v61  ;;  %3336 = vmatpush1.bf16.msra.mxu1 %v5161_v10  ;;  %v1109_v57 = vmax.f32 %v651_v24, 0.0  ;;  %v5862_v37 = vrot.slane %v5747_v35, %v206_v31  ;;  %v762_v9 = vadd.f32 %v761_v5, %v5769_v50  ;;  %v763_v10 = vpop.f32.mrb[29].mxu1  ;;  %v5179_v40 = vld [vmem:[#allocation8 + $0x3e8] ss:$16 sps:$4 sm:$0xff]  }
 0x190   :  { %v1116_v53 = vmax.f32 %v653_v27, 0.0  ;;  %2885 = vmatprep.subr.bf16.mxu0 %v5166_v11  ;;  %3337 = vmatprep.subr.bf16.mxu1 %v5169_v18  ;;  %v764_v18 = vadd.f32 %v763_v10, %v5774_v23  ;;  %v765_v19 = vpop.f32.mrb[30].mxu1  ;;  %v214_v24 = vsub.s32 7, %v5744_v33  ;;  %v5185_v42 = vld [vmem:[#allocation8 + $0x408] ss:$16 sps:$4 sm:$0xff]  }
 0x191   :  { %v1117_v58 = vmax.f32 %v655_v47, 0.0  ;;  %v1110_v25 = vmax.f32 %v762_v9, 0.0  ;;  %v766_v28 = vadd.f32 %v765_v19, %v5769_v50  ;;  %v767_v29 = vpop.f32.mrb[31].mxu1  ;;  %v5187_v50 = vld [vmem:[#allocation8 + $0x40c] ss:$16 sps:$4 sm:$0xff]  }
 0x192   :  { %v1180_v60 = vpack.c.bf16 %v1116_v53, %v1108_v52  ;;  %v1111_v43 = vmax.f32 %v764_v18, 0.0  ;;  %v768_v46 = vadd.f32 %v767_v29, %v5774_v23  ;;  %v5880_v52 = vrot.slane %v5747_v35, %v210_v15  ;;  %v5193_v9 = vld [vmem:[#allocation8 + $0x42c] ss:$16 sps:$4 sm:$0xff]  }
 0x193   :  { %v1181_v63 = vpack.c.bf16 %v1117_v58, %v1109_v57  ;;  %2886 = vmatpush1.bf16.msra.mxu0 %v5164_v39  ;;  %3338 = vmatpush1.bf16.msra.mxu1 %v5167_v48  ;;  %v804_v61 = vpop.f32.mrb[32].mxu0  ;;  %v5176_v39 = vld [vmem:[#allocation8 + $0x3e0] ss:$16 sps:$4 sm:$0xff]   ;;  %v1118_v49 = vmax.f32 %v766_v28, 0.0  ;;  %v5884_v23 = vrot.slane %v5747_v35, %v214_v24  ;;  %v5191_v28 = vld [vmem:[#allocation8 + $0x428] ss:$16 sps:$4 sm:$0xff]  }
 0x194   :  { %2887 = vmatprep.subr.bf16.mxu0 %v5172_v4  ;;  %3339 = vmatprep.subr.bf16.mxu1 %v5175_v30  ;;  %v805_v11 = vadd.f32 %v804_v61, %v5859_v56  ;;  %v806_v14 = vpop.f32.mrb[33].mxu0  ;;  %v5184_v4 = vld [vmem:[#allocation8 + $0x404] ss:$16 sps:$4 sm:$0xff]   ;;  %v1119_v53 = vmax.f32 %v768_v46, 0.0  ;;  %v5182_v58 = vld [vmem:[#allocation8 + $0x400] ss:$16 sps:$4 sm:$0xff]  }
 0x195   :  { %2848 = vmatprep.mubr.bf16.mxu0 %v1181_v63  ;;  %3300 = vmatprep.mubr.bf16.mxu1 %v1181_v63  ;;  %v807_v20 = vadd.f32 %v806_v14, %v5862_v37  ;;  %v808_v21 = vpop.f32.mrb[34].mxu0  ;;  %v5886_v55 = vpack.c.bf16 %v1118_v49, %v1110_v25  ;;  %v5188_v25 = vld [vmem:[#allocation8 + $0x420] ss:$16 sps:$4 sm:$0xff]   ;;  %v5197_v49 = vld [vmem:[#allocation8 + $0x448] ss:$16 sps:$4 sm:$0xff]  }
 0x196   :  { %2849 = vmatmul.mubr.bf16.gmra.mrb[92].mxu0 %v1180_v60  ;;  %3301 = vmatmul.mubr.bf16.gmra.mrb[92].mxu1 %v1180_v60  ;;  %v1000_v31 = vmax.f32 %v805_v11, 0.0  ;;  %v809_v27 = vadd.f32 %v808_v21, %v5859_v56  ;;  %v810_v38 = vpop.f32.mrb[35].mxu0  ;;  %v5890_v60 = vpack.c.bf16 %v1119_v53, %v1111_v43 }
 0x197   :  { %2888 = vmatpush1.bf16.msra.mxu0 %v5170_v1  ;;  %3340 = vmatpush1.bf16.msra.mxu1 %v5173_v2  ;;  %v1001_v47 = vmax.f32 %v807_v20, 0.0  ;;  %v811_v48 = vadd.f32 %v810_v38, %v5862_v37  ;;  %v917_v2 = vpop.f32.mrb[32].mxu1 }
 0x198   :  { %2889 = vmatprep.subr.bf16.mxu0 %v5178_v8  ;;  %2891 = vmatprep.mubr.bf16.mxu0 %v5786_v32  ;;  %v1008_v51 = vmax.f32 %v809_v27, 0.0  ;;  %v918_v61 = vadd.f32 %v917_v2, %v5880_v52  ;;  %v919_v8 = vpop.f32.mrb[33].mxu1 }
 0x199   :  { %3341 = vmatprep.subr.bf16.mxu1 %v5181_v16  ;;  %3343 = vmatprep.mubr.bf16.mxu1 %v5786_v32  ;;  %v1009_v30 = vmax.f32 %v811_v48, 0.0  ;;  %v5190_v32 = vld [vmem:[#allocation8 + $0x424] ss:$16 sps:$4 sm:$0xff]   ;;  %v920_v14 = vadd.f32 %v919_v8, %v5884_v23  ;;  %v921_v15 = vpop.f32.mrb[34].mxu1 }
 0x19a   :  { %v5888_v57 = vpack.c.bf16 %v1008_v51, %v1000_v31  ;;  %v1002_v20 = vmax.f32 %v918_v61, 0.0  ;;  %v922_v21 = vadd.f32 %v921_v15, %v5880_v52  ;;  %v923_v24 = vpop.f32.mrb[35].mxu1 }
 0x19b   :  { %2890 = vmatpush1.bf16.msra.mxu0 %v5176_v39  ;;  %3342 = vmatpush1.bf16.msra.mxu1 %v5179_v40  ;;  %v5892_v63 = vpack.c.bf16 %v1009_v30, %v1001_v47  ;;  %v814_v1 = vpop.f32.mrb[36].mxu0  ;;  %v1003_v27 = vmax.f32 %v920_v14, 0.0  ;;  %v924_v38 = vadd.f32 %v923_v24, %v5884_v23  ;;  %v5199_v39 = vld [vmem:[#allocation8 + $0x44c] ss:$16 sps:$4 sm:$0xff]  }
 0x19c   :  { %2972 = vmatprep.subr.bf16.mxu0 %v5184_v4  ;;  %3424 = vmatprep.subr.bf16.mxu1 %v5187_v50  ;;  %v815_v35 = vadd.f32 %v814_v1, %v5859_v56  ;;  %v816_v5 = vpop.f32.mrb[37].mxu0  ;;  %v1010_v43 = vmax.f32 %v922_v21, 0.0  ;;  %v5194_v50 = vld [vmem:[#allocation8 + $0x440] ss:$16 sps:$4 sm:$0xff]  }
 0x19d   :  { %v817_v10 = vadd.f32 %v816_v5, %v5862_v37  ;;  %v818_v11 = vpop.f32.mrb[38].mxu0  ;;  %v1011_v47 = vmax.f32 %v924_v38, 0.0 }
 0x19e   :  { %2892 = vmatmul.mubr.bf16.vlgmr.msra.gmra.mrb[64].mxu0 %v5784_v26  ;;  %3344 = vmatmul.mubr.bf16.vlgmr.msra.gmra.mrb[64].mxu1 %v5784_v26  ;;  %v1016_v16 = vmax.f32 %v815_v35, 0.0  ;;  %v819_v18 = vadd.f32 %v818_v11, %v5859_v56  ;;  %v820_v19 = vpop.f32.mrb[39].mxu0  ;;  %v5196_v26 = vld [vmem:[#allocation8 + $0x444] ss:$16 sps:$4 sm:$0xff]   ;;  %v5908_v4 = vpack.c.bf16 %v1010_v43, %v1002_v20  ;;  %v5205_v35 = vld [vmem:[#allocation8 + $0x46c] ss:$16 sps:$4 sm:$0xff]  }
 0x19f   :  { %2973 = vmatpush1.bf16.msra.mxu0 %v5182_v58  ;;  %3425 = vmatpush1.bf16.msra.mxu1 %v5185_v42  ;;  %v1017_v29 = vmax.f32 %v817_v10, 0.0  ;;  %v821_v31 = vadd.f32 %v820_v19, %v5862_v37  ;;  %v5912_v30 = vpack.c.bf16 %v1011_v47, %v1003_v27  ;;  %v927_v58 = vpop.f32.mrb[36].mxu1  ;;  %v5200_v19 = vld [vmem:[#allocation8 + $0x460] ss:$16 sps:$4 sm:$0xff]   ;;  %v5203_v20 = vld [vmem:[#allocation8 + $0x468] ss:$16 sps:$4 sm:$0xff]  }
 0x1a0   :  { %2974 = vmatprep.subr.bf16.mxu0 %v5190_v32  ;;  %2901 = vmatprep.mubr.bf16.mxu0 %v5798_v12  ;;  %v1024_v40 = vmax.f32 %v819_v18, 0.0  ;;  %v928_v2 = vadd.f32 %v927_v58, %v5880_v52  ;;  %v929_v32 = vpop.f32.mrb[37].mxu1  ;;  %v5206_v43 = vld [vmem:[#allocation8 + $0x480] ss:$16 sps:$4 sm:$0xff]  }
 0x1a1   :  { %3353 = vmatprep.mubr.bf16.mxu1 %v5798_v12  ;;  %3426 = vmatprep.subr.bf16.mxu1 %v5193_v9  ;;  %v1025_v46 = vmax.f32 %v821_v31, 0.0  ;;  %v5202_v12 = vld [vmem:[#allocation8 + $0x464] ss:$16 sps:$4 sm:$0xff]   ;;  %v930_v8 = vadd.f32 %v929_v32, %v5884_v23  ;;  %v931_v9 = vpop.f32.mrb[38].mxu1 }
 0x1a2   :  { %v5906_v48 = vpack.c.bf16 %v1024_v40, %v1016_v16  ;;  %v1018_v15 = vmax.f32 %v928_v2, 0.0  ;;  %v932_v16 = vadd.f32 %v931_v9, %v5880_v52  ;;  %v933_v18 = vpop.f32.mrb[39].mxu1  ;;  %v5217_v2 = vld [vmem:[#allocation8 + $0x4ac] ss:$16 sps:$4 sm:$0xff]  }
 0x1a3   :  { %2975 = vmatpush1.bf16.msra.mxu0 %v5188_v25  ;;  %3427 = vmatpush1.bf16.msra.mxu1 %v5191_v28  ;;  %v5910_v51 = vpack.c.bf16 %v1025_v46, %v1017_v29  ;;  %v824_v53 = vpop.f32.mrb[40].mxu0  ;;  %v1019_v25 = vmax.f32 %v930_v8, 0.0  ;;  %v934_v28 = vadd.f32 %v933_v18, %v5884_v23  ;;  %v5211_v29 = vld [vmem:[#allocation8 + $0x48c] ss:$16 sps:$4 sm:$0xff]   ;;  %v5209_v46 = vld [vmem:[#allocation8 + $0x488] ss:$16 sps:$4 sm:$0xff]  }
 0x1a4   :  { %2976 = vmatprep.subr.bf16.mxu0 %v5196_v26  ;;  %3428 = vmatprep.subr.bf16.mxu1 %v5199_v39  ;;  %v825_v42 = vadd.f32 %v824_v53, %v5859_v56  ;;  %v826_v1 = vpop.f32.mrb[41].mxu0  ;;  %v1026_v27 = vmax.f32 %v932_v16, 0.0  ;;  %v5212_v16 = vld [vmem:[#allocation8 + $0x4a0] ss:$16 sps:$4 sm:$0xff]   ;;  %v5215_v18 = vld [vmem:[#allocation8 + $0x4a8] ss:$16 sps:$4 sm:$0xff]  }
 0x1a5   :  { %v827_v5 = vadd.f32 %v826_v1, %v5862_v37  ;;  %v828_v61 = vpop.f32.mrb[42].mxu0  ;;  %v1027_v26 = vmax.f32 %v934_v28, 0.0  ;;  %v937_v53 = vpop.f32.mrb[40].mxu1 }
 0x1a6   :  { %2902 = vmatmul.mubr.bf16.gmra.mrb[68].mxu0 %v5796_v7  ;;  %3354 = vmatmul.mubr.bf16.gmra.mrb[68].mxu1 %v5796_v7  ;;  %v1032_v10 = vmax.f32 %v825_v42, 0.0  ;;  %v829_v11 = vadd.f32 %v828_v61, %v5859_v56  ;;  %v830_v14 = vpop.f32.mrb[43].mxu0  ;;  %v5208_v7 = vld [vmem:[#allocation8 + $0x484] ss:$16 sps:$4 sm:$0xff]   ;;  %v5928_v40 = vpack.c.bf16 %v1026_v27, %v1018_v15  ;;  %v938_v42 = vadd.f32 %v937_v53, %v5880_v52  ;;  %v939_v1 = vpop.f32.mrb[41].mxu1 }
 0x1a7   :  { %2977 = vmatpush1.bf16.msra.mxu0 %v5194_v50  ;;  %3429 = vmatpush1.bf16.msra.mxu1 %v5197_v49  ;;  %v1033_v21 = vmax.f32 %v827_v5, 0.0  ;;  %v831_v24 = vadd.f32 %v830_v14, %v5862_v37  ;;  %v5932_v49 = vpack.c.bf16 %v1027_v26, %v1019_v25  ;;  %v940_v5 = vadd.f32 %v939_v1, %v5884_v23  ;;  %v941_v61 = vpop.f32.mrb[42].mxu1  ;;  %v5223_v25 = vld [vmem:[#allocation8 + $0x4cc] ss:$16 sps:$4 sm:$0xff]   ;;  %v5218_v26 = vld [vmem:[#allocation8 + $0x4c0] ss:$16 sps:$4 sm:$0xff]  }
 0x1a8   :  { %2978 = vmatprep.subr.bf16.mxu0 %v5202_v12  ;;  %2911 = vmatprep.mubr.bf16.mxu0 %v5810_v59  ;;  %v1040_v31 = vmax.f32 %v829_v11, 0.0  ;;  %v1034_v11 = vmax.f32 %v938_v42, 0.0  ;;  %v942_v14 = vadd.f32 %v941_v61, %v5880_v52  ;;  %v943_v15 = vpop.f32.mrb[43].mxu1 }
 0x1a9   :  { %3363 = vmatprep.mubr.bf16.mxu1 %v5810_v59  ;;  %3430 = vmatprep.subr.bf16.mxu1 %v5205_v35  ;;  %v1041_v38 = vmax.f32 %v831_v24, 0.0  ;;  %v5214_v59 = vld [vmem:[#allocation8 + $0x4a4] ss:$16 sps:$4 sm:$0xff]   ;;  %v944_v24 = vadd.f32 %v943_v15, %v5884_v23 }
 0x1aa   :  { %v5926_v39 = vpack.c.bf16 %v1040_v31, %v1032_v10 }
 0x1ab   :  { %2979 = vmatpush1.bf16.msra.mxu0 %v5200_v19  ;;  %3431 = vmatpush1.bf16.msra.mxu1 %v5203_v20  ;;  %v5930_v47 = vpack.c.bf16 %v1041_v38, %v1033_v21  ;;  %v834_v50 = vpop.f32.mrb[44].mxu0  ;;  %v1035_v21 = vmax.f32 %v940_v5, 0.0  ;;  %v1043_v31 = vmax.f32 %v944_v24, 0.0 }
 0x1ac   :  { %2980 = vmatprep.subr.bf16.mxu0 %v5208_v7  ;;  %3432 = vmatprep.subr.bf16.mxu1 %v5211_v29  ;;  %v835_v58 = vadd.f32 %v834_v50, %v5859_v56  ;;  %v836_v12 = vpop.f32.mrb[45].mxu0  ;;  %v1042_v7 = vmax.f32 %v942_v14, 0.0 }
 0x1ad   :  { %v837_v32 = vadd.f32 %v836_v12, %v5862_v37  ;;  %v838_v35 = vpop.f32.mrb[46].mxu0  ;;  %v5952_v53 = vpack.c.bf16 %v1043_v31, %v1035_v21 }
 0x1ae   :  { %2912 = vmatmul.mubr.bf16.gmra.mrb[72].mxu0 %v5808_v54  ;;  %3364 = vmatmul.mubr.bf16.gmra.mrb[72].mxu1 %v5808_v54  ;;  %v1048_v8 = vmax.f32 %v835_v58, 0.0  ;;  %v839_v9 = vadd.f32 %v838_v35, %v5859_v56  ;;  %v840_v10 = vpop.f32.mrb[47].mxu0  ;;  %v5220_v54 = vld [vmem:[#allocation8 + $0x4c4] ss:$16 sps:$4 sm:$0xff]   ;;  %v5948_v38 = vpack.c.bf16 %v1042_v7, %v1034_v11 }
 0x1af   :  { %2981 = vmatpush1.bf16.msra.mxu0 %v5206_v43  ;;  %3433 = vmatpush1.bf16.msra.mxu1 %v5209_v46  ;;  %v1049_v19 = vmax.f32 %v837_v32, 0.0  ;;  %v841_v20 = vadd.f32 %v840_v10, %v5862_v37  ;;  %v5221_v43 = vld [vmem:[#allocation8 + $0x4c8] ss:$16 sps:$4 sm:$0xff]  }
 0x1b0   :  { %2982 = vmatprep.subr.bf16.mxu0 %v5214_v59  ;;  %2921 = vmatprep.mubr.bf16.mxu0 %v5822_v44  ;;  %v1056_v28 = vmax.f32 %v839_v9, 0.0  ;;  %v947_v59 = vpop.f32.mrb[44].mxu1 }
 0x1b1   :  { %3373 = vmatprep.mubr.bf16.mxu1 %v5822_v44  ;;  %3434 = vmatprep.subr.bf16.mxu1 %v5217_v2  ;;  %v1057_v29 = vmax.f32 %v841_v20, 0.0  ;;  %v5226_v44 = vld [vmem:[#allocation8 + $0x4e4] ss:$16 sps:$4 sm:$0xff]   ;;  %v948_v42 = vadd.f32 %v947_v59, %v5880_v52  ;;  %v949_v1 = vpop.f32.mrb[45].mxu1  ;;  %v5229_v2 = vld [vmem:[#allocation8 + $0x4ec] ss:$16 sps:$4 sm:$0xff]  }
 0x1b2   :  { %v5946_v27 = vpack.c.bf16 %v1056_v28, %v1048_v8  ;;  %v950_v5 = vadd.f32 %v949_v1, %v5884_v23  ;;  %v951_v61 = vpop.f32.mrb[46].mxu1 }
 0x1b3   :  { %2983 = vmatpush1.bf16.msra.mxu0 %v5212_v16  ;;  %3435 = vmatpush1.bf16.msra.mxu1 %v5215_v18  ;;  %v5950_v46 = vpack.c.bf16 %v1057_v29, %v1049_v19  ;;  %v844_v50 = vpop.f32.mrb[48].mxu0  ;;  %v1050_v11 = vmax.f32 %v948_v42, 0.0  ;;  %v952_v14 = vadd.f32 %v951_v61, %v5880_v52  ;;  %v953_v15 = vpop.f32.mrb[47].mxu1  ;;  %v5224_v16 = vld [vmem:[#allocation8 + $0x4e0] ss:$16 sps:$4 sm:$0xff]  }
 0x1b4   :  { %2984 = vmatprep.subr.bf16.mxu0 %v5220_v54  ;;  %3436 = vmatprep.subr.bf16.mxu1 %v5223_v25  ;;  %v845_v58 = vadd.f32 %v844_v50, %v5859_v56  ;;  %v846_v12 = vpop.f32.mrb[49].mxu0  ;;  %v5227_v18 = vld [vmem:[#allocation8 + $0x4e8] ss:$16 sps:$4 sm:$0xff]   ;;  %v1051_v21 = vmax.f32 %v950_v5, 0.0  ;;  %v954_v24 = vadd.f32 %v953_v15, %v5884_v23  ;;  %v5235_v54 = vld [vmem:[#allocation8 + $0x50c] ss:$16 sps:$4 sm:$0xff]  }
 0x1b5   :  { %v847_v32 = vadd.f32 %v846_v12, %v5862_v37  ;;  %v848_v35 = vpop.f32.mrb[50].mxu0  ;;  %v1058_v28 = vmax.f32 %v952_v14, 0.0  ;;  %v5233_v50 = vld [vmem:[#allocation8 + $0x508] ss:$16 sps:$4 sm:$0xff]   ;;  %v957_v12 = vpop.f32.mrb[48].mxu1 }
 0x1b6   :  { %2922 = vmatmul.mubr.bf16.gmra.mrb[76].mxu0 %v5820_v0  ;;  %3374 = vmatmul.mubr.bf16.gmra.mrb[76].mxu1 %v5820_v0  ;;  %v1064_v8 = vmax.f32 %v845_v58, 0.0  ;;  %v849_v9 = vadd.f32 %v848_v35, %v5859_v56  ;;  %v850_v10 = vpop.f32.mrb[51].mxu0  ;;  %v5232_v0 = vld [vmem:[#allocation8 + $0x504] ss:$16 sps:$4 sm:$0xff]   ;;  %v1059_v29 = vmax.f32 %v954_v24, 0.0 }
 0x1b7   :  { %2985 = vmatpush1.bf16.msra.mxu0 %v5218_v26  ;;  %3437 = vmatpush1.bf16.msra.mxu1 %v5221_v43  ;;  %v1065_v19 = vmax.f32 %v847_v32, 0.0  ;;  %v851_v20 = vadd.f32 %v850_v10, %v5862_v37  ;;  %v5968_v26 = vpack.c.bf16 %v1058_v28, %v1050_v11  ;;  %v5230_v43 = vld [vmem:[#allocation8 + $0x500] ss:$16 sps:$4 sm:$0xff]   ;;  %v959_v32 = vpop.f32.mrb[49].mxu1  ;;  %v5241_v35 = vld [vmem:[#allocation8 + $0x52c] ss:$16 sps:$4 sm:$0xff]  }
 0x1b8   :  { %2986 = vmatprep.subr.bf16.mxu0 %v5226_v44  ;;  %2931 = vmatprep.mubr.bf16.mxu0 %v5834_v22  ;;  %v1072_v25 = vmax.f32 %v849_v9, 0.0  ;;  %v5972_v58 = vpack.c.bf16 %v1059_v29, %v1051_v21  ;;  %v961_v9 = vpop.f32.mrb[50].mxu1 }
 0x1b9   :  { %3383 = vmatprep.mubr.bf16.mxu1 %v5834_v22  ;;  %3438 = vmatprep.subr.bf16.mxu1 %v5229_v2  ;;  %v1073_v7 = vmax.f32 %v851_v20, 0.0  ;;  %v5238_v22 = vld [vmem:[#allocation8 + $0x524] ss:$16 sps:$4 sm:$0xff]   ;;  %v958_v2 = vadd.f32 %v957_v12, %v5880_v52  ;;  %v5239_v20 = vld [vmem:[#allocation8 + $0x528] ss:$16 sps:$4 sm:$0xff]  }
 0x1ba   :  { %v5966_v31 = vpack.c.bf16 %v1072_v25, %v1064_v8  ;;  %v960_v8 = vadd.f32 %v959_v32, %v5884_v23  ;;  %v5247_v25 = vld [vmem:[#allocation8 + $0x54c] ss:$16 sps:$4 sm:$0xff]   ;;  %v5242_v12 = vld [vmem:[#allocation8 + $0x540] ss:$16 sps:$4 sm:$0xff]  }
 0x1bb   :  { %2987 = vmatpush1.bf16.msra.mxu0 %v5224_v16  ;;  %3439 = vmatpush1.bf16.msra.mxu1 %v5227_v18  ;;  %v5970_v59 = vpack.c.bf16 %v1073_v7, %v1065_v19  ;;  %v854_v44 = vpop.f32.mrb[52].mxu0  ;;  %v1066_v15 = vmax.f32 %v958_v2, 0.0  ;;  %v962_v16 = vadd.f32 %v961_v9, %v5880_v52  ;;  %v963_v18 = vpop.f32.mrb[51].mxu1  ;;  %v5236_v19 = vld [vmem:[#allocation8 + $0x520] ss:$16 sps:$4 sm:$0xff]  }
 0x1bc   :  { %2988 = vmatprep.subr.bf16.mxu0 %v5232_v0  ;;  %3440 = vmatprep.subr.bf16.mxu1 %v5235_v54  ;;  %v855_v42 = vadd.f32 %v854_v44, %v5859_v56  ;;  %v856_v1 = vpop.f32.mrb[53].mxu0  ;;  %v1067_v0 = vmax.f32 %v960_v8, 0.0  ;;  %v964_v54 = vadd.f32 %v963_v18, %v5884_v23  ;;  %v5253_v9 = vld [vmem:[#allocation8 + $0x56c] ss:$16 sps:$4 sm:$0xff]  }
 0x1bd   :  { %v857_v5 = vadd.f32 %v856_v1, %v5862_v37  ;;  %v858_v61 = vpop.f32.mrb[54].mxu0  ;;  %v1074_v7 = vmax.f32 %v962_v16, 0.0  ;;  %v967_v32 = vpop.f32.mrb[52].mxu1 }
 0x1be   :  { %2932 = vmatmul.mubr.bf16.gmra.mrb[80].mxu0 %v5832_v17  ;;  %3384 = vmatmul.mubr.bf16.gmra.mrb[80].mxu1 %v5832_v17  ;;  %v1080_v10 = vmax.f32 %v855_v42, 0.0  ;;  %v859_v11 = vadd.f32 %v858_v61, %v5859_v56  ;;  %v860_v14 = vpop.f32.mrb[55].mxu0  ;;  %v5244_v17 = vld [vmem:[#allocation8 + $0x544] ss:$16 sps:$4 sm:$0xff]   ;;  %v5245_v42 = vld [vmem:[#allocation8 + $0x548] ss:$16 sps:$4 sm:$0xff]   ;;  %v968_v61 = vadd.f32 %v967_v32, %v5880_v52 }
 0x1bf   :  { %2989 = vmatpush1.bf16.msra.mxu0 %v5230_v43  ;;  %3441 = vmatpush1.bf16.msra.mxu1 %v5233_v50  ;;  %v1081_v21 = vmax.f32 %v857_v5, 0.0  ;;  %v861_v24 = vadd.f32 %v860_v14, %v5862_v37  ;;  %v1075_v43 = vmax.f32 %v964_v54, 0.0  ;;  %v5988_v44 = vpack.c.bf16 %v1074_v7, %v1066_v15  ;;  %v969_v8 = vpop.f32.mrb[53].mxu1  ;;  %v5251_v54 = vld [vmem:[#allocation8 + $0x568] ss:$16 sps:$4 sm:$0xff]  }
 0x1c0   :  { %2990 = vmatprep.subr.bf16.mxu0 %v5238_v22  ;;  %2941 = vmatprep.mubr.bf16.mxu0 %v5846_v13  ;;  %v1088_v28 = vmax.f32 %v859_v11, 0.0  ;;  %v970_v14 = vadd.f32 %v969_v8, %v5884_v23  ;;  %v971_v15 = vpop.f32.mrb[54].mxu1 }
 0x1c1   :  { %3393 = vmatprep.mubr.bf16.mxu1 %v5846_v13  ;;  %3442 = vmatprep.subr.bf16.mxu1 %v5241_v35  ;;  %v1089_v29 = vmax.f32 %v861_v24, 0.0  ;;  %v5992_v2 = vpack.c.bf16 %v1075_v43, %v1067_v0  ;;  %v5250_v13 = vld [vmem:[#allocation8 + $0x564] ss:$16 sps:$4 sm:$0xff]   ;;  %v973_v24 = vpop.f32.mrb[55].mxu1  ;;  %v5248_v0 = vld [vmem:[#allocation8 + $0x560] ss:$16 sps:$4 sm:$0xff]  }
 0x1c2   :  { %v5986_v50 = vpack.c.bf16 %v1088_v28, %v1080_v10  ;;  %v1083_v28 = vmax.f32 %v970_v14, 0.0  ;;  %v974_v7 = vadd.f32 %v973_v24, %v5884_v23 }
 0x1c3   :  { %2991 = vmatpush1.bf16.msra.mxu0 %v5236_v19  ;;  %3443 = vmatpush1.bf16.msra.mxu1 %v5239_v20  ;;  %v5990_v22 = vpack.c.bf16 %v1089_v29, %v1081_v21  ;;  %v864_v1 = vpop.f32.mrb[56].mxu0  ;;  %v1082_v20 = vmax.f32 %v968_v61, 0.0  ;;  %v972_v21 = vadd.f32 %v971_v15, %v5880_v52  ;;  %v5259_v29 = vld [vmem:[#allocation8 + $0x58c] ss:$16 sps:$4 sm:$0xff]   ;;  %v5257_v61 = vld [vmem:[#allocation8 + $0x588] ss:$16 sps:$4 sm:$0xff]  }
 0x1c4   :  { %2992 = vmatprep.subr.bf16.mxu0 %v5244_v17  ;;  %3444 = vmatprep.subr.bf16.mxu1 %v5247_v25  ;;  %v865_v35 = vadd.f32 %v864_v1, %v5859_v56  ;;  %v866_v5 = vpop.f32.mrb[57].mxu0 }
 0x1c5   :  { %v867_v10 = vadd.f32 %v866_v5, %v5862_v37  ;;  %v868_v11 = vpop.f32.mrb[58].mxu0  ;;  %v1090_v1 = vmax.f32 %v972_v21, 0.0  ;;  %v5254_v5 = vld [vmem:[#allocation8 + $0x580] ss:$16 sps:$4 sm:$0xff]  }
 0x1c6   :  { %2942 = vmatmul.mubr.bf16.gmra.mrb[84].mxu0 %v5844_v6  ;;  %3394 = vmatmul.mubr.bf16.gmra.mrb[84].mxu1 %v5844_v6  ;;  %v1096_v16 = vmax.f32 %v865_v35, 0.0  ;;  %v869_v18 = vadd.f32 %v868_v11, %v5859_v56  ;;  %v870_v19 = vpop.f32.mrb[59].mxu0  ;;  %v5256_v6 = vld [vmem:[#allocation8 + $0x584] ss:$16 sps:$4 sm:$0xff]   ;;  %v977_v11 = vpop.f32.mrb[56].mxu1 }
 0x1c7   :  { %2993 = vmatpush1.bf16.msra.mxu0 %v5242_v12  ;;  %3445 = vmatpush1.bf16.msra.mxu1 %v5245_v42  ;;  %v1097_v17 = vmax.f32 %v867_v10, 0.0  ;;  %v871_v25 = vadd.f32 %v870_v19, %v5862_v37  ;;  %v1091_v42 = vmax.f32 %v974_v7, 0.0  ;;  %v6008_v35 = vpack.c.bf16 %v1090_v1, %v1082_v20 }
 0x1c8   :  { %2994 = vmatprep.subr.bf16.mxu0 %v5250_v13  ;;  %2951 = vmatprep.mubr.bf16.mxu0 %v5866_v3  ;;  %v1104_v43 = vmax.f32 %v869_v18, 0.0  ;;  %v978_v15 = vadd.f32 %v977_v11, %v5880_v52  ;;  %v5265_v18 = vld [vmem:[#allocation8 + $0x5ac] ss:$16 sps:$4 sm:$0xff]  }
 0x1c9   :  { %3403 = vmatprep.mubr.bf16.mxu1 %v5866_v3  ;;  %3446 = vmatprep.subr.bf16.mxu1 %v5253_v9  ;;  %v1105_v12 = vmax.f32 %v871_v25, 0.0  ;;  %v6012_v10 = vpack.c.bf16 %v1091_v42, %v1083_v28  ;;  %v5262_v3 = vld [vmem:[#allocation8 + $0x5a4] ss:$16 sps:$4 sm:$0xff]  }
 0x1ca   :  { %v6006_v32 = vpack.c.bf16 %v1104_v43, %v1096_v16  ;;  %v979_v16 = vpop.f32.mrb[57].mxu1  ;;  %v1098_v25 = vmax.f32 %v978_v15, 0.0  ;;  %v5269_v15 = vld [vmem:[#allocation8 + $0x5c8] ss:$16 sps:$4 sm:$0xff]  }
 0x1cb   :  { %2995 = vmatpush1.bf16.msra.mxu0 %v5248_v0  ;;  %3447 = vmatpush1.bf16.msra.mxu1 %v5251_v54  ;;  %v6010_v13 = vpack.c.bf16 %v1105_v12, %v1097_v17  ;;  %v874_v8 = vpop.f32.mrb[60].mxu0  ;;  %v980_v21 = vadd.f32 %v979_v16, %v5884_v23  ;;  %v981_v24 = vpop.f32.mrb[58].mxu1 }
 0x1cc   :  { %2996 = vmatprep.subr.bf16.mxu0 %v5256_v6  ;;  %3448 = vmatprep.subr.bf16.mxu1 %v5259_v29  ;;  %v875_v9 = vadd.f32 %v874_v8, %v5859_v56  ;;  %v876_v14 = vpop.f32.mrb[61].mxu0  ;;  %v982_v28 = vadd.f32 %v981_v24, %v5880_v52  ;;  %v983_v7 = vpop.f32.mrb[59].mxu1  ;;  %v5260_v6 = vld [vmem:[#allocation8 + $0x5a0] ss:$16 sps:$4 sm:$0xff]   ;;  %v5263_v29 = vld [vmem:[#allocation8 + $0x5a8] ss:$16 sps:$4 sm:$0xff]  }
 0x1cd   :  { %v877_v19 = vadd.f32 %v876_v14, %v5862_v37  ;;  %v878_v20 = vpop.f32.mrb[62].mxu0  ;;  %v1099_v12 = vmax.f32 %v980_v21, 0.0  ;;  %v984_v42 = vadd.f32 %v983_v7, %v5884_v23  ;;  %v5277_v21 = vld [vmem:[#allocation8 + $0x5ec] ss:$16 sps:$4 sm:$0xff]   ;;  %v5275_v7 = vld [vmem:[#allocation8 + $0x5e8] ss:$16 sps:$4 sm:$0xff]  }
 0x1ce   :  { %2952 = vmatmul.mubr.bf16.gmra.mrb[88].mxu0 %v5864_v62  ;;  %3404 = vmatmul.mubr.bf16.gmra.mrb[88].mxu1 %v5864_v62  ;;  %v1112_v0 = vmax.f32 %v875_v9, 0.0  ;;  %v879_v54 = vadd.f32 %v878_v20, %v5859_v56  ;;  %v880_v17 = vpop.f32.mrb[63].mxu0  ;;  %v5268_v62 = vld [vmem:[#allocation8 + $0x5c4] ss:$16 sps:$4 sm:$0xff]   ;;  %v5271_v56 = vld [vmem:[#allocation8 + $0x5cc] ss:$16 sps:$4 sm:$0xff]  }
 0x1cf   :  { %2997 = vmatpush1.bf16.msra.mxu0 %v5254_v5  ;;  %3449 = vmatpush1.bf16.msra.mxu1 %v5257_v61  ;;  %v1113_v43 = vmax.f32 %v877_v19, 0.0  ;;  %v881_v1 = vadd.f32 %v880_v17, %v5862_v37  ;;  %v1106_v11 = vmax.f32 %v982_v28, 0.0  ;;  %v1107_v61 = vmax.f32 %v984_v42, 0.0  ;;  %v5266_v37 = vld [vmem:[#allocation8 + $0x5c0] ss:$16 sps:$4 sm:$0xff]   ;;  %v987_v19 = vpop.f32.mrb[60].mxu1 }
 0x1d0   :  { %2998 = vmatprep.subr.bf16.mxu0 %v5262_v3  ;;  %2961 = vmatprep.mubr.bf16.mxu0 %v5890_v60  ;;  %v1120_v8 = vmax.f32 %v879_v54, 0.0  ;;  %v5274_v20 = vld [vmem:[#allocation8 + $0x5e4] ss:$16 sps:$4 sm:$0xff]   ;;  %v5272_v28 = vld [vmem:[#allocation8 + $0x5e0] ss:$16 sps:$4 sm:$0xff]  }
 0x1d1   :  { %3413 = vmatprep.mubr.bf16.mxu1 %v5890_v60  ;;  %3450 = vmatprep.subr.bf16.mxu1 %v5265_v18  ;;  %v1121_v5 = vmax.f32 %v881_v1, 0.0  ;;  %v6028_v14 = vpack.c.bf16 %v1106_v11, %v1098_v25  ;;  %v6032_v16 = vpack.c.bf16 %v1107_v61, %v1099_v12  ;;  %v988_v60 = vadd.f32 %v987_v19, %v5880_v52  ;;  %v989_v18 = vpop.f32.mrb[61].mxu1  ;;  %v5283_v1 = vld [vmem:[#allocation8 + $0x60c] ss:$16 sps:$4 sm:$0xff]   ;;  %v5287_v11 = vld [vmem:[#allocation8 + $0x628] ss:$16 sps:$4 sm:$0xff]  }
 0x1d2   :  { %v6026_v9 = vpack.c.bf16 %v1120_v8, %v1112_v0  ;;  %v990_v24 = vadd.f32 %v989_v18, %v5884_v23  ;;  %v991_v0 = vpop.f32.mrb[62].mxu1  ;;  %v5289_v8 = vld [vmem:[#allocation8 + $0x62c] ss:$16 sps:$4 sm:$0xff]   ;;  %v5298_v19 = vld [vmem:[#allocation8 + $0x664] ss:$16 sps:$4 sm:$0xff]  }
 0x1d3   :  { %2999 = vmatpush1.bf16.msra.mxu0 %v5260_v6  ;;  %3451 = vmatpush1.bf16.msra.mxu1 %v5263_v29  ;;  %v6030_v3 = vpack.c.bf16 %v1121_v5, %v1113_v43  ;;  %v1114_v54 = vmax.f32 %v988_v60, 0.0  ;;  %v992_v17 = vadd.f32 %v991_v0, %v5880_v52  ;;  %v993_v25 = vpop.f32.mrb[63].mxu1  ;;  %v5280_v43 = vld [vmem:[#allocation8 + $0x604] ss:$16 sps:$4 sm:$0xff]   ;;  %v5278_v52 = vld [vmem:[#allocation8 + $0x600] ss:$16 sps:$4 sm:$0xff]  }
 0x1d4   :  { %3000 = vmatprep.subr.bf16.mxu0 %v5268_v62  ;;  %3452 = vmatprep.subr.bf16.mxu1 %v5271_v56  ;;  %v1115_v6 = vmax.f32 %v990_v24, 0.0  ;;  %v994_v29 = vadd.f32 %v993_v25, %v5884_v23  ;;  %v5281_v62 = vld [vmem:[#allocation8 + $0x608] ss:$16 sps:$4 sm:$0xff]   ;;  %v5286_v23 = vld [vmem:[#allocation8 + $0x624] ss:$16 sps:$4 sm:$0xff]  }
 0x1d5   :  { %v1122_v12 = vmax.f32 %v992_v17, 0.0  ;;  %v5292_v5 = vld [vmem:[#allocation8 + $0x644] ss:$16 sps:$4 sm:$0xff]   ;;  %v5295_v61 = vld [vmem:[#allocation8 + $0x64c] ss:$16 sps:$4 sm:$0xff]  }
 0x1d6   :  { %2962 = vmatmul.mubr.bf16.gmra.mrb[92].mxu0 %v5886_v55  ;;  %3414 = vmatmul.mubr.bf16.gmra.mrb[92].mxu1 %v5886_v55  ;;  %v1123_v55 = vmax.f32 %v994_v29, 0.0  ;;  %v5299_v60 = vld [vmem:[#allocation8 + $0x668] ss:$16 sps:$4 sm:$0xff]   ;;  %v5307_v18 = vld [vmem:[#allocation8 + $0x68c] ss:$16 sps:$4 sm:$0xff]  }
 0x1d7   :  { %3001 = vmatpush1.bf16.msra.mxu0 %v5266_v37  ;;  %3453 = vmatpush1.bf16.msra.mxu1 %v5269_v15  ;;  %v6042_v42 = vpack.c.bf16 %v1122_v12, %v1114_v54  ;;  %v5290_v37 = vld [vmem:[#allocation8 + $0x640] ss:$16 sps:$4 sm:$0xff]   ;;  %v5293_v15 = vld [vmem:[#allocation8 + $0x648] ss:$16 sps:$4 sm:$0xff]   ;;  %v5310_v0 = vld [vmem:[#allocation8 + $0x6a4] ss:$16 sps:$4 sm:$0xff]  }
 0x1d8   :  { %3002 = vmatprep.subr.bf16.mxu0 %v5274_v20  ;;  %3004 = vmatprep.mubr.bf16.mxu0 %v5892_v63  ;;  %v6044_v56 = vpack.c.bf16 %v1123_v55, %v1115_v6  ;;  %v5296_v20 = vld [vmem:[#allocation8 + $0x660] ss:$16 sps:$4 sm:$0xff]   ;;  %v5305_v24 = vld [vmem:[#allocation8 + $0x688] ss:$16 sps:$4 sm:$0xff]   ;;  %v5319_v25 = vld [vmem:[#allocation8 + $0x6cc] ss:$16 sps:$4 sm:$0xff]  }
 0x1d9   :  { %3454 = vmatprep.subr.bf16.mxu1 %v5277_v21  ;;  %3456 = vmatprep.mubr.bf16.mxu1 %v5892_v63  ;;  %v5284_v63 = vld [vmem:[#allocation8 + $0x620] ss:$16 sps:$4 sm:$0xff]   ;;  %v5311_v17 = vld [vmem:[#allocation8 + $0x6a8] ss:$16 sps:$4 sm:$0xff]   ;;  %v5322_v6 = vld [vmem:[#allocation8 + $0x6e4] ss:$16 sps:$4 sm:$0xff]  }
 0x1da   :  { %v5302_v21 = vld [vmem:[#allocation8 + $0x680] ss:$16 sps:$4 sm:$0xff]   ;;  %v5329_v55 = vld [vmem:[#allocation8 + $0x708] ss:$16 sps:$4 sm:$0xff]  }
 0x1db   :  { %3003 = vmatpush1.bf16.msra.mxu0 %v5272_v28  ;;  %3455 = vmatpush1.bf16.msra.mxu1 %v5275_v7  ;;  %v5308_v54 = vld [vmem:[#allocation8 + $0x6a0] ss:$16 sps:$4 sm:$0xff]   ;;  %v5317_v7 = vld [vmem:[#allocation8 + $0x6c8] ss:$16 sps:$4 sm:$0xff]  }
 0x1dc   :  { %3085 = vmatprep.subr.bf16.mxu0 %v5280_v43  ;;  %3537 = vmatprep.subr.bf16.mxu1 %v5283_v1  ;;  %v5314_v28 = vld [vmem:[#allocation8 + $0x6c0] ss:$16 sps:$4 sm:$0xff]   ;;  %v5323_v43 = vld [vmem:[#allocation8 + $0x6e8] ss:$16 sps:$4 sm:$0xff]   ;;  %v5331_v1 = vld [vmem:[#allocation8 + $0x70c] ss:$16 sps:$4 sm:$0xff]  }
 0x1dd   :  { %v5320_v29 = vld [vmem:[#allocation8 + $0x6e0] ss:$16 sps:$4 sm:$0xff]  }
 0x1de   :  { %3005 = vmatmul.mubr.bf16.vlgmr.msra.gmra.mrb[64].mxu0 %v5888_v57  ;;  %3457 = vmatmul.mubr.bf16.vlgmr.msra.gmra.mrb[64].mxu1 %v5888_v57  ;;  %v5301_v57 = vld [vmem:[#allocation8 + $0x66c] ss:$16 sps:$4 sm:$0xff]   ;;  %v5326_v12 = vld [vmem:[#allocation8 + $0x700] ss:$16 sps:$4 sm:$0xff]  }
 0x1df   :  { %3086 = vmatpush1.bf16.msra.mxu0 %v5278_v52  ;;  %3538 = vmatpush1.bf16.msra.mxu1 %v5281_v62  ;;  %v5334_v52 = vld [vmem:[#allocation8 + $0x724] ss:$16 sps:$4 sm:$0xff]   ;;  %v5332_v62 = vld [vmem:[#allocation8 + $0x720] ss:$16 sps:$4 sm:$0xff]  }
 0x1e0   :  { %3087 = vmatprep.subr.bf16.mxu0 %v5286_v23  ;;  %3014 = vmatprep.mubr.bf16.mxu0 %v5910_v51  ;;  %v5335_v23 = vld [vmem:[#allocation8 + $0x728] ss:$16 sps:$4 sm:$0xff]  }
 0x1e1   :  { %3466 = vmatprep.mubr.bf16.mxu1 %v5910_v51  ;;  %3539 = vmatprep.subr.bf16.mxu1 %v5289_v8  ;;  %v5304_v51 = vld [vmem:[#allocation8 + $0x684] ss:$16 sps:$4 sm:$0xff]   ;;  %v5343_v8 = vld [vmem:[#allocation8 + $0x74c] ss:$16 sps:$4 sm:$0xff]  }
 0x1e3   :  { %3088 = vmatpush1.bf16.msra.mxu0 %v5284_v63  ;;  %3540 = vmatpush1.bf16.msra.mxu1 %v5287_v11  ;;  %v5338_v63 = vld [vmem:[#allocation8 + $0x740] ss:$16 sps:$4 sm:$0xff]   ;;  %v5341_v11 = vld [vmem:[#allocation8 + $0x748] ss:$16 sps:$4 sm:$0xff]  }
 0x1e4   :  { %3089 = vmatprep.subr.bf16.mxu0 %v5292_v5  ;;  %3541 = vmatprep.subr.bf16.mxu1 %v5295_v61  ;;  %v5346_v5 = vld [vmem:[#allocation8 + $0x764] ss:$16 sps:$4 sm:$0xff]   ;;  %v5344_v61 = vld [vmem:[#allocation8 + $0x760] ss:$16 sps:$4 sm:$0xff]  }
 0x1e6   :  { %3015 = vmatmul.mubr.bf16.gmra.mrb[68].mxu0 %v5906_v48  ;;  %3467 = vmatmul.mubr.bf16.gmra.mrb[68].mxu1 %v5906_v48  ;;  %v5313_v48 = vld [vmem:[#allocation8 + $0x6ac] ss:$16 sps:$4 sm:$0xff]  }
 0x1e7   :  { %3090 = vmatpush1.bf16.msra.mxu0 %v5290_v37  ;;  %3542 = vmatpush1.bf16.msra.mxu1 %v5293_v15  ;;  %v5347_v37 = vld [vmem:[#allocation8 + $0x768] ss:$16 sps:$4 sm:$0xff]   ;;  %v5355_v15 = vld [vmem:[#allocation8 + $0x78c] ss:$16 sps:$4 sm:$0xff]  }
 0x1e8   :  { %3091 = vmatprep.subr.bf16.mxu0 %v5298_v19  ;;  %3024 = vmatprep.mubr.bf16.mxu0 %v5930_v47  ;;  %v5350_v19 = vld [vmem:[#allocation8 + $0x780] ss:$16 sps:$4 sm:$0xff]  }
 0x1e9   :  { %3476 = vmatprep.mubr.bf16.mxu1 %v5930_v47  ;;  %3543 = vmatprep.subr.bf16.mxu1 %v5301_v57  ;;  %v5316_v47 = vld [vmem:[#allocation8 + $0x6c4] ss:$16 sps:$4 sm:$0xff]   ;;  %v5353_v57 = vld [vmem:[#allocation8 + $0x788] ss:$16 sps:$4 sm:$0xff]  }
 0x1eb   :  { %3092 = vmatpush1.bf16.msra.mxu0 %v5296_v20  ;;  %3544 = vmatpush1.bf16.msra.mxu1 %v5299_v60  ;;  %v5358_v20 = vld [vmem:[#allocation8 + $0x7a4] ss:$16 sps:$4 sm:$0xff]   ;;  %v5356_v60 = vld [vmem:[#allocation8 + $0x7a0] ss:$16 sps:$4 sm:$0xff]  }
 0x1ec   :  { %3093 = vmatprep.subr.bf16.mxu0 %v5304_v51  ;;  %3545 = vmatprep.subr.bf16.mxu1 %v5307_v18  ;;  %v5359_v51 = vld [vmem:[#allocation8 + $0x7a8] ss:$16 sps:$4 sm:$0xff]   ;;  %v5367_v18 = vld [vmem:[#allocation8 + $0x7cc] ss:$16 sps:$4 sm:$0xff]  }
 0x1ee   :  { %3025 = vmatmul.mubr.bf16.gmra.mrb[72].mxu0 %v5926_v39  ;;  %3477 = vmatmul.mubr.bf16.gmra.mrb[72].mxu1 %v5926_v39  ;;  %v5325_v39 = vld [vmem:[#allocation8 + $0x6ec] ss:$16 sps:$4 sm:$0xff]  }
 0x1ef   :  { %3094 = vmatpush1.bf16.msra.mxu0 %v5302_v21  ;;  %3546 = vmatpush1.bf16.msra.mxu1 %v5305_v24  ;;  %v5362_v21 = vld [vmem:[#allocation8 + $0x7c0] ss:$16 sps:$4 sm:$0xff]   ;;  %v5365_v24 = vld [vmem:[#allocation8 + $0x7c8] ss:$16 sps:$4 sm:$0xff]  }
 0x1f0   :  { %3095 = vmatprep.subr.bf16.mxu0 %v5310_v0  ;;  %3034 = vmatprep.mubr.bf16.mxu0 %v5950_v46  ;;  %v5370_v0 = vld [vmem:[#allocation8 + $0x7e4] ss:$16 sps:$4 sm:$0xff]  }
 0x1f1   :  { %3486 = vmatprep.mubr.bf16.mxu1 %v5950_v46  ;;  %3547 = vmatprep.subr.bf16.mxu1 %v5313_v48  ;;  %v5328_v46 = vld [vmem:[#allocation8 + $0x704] ss:$16 sps:$4 sm:$0xff]   ;;  %v5368_v48 = vld [vmem:[#allocation8 + $0x7e0] ss:$16 sps:$4 sm:$0xff]  }
 0x1f3   :  { %3096 = vmatpush1.bf16.msra.mxu0 %v5308_v54  ;;  %3548 = vmatpush1.bf16.msra.mxu1 %v5311_v17  ;;  %v5374_v54 = vld [vmem:[#allocation10 + $0x40] sm:$0xff]  }
 0x1f4   :  { %3097 = vmatprep.subr.bf16.mxu0 %v5316_v47  ;;  %3549 = vmatprep.subr.bf16.mxu1 %v5319_v25  ;;  %v5376_v17 = vld [vmem:[#allocation10 + $0xc0] sm:$0xff]  }
 0x1f5   :  { %v5375_v47 = vld [vmem:[#allocation10] sm:$0xff]  }
 0x1f6   :  { %3035 = vmatmul.mubr.bf16.gmra.mrb[76].mxu0 %v5946_v27  ;;  %3487 = vmatmul.mubr.bf16.gmra.mrb[76].mxu1 %v5946_v27  ;;  %v5337_v27 = vld [vmem:[#allocation8 + $0x72c] ss:$16 sps:$4 sm:$0xff]   ;;  %v5377_v25 = vld [vmem:[#allocation10 + $0x80] sm:$0xff]  }
 0x1f7   :  { %3098 = vmatpush1.bf16.msra.mxu0 %v5314_v28  ;;  %3550 = vmatpush1.bf16.msra.mxu1 %v5317_v7  ;;  %v5378_v28 = vld [vmem:[#allocation10 + $0x48] sm:$0xff]  }
 0x1f8   :  { %3099 = vmatprep.subr.bf16.mxu0 %v5322_v6  ;;  %3044 = vmatprep.mubr.bf16.mxu0 %v5970_v59  ;;  %v5381_v7 = vld [vmem:[#allocation10 + $0x88] sm:$0xff]   ;;  %v5382_v6 = vld [vmem:[#allocation10 + $0x50] sm:$0xff]  }
 0x1f9   :  { %3496 = vmatprep.mubr.bf16.mxu1 %v5970_v59  ;;  %3551 = vmatprep.subr.bf16.mxu1 %v5325_v39  ;;  %v5340_v59 = vld [vmem:[#allocation8 + $0x744] ss:$16 sps:$4 sm:$0xff]  }
 0x1fa   :  { %v5384_v39 = vld [vmem:[#allocation10 + $0xd0] sm:$0xff]  }
 0x1fb   :  { %3100 = vmatpush1.bf16.msra.mxu0 %v5320_v29  ;;  %3552 = vmatpush1.bf16.msra.mxu1 %v5323_v43  ;;  %v5383_v29 = vld [vmem:[#allocation10 + $0x10] sm:$0xff]  }
 0x1fc   :  { %3101 = vmatprep.subr.bf16.mxu0 %v5328_v46  ;;  %3553 = vmatprep.subr.bf16.mxu1 %v5331_v1  ;;  %v5385_v43 = vld [vmem:[#allocation10 + $0x90] sm:$0xff]   ;;  %v5386_v46 = vld [vmem:[#allocation10 + $0x58] sm:$0xff]  }
 0x1fd   :  { %v5389_v1 = vld [vmem:[#allocation10 + $0x98] sm:$0xff]  }
 0x1fe   :  { %3045 = vmatmul.mubr.bf16.gmra.mrb[80].mxu0 %v5966_v31  ;;  %3497 = vmatmul.mubr.bf16.gmra.mrb[80].mxu1 %v5966_v31  ;;  %v5349_v31 = vld [vmem:[#allocation8 + $0x76c] ss:$16 sps:$4 sm:$0xff]  }
 0x1ff   :  { %3102 = vmatpush1.bf16.msra.mxu0 %v5326_v12  ;;  %3554 = vmatpush1.bf16.msra.mxu1 %v5329_v55  ;;  %v5390_v12 = vld [vmem:[#allocation10 + $0x60] sm:$0xff]  }
 0x200   :  { %3103 = vmatprep.subr.bf16.mxu0 %v5334_v52  ;;  %3054 = vmatprep.mubr.bf16.mxu0 %v5990_v22  ;;  %v5392_v55 = vld [vmem:[#allocation10 + $0xe0] sm:$0xff]  }
 0x201   :  { %3506 = vmatprep.mubr.bf16.mxu1 %v5990_v22  ;;  %3555 = vmatprep.subr.bf16.mxu1 %v5337_v27  ;;  %v5352_v22 = vld [vmem:[#allocation8 + $0x784] ss:$16 sps:$4 sm:$0xff]  }
 0x202   :  { %v5391_v52 = vld [vmem:[#allocation10 + $0x20] sm:$0xff]  }
 0x203   :  { %3104 = vmatpush1.bf16.msra.mxu0 %v5332_v62  ;;  %3556 = vmatpush1.bf16.msra.mxu1 %v5335_v23  ;;  %v5393_v27 = vld [vmem:[#allocation10 + $0xa0] sm:$0xff]   ;;  %v5394_v62 = vld [vmem:[#allocation10 + $0x68] sm:$0xff]  }
 0x204   :  { %3105 = vmatprep.subr.bf16.mxu0 %v5340_v59  ;;  %3557 = vmatprep.subr.bf16.mxu1 %v5343_v8  ;;  %v5397_v23 = vld [vmem:[#allocation10 + $0xa8] sm:$0xff]   ;;  %v5398_v59 = vld [vmem:[#allocation10 + $0x70] sm:$0xff]  }
 0x205   :  { %v5400_v8 = vld [vmem:[#allocation10 + $0xf0] sm:$0xff]  }
 0x206   :  { %3055 = vmatmul.mubr.bf16.gmra.mrb[84].mxu0 %v5986_v50  ;;  %3507 = vmatmul.mubr.bf16.gmra.mrb[84].mxu1 %v5986_v50  ;;  %v5361_v50 = vld [vmem:[#allocation8 + $0x7ac] ss:$16 sps:$4 sm:$0xff]  }
 0x207   :  { %3106 = vmatpush1.bf16.msra.mxu0 %v5338_v63  ;;  %3558 = vmatpush1.bf16.msra.mxu1 %v5341_v11  ;;  %v5399_v63 = vld [vmem:[#allocation10 + $0x30] sm:$0xff]  }
 0x208   :  { %3107 = vmatprep.subr.bf16.mxu0 %v5346_v5  ;;  %3064 = vmatprep.mubr.bf16.mxu0 %v6010_v13  ;;  %v5401_v11 = vld [vmem:[#allocation10 + $0xb0] sm:$0xff]  }
 0x209   :  { %3516 = vmatprep.mubr.bf16.mxu1 %v6010_v13  ;;  %3559 = vmatprep.subr.bf16.mxu1 %v5349_v31  ;;  %v5364_v13 = vld [vmem:[#allocation8 + $0x7c4] ss:$16 sps:$4 sm:$0xff]  }
 0x20b   :  { %3108 = vmatpush1.bf16.msra.mxu0 %v5344_v61  ;;  %3560 = vmatpush1.bf16.msra.mxu1 %v5347_v37 }
 0x20c   :  { %3109 = vmatprep.subr.bf16.mxu0 %v5352_v22  ;;  %3561 = vmatprep.subr.bf16.mxu1 %v5355_v15 }
 0x20e   :  { %3065 = vmatmul.mubr.bf16.gmra.mrb[88].mxu0 %v6006_v32  ;;  %3517 = vmatmul.mubr.bf16.gmra.mrb[88].mxu1 %v6006_v32  ;;  %v5373_v32 = vld [vmem:[#allocation8 + $0x7ec] ss:$16 sps:$4 sm:$0xff]  }
 0x20f   :  { %3110 = vmatpush1.bf16.msra.mxu0 %v5350_v19  ;;  %3562 = vmatpush1.bf16.msra.mxu1 %v5353_v57 }
 0x210   :  { %3111 = vmatprep.subr.bf16.mxu0 %v5358_v20  ;;  %3074 = vmatprep.mubr.bf16.mxu0 %v6030_v3 }
 0x211   :  { %3526 = vmatprep.mubr.bf16.mxu1 %v6030_v3  ;;  %3563 = vmatprep.subr.bf16.mxu1 %v5361_v50  ;;  %v5371_v3 = vld [vmem:[#allocation8 + $0x7e8] ss:$16 sps:$4 sm:$0xff]  }
 0x213   :  { %3112 = vmatpush1.bf16.msra.mxu0 %v5356_v60  ;;  %3564 = vmatpush1.bf16.msra.mxu1 %v5359_v51 }
 0x214   :  { %3113 = vmatprep.subr.bf16.mxu0 %v5364_v13  ;;  %3565 = vmatprep.subr.bf16.mxu1 %v5367_v18 }
 0x216   :  { %3075 = vmatmul.mubr.bf16.gmra.mrb[92].mxu0 %v6026_v9  ;;  %3527 = vmatmul.mubr.bf16.gmra.mrb[92].mxu1 %v6026_v9  ;;  %v5380_v9 = vld [vmem:[#allocation10 + $0xc8] sm:$0xff]  }
 0x217   :  { %3114 = vmatpush1.bf16.msra.mxu0 %v5362_v21  ;;  %3117 = vmatprep.mubr.bf16.mxu0 %v5912_v30 }
 0x218   :  { %3566 = vmatpush1.bf16.msra.mxu1 %v5365_v24  ;;  %3569 = vmatprep.mubr.bf16.mxu1 %v5912_v30  ;;  %v5379_v30 = vld [vmem:[#allocation10 + $0x8] sm:$0xff]  }
 0x219   :  { %3115 = vmatprep.subr.bf16.mxu0 %v5370_v0  ;;  %3567 = vmatprep.subr.bf16.mxu1 %v5373_v32 }
 0x21b   :  { %3116 = vmatpush1.bf16.msra.mxu0 %v5368_v48 }
 0x21c   :  { %3568 = vmatpush1.bf16.msra.mxu1 %v5371_v3  ;;  %4591 = vmatprep.subr.bf16.mxu0 %v5374_v54 }
 0x21d   :  { %4655 = vmatprep.subr.bf16.mxu1 %v5376_v17 }
 0x21e   :  { %3118 = vmatmul.mubr.bf16.vlgmr.msra.gmra.mrb[64].mxu0 %v5908_v4 }
 0x21f   :  { %3570 = vmatmul.mubr.bf16.vlgmr.msra.gmra.mrb[64].mxu1 %v5908_v4  ;;  %3127 = vmatprep.mubr.bf16.mxu0 %v5932_v49  ;;  %v5388_v4 = vld [vmem:[#allocation10 + $0xd8] sm:$0xff]  }
 0x220   :  { %3579 = vmatprep.mubr.bf16.mxu1 %v5932_v49  ;;  %4592 = vmatpush3.bf16.msra.mxu0 %v5375_v47  ;;  %v5387_v49 = vld [vmem:[#allocation10 + $0x18] sm:$0xff]  }
 0x221   :  { %4656 = vmatpush3.bf16.msra.mxu1 %v5377_v25  ;;  %4593 = vmatprep.subr.bf16.mxu0 %v5378_v28 }
 0x222   :  { %4657 = vmatprep.subr.bf16.mxu1 %v5380_v9 }
 0x224   :  { %4594 = vmatpush3.bf16.msra.mxu0 %v5379_v30 }
 0x225   :  { %4658 = vmatpush3.bf16.msra.mxu1 %v5381_v7  ;;  %4595 = vmatprep.subr.bf16.mxu0 %v5382_v6 }
 0x226   :  { %3128 = vmatmul.mubr.bf16.gmra.mrb[68].mxu0 %v5928_v40  ;;  %4659 = vmatprep.subr.bf16.mxu1 %v5384_v39 }
 0x227   :  { %3580 = vmatmul.mubr.bf16.gmra.mrb[68].mxu1 %v5928_v40  ;;  %3137 = vmatprep.mubr.bf16.mxu0 %v5952_v53  ;;  %v5396_v40 = vld [vmem:[#allocation10 + $0xe8] sm:$0xff]  }
 0x228   :  { %3589 = vmatprep.mubr.bf16.mxu1 %v5952_v53  ;;  %4596 = vmatpush3.bf16.msra.mxu0 %v5383_v29  ;;  %v5395_v53 = vld [vmem:[#allocation10 + $0x28] sm:$0xff]  }
 0x229   :  { %4660 = vmatpush3.bf16.msra.mxu1 %v5385_v43  ;;  %4597 = vmatprep.subr.bf16.mxu0 %v5386_v46 }
 0x22a   :  { %4661 = vmatprep.subr.bf16.mxu1 %v5388_v4 }
 0x22c   :  { %4598 = vmatpush3.bf16.msra.mxu0 %v5387_v49 }
 0x22d   :  { %4662 = vmatpush3.bf16.msra.mxu1 %v5389_v1  ;;  %4599 = vmatprep.subr.bf16.mxu0 %v5390_v12 }
 0x22e   :  { %3138 = vmatmul.mubr.bf16.gmra.mrb[72].mxu0 %v5948_v38  ;;  %4663 = vmatprep.subr.bf16.mxu1 %v5392_v55 }
 0x22f   :  { %3590 = vmatmul.mubr.bf16.gmra.mrb[72].mxu1 %v5948_v38  ;;  %3147 = vmatprep.mubr.bf16.mxu0 %v5972_v58  ;;  %v5402_v38 = vld [vmem:[#allocation10 + $0x78] sm:$0xff]  }
 0x230   :  { %3599 = vmatprep.mubr.bf16.mxu1 %v5972_v58  ;;  %4600 = vmatpush3.bf16.msra.mxu0 %v5391_v52  ;;  %v5403_v58 = vld [vmem:[#allocation10 + $0x38] sm:$0xff]  }
 0x231   :  { %4664 = vmatpush3.bf16.msra.mxu1 %v5393_v27  ;;  %4601 = vmatprep.subr.bf16.mxu0 %v5394_v62 }
 0x232   :  { %4665 = vmatprep.subr.bf16.mxu1 %v5396_v40 }
 0x234   :  { %4602 = vmatpush3.bf16.msra.mxu0 %v5395_v53 }
 0x235   :  { %4666 = vmatpush3.bf16.msra.mxu1 %v5397_v23  ;;  %4603 = vmatprep.subr.bf16.mxu0 %v5398_v59 }
 0x236   :  { %3148 = vmatmul.mubr.bf16.gmra.mrb[76].mxu0 %v5968_v26  ;;  %4667 = vmatprep.subr.bf16.mxu1 %v5400_v8 }
 0x237   :  { %3600 = vmatmul.mubr.bf16.gmra.mrb[76].mxu1 %v5968_v26  ;;  %3157 = vmatprep.mubr.bf16.mxu0 %v5992_v2  ;;  %v5404_v26 = vld [vmem:[#allocation10 + $0xf8] sm:$0xff]  }
 0x238   :  { %3609 = vmatprep.mubr.bf16.mxu1 %v5992_v2  ;;  %4604 = vmatpush3.bf16.msra.mxu0 %v5399_v63  ;;  %v1444_v2 = vld [vmem:[%s6231_s4] sm:$0xf] }
 0x239   :  { %4668 = vmatpush3.bf16.msra.mxu1 %v5401_v11  ;;  %4605 = vmatprep.subr.bf16.mxu0 %v5402_v38 }
 0x23a   :  { %4669 = vmatprep.subr.bf16.mxu1 %v5404_v26 }
 0x23c   :  { %4606 = vmatpush3.bf16.msra.mxu0 %v5403_v58 }
 0x23e   :  { %3158 = vmatmul.mubr.bf16.gmra.mrb[80].mxu0 %v5988_v44 }
 0x23f   :  { %3610 = vmatmul.mubr.bf16.gmra.mrb[80].mxu1 %v5988_v44  ;;  %3167 = vmatprep.mubr.bf16.mxu0 %v6012_v10  ;;  %v5405_v44 = vld [vmem:[#allocation10 + $0xb8] sm:$0xff]  }
 0x240   :  { %3619 = vmatprep.mubr.bf16.mxu1 %v6012_v10  ;;  %4670 = vmatpush3.bf16.msra.mxu1 %v5405_v44  ;;  %v6117_v10 = vrot.slane %v1444_v2, %v194_v41 }
 0x246   :  { %3168 = vmatmul.mubr.bf16.gmra.mrb[84].mxu0 %v6008_v35 }
 0x247   :  { %3620 = vmatmul.mubr.bf16.gmra.mrb[84].mxu1 %v6008_v35  ;;  %3177 = vmatprep.mubr.bf16.mxu0 %v6032_v16  ;;  %v6113_v35 = vrot.slane %v1444_v2, %v186_v34 }
 0x248   :  { %3629 = vmatprep.mubr.bf16.mxu1 %v6032_v16  ;;  %v6125_v16 = vrot.slane %v1444_v2, %v198_v45 }
 0x24e   :  { %3178 = vmatmul.mubr.bf16.gmra.mrb[88].mxu0 %v6028_v14 }
 0x24f   :  { %3630 = vmatmul.mubr.bf16.gmra.mrb[88].mxu1 %v6028_v14  ;;  %3187 = vmatprep.mubr.bf16.mxu0 %v6044_v56  ;;  %v6121_v14 = vrot.slane %v1444_v2, %v190_v36 }
 0x250   :  { %3639 = vmatprep.mubr.bf16.mxu1 %v6044_v56 }
 0x256   :  { %3188 = vmatmul.mubr.bf16.gmra.mrb[92].mxu0 %v6042_v42 }
 0x257   :  { %3640 = vmatmul.mubr.bf16.gmra.mrb[92].mxu1 %v6042_v42 }
 0x2f1   :  { %v3119_v42 = vpop.f32.mrb[64].mxu0 }
 0x2f2   :  { %v4719_v56 = vadd.f32 %v3119_v42, %v6113_v35  ;;  %v3571_v5 = vpop.f32.mrb[64].mxu1  ;;  %v3121_v31 = vpop.f32.mrb[65].mxu0 }
 0x2f3   :  { %v4751_v34 = vadd.f32 %v3571_v5, %v6117_v10  ;;  %v4720_v61 = vadd.f32 %v3121_v31, %v6121_v14  ;;  %v3573_v37 = vpop.f32.mrb[65].mxu1  ;;  %v3123_v41 = vpop.f32.mrb[66].mxu0 }
 0x2f4   :  { %v4752_v22 = vadd.f32 %v3573_v37, %v6125_v16  ;;  %v4721_v36 = vadd.f32 %v3123_v41, %v6113_v35  ;;  %v3575_v15 = vpop.f32.mrb[66].mxu1  ;;  %v3125_v19 = vpop.f32.mrb[67].mxu0  ;;  %v3650_v20 = vmax.f32 %v4719_v56, 0.0 }
 0x2f5   :  { %v4753_v33 = vadd.f32 %v3575_v15, %v6117_v10  ;;  %v4722_v45 = vadd.f32 %v3125_v19, %v6121_v14  ;;  %v3577_v57 = vpop.f32.mrb[67].mxu1  ;;  %v3652_v51 = vmax.f32 %v4751_v34, 0.0  ;;  %v3651_v13 = vmax.f32 %v4720_v61, 0.0 }
 0x2f6   :  { %v3654_v50 = vmax.f32 %v4721_v36, 0.0  ;;  %v4754_v60 = vadd.f32 %v3577_v57, %v6125_v16  ;;  %v3653_v24 = vmax.f32 %v4752_v22, 0.0 }
 0x2f7   :  { %v3656_v18 = vmax.f32 %v4753_v33, 0.0  ;;  %v3655_v21 = vmax.f32 %v4722_v45, 0.0 }
 0x2f8   :  { %v3714_v0 = vpack.c.bf16 %v3654_v50, %v3650_v20  ;;  %v3657_v32 = vmax.f32 %v4754_v60, 0.0 }
 0x2f9   :  { %v3716_v48 = vpack.c.bf16 %v3656_v18, %v3652_v51  ;;  %v3715_v3 = vpack.c.bf16 %v3655_v21, %v3651_v13  ;;  %v3129_v54 = vpop.f32.mrb[68].mxu0 }
 0x2fa   :  { %v3717_v17 = vpack.c.bf16 %v3657_v32, %v3653_v24  ;;  %v4723_v47 = vadd.f32 %v3129_v54, %v6113_v35  ;;  %v3581_v25 = vpop.f32.mrb[68].mxu1  ;;  %v3131_v28 = vpop.f32.mrb[69].mxu0 }
 0x2fb   :  { %v4755_v9 = vadd.f32 %v3581_v25, %v6117_v10  ;;  %v4724_v30 = vadd.f32 %v3131_v28, %v6121_v14  ;;  %v3583_v7 = vpop.f32.mrb[69].mxu1  ;;  %v3133_v6 = vpop.f32.mrb[70].mxu0  ;;  %4041 = vmatprep.mubr.bf16.mxu0 %v3715_v3 }
 0x2fc   :  { %v4756_v39 = vadd.f32 %v3583_v7, %v6125_v16  ;;  %v4725_v29 = vadd.f32 %v3133_v6, %v6113_v35  ;;  %v3585_v43 = vpop.f32.mrb[70].mxu1  ;;  %4138 = vmatprep.mubr.bf16.mxu1 %v3717_v17  ;;  %v3135_v46 = vpop.f32.mrb[71].mxu0  ;;  %4042 = vmatmul.mubr.bf16.vlgmr.msra.gmra.mrb[96].mxu0 %v3714_v0  ;;  %v3658_v12 = vmax.f32 %v4723_v47, 0.0 }
 0x2fd   :  { %v4757_v4 = vadd.f32 %v3585_v43, %v6117_v10  ;;  %v4726_v49 = vadd.f32 %v3135_v46, %v6121_v14  ;;  %v3587_v1 = vpop.f32.mrb[71].mxu1  ;;  %4139 = vmatmul.mubr.bf16.vlgmr.msra.gmra.mrb[96].mxu1 %v3716_v48  ;;  %v3660_v27 = vmax.f32 %v4755_v9, 0.0  ;;  %v3659_v62 = vmax.f32 %v4724_v30, 0.0 }
 0x2fe   :  { %v3662_v55 = vmax.f32 %v4725_v29, 0.0  ;;  %v4758_v52 = vadd.f32 %v3587_v1, %v6125_v16  ;;  %v3661_v23 = vmax.f32 %v4756_v39, 0.0 }
 0x2ff   :  { %v3664_v40 = vmax.f32 %v4757_v4, 0.0  ;;  %v3663_v53 = vmax.f32 %v4726_v49, 0.0 }
 0x300   :  { %v3718_v59 = vpack.c.bf16 %v3662_v55, %v3658_v12  ;;  %v3665_v8 = vmax.f32 %v4758_v52, 0.0 }
 0x301   :  { %v3720_v63 = vpack.c.bf16 %v3664_v40, %v3660_v27  ;;  %v3719_v11 = vpack.c.bf16 %v3663_v53, %v3659_v62  ;;  %v3139_v38 = vpop.f32.mrb[72].mxu0 }
 0x302   :  { %v3721_v26 = vpack.c.bf16 %v3665_v8, %v3661_v23  ;;  %v4727_v58 = vadd.f32 %v3139_v38, %v6113_v35  ;;  %v3591_v44 = vpop.f32.mrb[72].mxu1  ;;  %v3141_v2 = vpop.f32.mrb[73].mxu0 }
 0x303   :  { %v4759_v42 = vadd.f32 %v3591_v44, %v6117_v10  ;;  %v4728_v56 = vadd.f32 %v3141_v2, %v6121_v14  ;;  %v3593_v5 = vpop.f32.mrb[73].mxu1  ;;  %v3143_v31 = vpop.f32.mrb[74].mxu0  ;;  %4049 = vmatprep.mubr.bf16.mxu0 %v3719_v11 }
 0x304   :  { %v4760_v34 = vadd.f32 %v3593_v5, %v6125_v16  ;;  %v4729_v61 = vadd.f32 %v3143_v31, %v6113_v35  ;;  %v3595_v37 = vpop.f32.mrb[74].mxu1  ;;  %4146 = vmatprep.mubr.bf16.mxu1 %v3721_v26  ;;  %v3145_v41 = vpop.f32.mrb[75].mxu0  ;;  %4050 = vmatmul.mubr.bf16.gmra.mrb[100].mxu0 %v3718_v59  ;;  %v3666_v19 = vmax.f32 %v4727_v58, 0.0 }
 0x305   :  { %v4761_v22 = vadd.f32 %v3595_v37, %v6117_v10  ;;  %v4730_v36 = vadd.f32 %v3145_v41, %v6121_v14  ;;  %v3597_v15 = vpop.f32.mrb[75].mxu1  ;;  %4147 = vmatmul.mubr.bf16.gmra.mrb[100].mxu1 %v3720_v63  ;;  %v3668_v57 = vmax.f32 %v4759_v42, 0.0  ;;  %v3667_v20 = vmax.f32 %v4728_v56, 0.0 }
 0x306   :  { %v3670_v33 = vmax.f32 %v4729_v61, 0.0  ;;  %v4762_v45 = vadd.f32 %v3597_v15, %v6125_v16  ;;  %v3669_v51 = vmax.f32 %v4760_v34, 0.0 }
 0x307   :  { %v3672_v50 = vmax.f32 %v4761_v22, 0.0  ;;  %v3671_v60 = vmax.f32 %v4730_v36, 0.0 }
 0x308   :  { %v3722_v13 = vpack.c.bf16 %v3670_v33, %v3666_v19  ;;  %v3673_v18 = vmax.f32 %v4762_v45, 0.0 }
 0x309   :  { %v3724_v21 = vpack.c.bf16 %v3672_v50, %v3668_v57  ;;  %v3723_v24 = vpack.c.bf16 %v3671_v60, %v3667_v20  ;;  %v3149_v0 = vpop.f32.mrb[76].mxu0 }
 0x30a   :  { %v3725_v32 = vpack.c.bf16 %v3673_v18, %v3669_v51  ;;  %v4731_v48 = vadd.f32 %v3149_v0, %v6113_v35  ;;  %v3601_v3 = vpop.f32.mrb[76].mxu1  ;;  %v3151_v54 = vpop.f32.mrb[77].mxu0 }
 0x30b   :  { %v4763_v17 = vadd.f32 %v3601_v3, %v6117_v10  ;;  %v4732_v47 = vadd.f32 %v3151_v54, %v6121_v14  ;;  %v3603_v25 = vpop.f32.mrb[77].mxu1  ;;  %v3153_v28 = vpop.f32.mrb[78].mxu0  ;;  %4057 = vmatprep.mubr.bf16.mxu0 %v3723_v24 }
 0x30c   :  { %v4764_v9 = vadd.f32 %v3603_v25, %v6125_v16  ;;  %v4733_v30 = vadd.f32 %v3153_v28, %v6113_v35  ;;  %v3605_v7 = vpop.f32.mrb[78].mxu1  ;;  %4154 = vmatprep.mubr.bf16.mxu1 %v3725_v32  ;;  %v3155_v6 = vpop.f32.mrb[79].mxu0  ;;  %4058 = vmatmul.mubr.bf16.gmra.mrb[104].mxu0 %v3722_v13  ;;  %v3674_v46 = vmax.f32 %v4731_v48, 0.0 }
 0x30d   :  { %v4765_v39 = vadd.f32 %v3605_v7, %v6117_v10  ;;  %v4734_v29 = vadd.f32 %v3155_v6, %v6121_v14  ;;  %v3607_v43 = vpop.f32.mrb[79].mxu1  ;;  %4155 = vmatmul.mubr.bf16.gmra.mrb[104].mxu1 %v3724_v21  ;;  %v3676_v1 = vmax.f32 %v4763_v17, 0.0  ;;  %v3675_v12 = vmax.f32 %v4732_v47, 0.0 }
 0x30e   :  { %v3678_v4 = vmax.f32 %v4733_v30, 0.0  ;;  %v4766_v49 = vadd.f32 %v3607_v43, %v6125_v16  ;;  %v3677_v27 = vmax.f32 %v4764_v9, 0.0 }
 0x30f   :  { %v3680_v55 = vmax.f32 %v4765_v39, 0.0  ;;  %v3679_v52 = vmax.f32 %v4734_v29, 0.0 }
 0x310   :  { %v3726_v62 = vpack.c.bf16 %v3678_v4, %v3674_v46  ;;  %v3681_v40 = vmax.f32 %v4766_v49, 0.0 }
 0x311   :  { %v3728_v53 = vpack.c.bf16 %v3680_v55, %v3676_v1  ;;  %v3727_v23 = vpack.c.bf16 %v3679_v52, %v3675_v12  ;;  %v3159_v59 = vpop.f32.mrb[80].mxu0 }
 0x312   :  { %v3729_v8 = vpack.c.bf16 %v3681_v40, %v3677_v27  ;;  %v4735_v63 = vadd.f32 %v3159_v59, %v6113_v35  ;;  %v3611_v11 = vpop.f32.mrb[80].mxu1  ;;  %v3161_v38 = vpop.f32.mrb[81].mxu0 }
 0x313   :  { %v4767_v26 = vadd.f32 %v3611_v11, %v6117_v10  ;;  %v4736_v58 = vadd.f32 %v3161_v38, %v6121_v14  ;;  %v3613_v44 = vpop.f32.mrb[81].mxu1  ;;  %v3163_v2 = vpop.f32.mrb[82].mxu0  ;;  %4065 = vmatprep.mubr.bf16.mxu0 %v3727_v23 }
 0x314   :  { %v4768_v42 = vadd.f32 %v3613_v44, %v6125_v16  ;;  %v4737_v56 = vadd.f32 %v3163_v2, %v6113_v35  ;;  %v3615_v5 = vpop.f32.mrb[82].mxu1  ;;  %4162 = vmatprep.mubr.bf16.mxu1 %v3729_v8  ;;  %v3165_v31 = vpop.f32.mrb[83].mxu0  ;;  %4066 = vmatmul.mubr.bf16.gmra.mrb[108].mxu0 %v3726_v62  ;;  %v3682_v41 = vmax.f32 %v4735_v63, 0.0 }
 0x315   :  { %v4769_v34 = vadd.f32 %v3615_v5, %v6117_v10  ;;  %v4738_v61 = vadd.f32 %v3165_v31, %v6121_v14  ;;  %v3617_v37 = vpop.f32.mrb[83].mxu1  ;;  %4163 = vmatmul.mubr.bf16.gmra.mrb[108].mxu1 %v3728_v53  ;;  %v3684_v15 = vmax.f32 %v4767_v26, 0.0  ;;  %v3683_v19 = vmax.f32 %v4736_v58, 0.0 }
 0x316   :  { %v3686_v22 = vmax.f32 %v4737_v56, 0.0  ;;  %v4770_v36 = vadd.f32 %v3617_v37, %v6125_v16  ;;  %v3685_v57 = vmax.f32 %v4768_v42, 0.0 }
 0x317   :  { %v3688_v33 = vmax.f32 %v4769_v34, 0.0  ;;  %v3687_v45 = vmax.f32 %v4738_v61, 0.0 }
 0x318   :  { %v3730_v20 = vpack.c.bf16 %v3686_v22, %v3682_v41  ;;  %v3689_v50 = vmax.f32 %v4770_v36, 0.0 }
 0x319   :  { %v3732_v60 = vpack.c.bf16 %v3688_v33, %v3684_v15  ;;  %v3731_v51 = vpack.c.bf16 %v3687_v45, %v3683_v19  ;;  %v3169_v13 = vpop.f32.mrb[84].mxu0 }
 0x31a   :  { %v3733_v18 = vpack.c.bf16 %v3689_v50, %v3685_v57  ;;  %v4739_v21 = vadd.f32 %v3169_v13, %v6113_v35  ;;  %v3621_v24 = vpop.f32.mrb[84].mxu1  ;;  %v3171_v0 = vpop.f32.mrb[85].mxu0 }
 0x31b   :  { %v4771_v32 = vadd.f32 %v3621_v24, %v6117_v10  ;;  %v4740_v48 = vadd.f32 %v3171_v0, %v6121_v14  ;;  %v3623_v3 = vpop.f32.mrb[85].mxu1  ;;  %v3173_v54 = vpop.f32.mrb[86].mxu0  ;;  %4073 = vmatprep.mubr.bf16.mxu0 %v3731_v51 }
 0x31c   :  { %v4772_v17 = vadd.f32 %v3623_v3, %v6125_v16  ;;  %v4741_v47 = vadd.f32 %v3173_v54, %v6113_v35  ;;  %v3625_v25 = vpop.f32.mrb[86].mxu1  ;;  %4170 = vmatprep.mubr.bf16.mxu1 %v3733_v18  ;;  %v3175_v28 = vpop.f32.mrb[87].mxu0  ;;  %4074 = vmatmul.mubr.bf16.gmra.mrb[112].mxu0 %v3730_v20  ;;  %v3690_v6 = vmax.f32 %v4739_v21, 0.0 }
 0x31d   :  { %v4773_v9 = vadd.f32 %v3625_v25, %v6117_v10  ;;  %v4742_v30 = vadd.f32 %v3175_v28, %v6121_v14  ;;  %v3627_v7 = vpop.f32.mrb[87].mxu1  ;;  %4171 = vmatmul.mubr.bf16.gmra.mrb[112].mxu1 %v3732_v60  ;;  %v3692_v43 = vmax.f32 %v4771_v32, 0.0  ;;  %v3691_v46 = vmax.f32 %v4740_v48, 0.0 }
 0x31e   :  { %v3694_v39 = vmax.f32 %v4741_v47, 0.0  ;;  %v4774_v29 = vadd.f32 %v3627_v7, %v6125_v16  ;;  %v3693_v1 = vmax.f32 %v4772_v17, 0.0 }
 0x31f   :  { %v3696_v4 = vmax.f32 %v4773_v9, 0.0  ;;  %v3695_v49 = vmax.f32 %v4742_v30, 0.0 }
 0x320   :  { %v3734_v12 = vpack.c.bf16 %v3694_v39, %v3690_v6  ;;  %v3697_v55 = vmax.f32 %v4774_v29, 0.0 }
 0x321   :  { %v3736_v52 = vpack.c.bf16 %v3696_v4, %v3692_v43  ;;  %v3735_v27 = vpack.c.bf16 %v3695_v49, %v3691_v46  ;;  %v3179_v62 = vpop.f32.mrb[88].mxu0 }
 0x322   :  { %v3737_v40 = vpack.c.bf16 %v3697_v55, %v3693_v1  ;;  %v4743_v53 = vadd.f32 %v3179_v62, %v6113_v35  ;;  %v3631_v23 = vpop.f32.mrb[88].mxu1  ;;  %v3181_v59 = vpop.f32.mrb[89].mxu0 }
 0x323   :  { %v4775_v8 = vadd.f32 %v3631_v23, %v6117_v10  ;;  %v4744_v63 = vadd.f32 %v3181_v59, %v6121_v14  ;;  %v3633_v11 = vpop.f32.mrb[89].mxu1  ;;  %v3183_v38 = vpop.f32.mrb[90].mxu0  ;;  %4081 = vmatprep.mubr.bf16.mxu0 %v3735_v27 }
 0x324   :  { %v4776_v26 = vadd.f32 %v3633_v11, %v6125_v16  ;;  %v4745_v58 = vadd.f32 %v3183_v38, %v6113_v35  ;;  %v3635_v44 = vpop.f32.mrb[90].mxu1  ;;  %4178 = vmatprep.mubr.bf16.mxu1 %v3737_v40  ;;  %v3185_v2 = vpop.f32.mrb[91].mxu0  ;;  %4082 = vmatmul.mubr.bf16.gmra.mrb[116].mxu0 %v3734_v12  ;;  %v3698_v31 = vmax.f32 %v4743_v53, 0.0 }
 0x325   :  { %v4777_v42 = vadd.f32 %v3635_v44, %v6117_v10  ;;  %v4746_v56 = vadd.f32 %v3185_v2, %v6121_v14  ;;  %v3637_v5 = vpop.f32.mrb[91].mxu1  ;;  %4179 = vmatmul.mubr.bf16.gmra.mrb[116].mxu1 %v3736_v52  ;;  %v3700_v37 = vmax.f32 %v4775_v8, 0.0  ;;  %v3699_v41 = vmax.f32 %v4744_v63, 0.0 }
 0x326   :  { %v3702_v34 = vmax.f32 %v4745_v58, 0.0  ;;  %v4778_v61 = vadd.f32 %v3637_v5, %v6125_v16  ;;  %v3701_v15 = vmax.f32 %v4776_v26, 0.0 }
 0x327   :  { %v3704_v22 = vmax.f32 %v4777_v42, 0.0  ;;  %v3703_v36 = vmax.f32 %v4746_v56, 0.0 }
 0x328   :  { %v3738_v19 = vpack.c.bf16 %v3702_v34, %v3698_v31  ;;  %v3705_v33 = vmax.f32 %v4778_v61, 0.0 }
 0x329   :  { %v3740_v45 = vpack.c.bf16 %v3704_v22, %v3700_v37  ;;  %v3739_v57 = vpack.c.bf16 %v3703_v36, %v3699_v41  ;;  %v3189_v20 = vpop.f32.mrb[92].mxu0 }
 0x32a   :  { %v3741_v50 = vpack.c.bf16 %v3705_v33, %v3701_v15  ;;  %v4747_v60 = vadd.f32 %v3189_v20, %v6113_v35  ;;  %v3641_v51 = vpop.f32.mrb[92].mxu1  ;;  %v3191_v13 = vpop.f32.mrb[93].mxu0 }
 0x32b   :  { %v4779_v18 = vadd.f32 %v3641_v51, %v6117_v10  ;;  %v4748_v21 = vadd.f32 %v3191_v13, %v6121_v14  ;;  %v3643_v24 = vpop.f32.mrb[93].mxu1  ;;  %v3193_v0 = vpop.f32.mrb[94].mxu0  ;;  %4089 = vmatprep.mubr.bf16.mxu0 %v3739_v57 }
 0x32c   :  { %v4780_v32 = vadd.f32 %v3643_v24, %v6125_v16  ;;  %v4749_v48 = vadd.f32 %v3193_v0, %v6113_v35  ;;  %v3645_v3 = vpop.f32.mrb[94].mxu1  ;;  %4186 = vmatprep.mubr.bf16.mxu1 %v3741_v50  ;;  %v3195_v54 = vpop.f32.mrb[95].mxu0  ;;  %4090 = vmatmul.mubr.bf16.gmra.mrb[120].mxu0 %v3738_v19  ;;  %v3706_v28 = vmax.f32 %v4747_v60, 0.0 }
 0x32d   :  { %v4781_v17 = vadd.f32 %v3645_v3, %v6117_v10  ;;  %v4750_v47 = vadd.f32 %v3195_v54, %v6121_v14  ;;  %v3647_v25 = vpop.f32.mrb[95].mxu1  ;;  %4187 = vmatmul.mubr.bf16.gmra.mrb[120].mxu1 %v3740_v45  ;;  %v3708_v7 = vmax.f32 %v4779_v18, 0.0  ;;  %v3707_v6 = vmax.f32 %v4748_v21, 0.0 }
 0x32e   :  { %v3710_v9 = vmax.f32 %v4749_v48, 0.0  ;;  %v4782_v30 = vadd.f32 %v3647_v25, %v6125_v16  ;;  %v3709_v43 = vmax.f32 %v4780_v32, 0.0  ;;  %v6194_v16 = vld [vmem:[%s6233_s6] ss:$0 sm:$0xff]  ;;  %s5560_s6 = smov [#allocation11]  }
 0x32f   :  { %v3712_v39 = vmax.f32 %v4781_v17, 0.0  ;;  %v3711_v29 = vmax.f32 %v4750_v47, 0.0  ;;  %s4224_s21 = sshll.u32 %s5560_s6, 4  ;;  %s4225_s21 = int_to_ptr.vmem [resolvable:$true] %s4224_s21 }
 0x330   :  { %v3742_v35 = vpack.c.bf16 %v3710_v9, %v3706_v28  ;;  %v3713_v46 = vmax.f32 %v4782_v30, 0.0  ;;  %s5516_s22 = scalar_lea.vmem %s4225_s21, 2048  ;;  %p5521_p13 = scmp.lt.s32.totalorder %s4225_s21, %s4225_s21 }
 0x331   :  { %v3744_v4 = vpack.c.bf16 %v3712_v39, %v3708_v7  ;;  %v3743_v49 = vpack.c.bf16 %v3711_v29, %v3707_v6  ;;  %p5517_p12 = scmp.ne.s32.totalorder %s4225_s21, %s5516_s22  ;;  %p5522_p0 = scmp.lt.s32.totalorder %s5516_s22, %s5516_s22 }
 0x332   :  { %v3745_v1 = vpack.c.bf16 %v3713_v46, %v3709_v43 }
 0x333   :  { %4097 = vmatprep.mubr.bf16.mxu0 %v3743_v49  ;;  %p5523_p1 = por %p5522_p0, %p5521_p13 }
 0x334   :  { %4194 = vmatprep.mubr.bf16.mxu1 %v3745_v1  ;;  %4098 = vmatmul.mubr.bf16.gmra.mrb[124].mxu0 %v3742_v35 }
 0x335   :  { %4195 = vmatmul.mubr.bf16.gmra.mrb[124].mxu1 %v3744_v4  ;;  %p5524_p2 = pnand %p5523_p1, %p5517_p12 }
 0x3cf   :  { %v4607_v10 = vpop.f32.mrb[96].mxu0 }
 0x3d0   :  { %v4671_v14 = vpop.f32.mrb[96].mxu1  ;;  %v4608_v12 = vpop.f32.mrb[97].mxu0 }
 0x3d1   :  { %v4609_v55 = vadd.f32 %v4608_v12, %v4607_v10  ;;  %v4672_v52 = vpop.f32.mrb[97].mxu1  ;;  %v4610_v27 = vpop.f32.mrb[98].mxu0 }
 0x3d2   :  { %v4673_v62 = vadd.f32 %v4672_v52, %v4671_v14  ;;  %v4674_v40 = vpop.f32.mrb[98].mxu1  ;;  %v4611_v53 = vpop.f32.mrb[99].mxu0 }
 0x3d3   :  { %v4044_v23 = vadd.f32 %v4609_v55, %v6194_v16  ;;  %v4612_v59 = vadd.f32 %v4611_v53, %v4610_v27  ;;  %v4675_v8 = vpop.f32.mrb[99].mxu1 }
 0x3d4   :  { %v4676_v63 = vadd.f32 %v4675_v8, %v4674_v40 }
 0x3d5   :  { %v4141_v11 = vadd.f32 %v4673_v62, %v4044_v23  ;;  %v4047_v38 = vadd.f32 %v4612_v59, %v6194_v16 }
 0x3d7   :  { %4203 = vst [vmem:[#allocation11] sm:$0xff] %v4141_v11  ;;  %v4144_v26 = vadd.f32 %v4676_v63, %v4047_v38  ;;  %v4613_v58 = vpop.f32.mrb[100].mxu0 }
 0x3d8   :  { %v4677_v44 = vpop.f32.mrb[100].mxu1  ;;  %v4614_v2 = vpop.f32.mrb[101].mxu0 }
 0x3d9   :  { %4204 = vst [vmem:[#allocation11 + $0x8] sm:$0xff] %v4144_v26  ;;  %v4615_v42 = vadd.f32 %v4614_v2, %v4613_v58  ;;  %v4678_v56 = vpop.f32.mrb[101].mxu1  ;;  %v4616_v5 = vpop.f32.mrb[102].mxu0 }
 0x3da   :  { %v4679_v31 = vadd.f32 %v4678_v56, %v4677_v44  ;;  %v4680_v34 = vpop.f32.mrb[102].mxu1  ;;  %v4617_v61 = vpop.f32.mrb[103].mxu0 }
 0x3db   :  { %v4052_v37 = vadd.f32 %v4615_v42, %v6194_v16  ;;  %v4618_v41 = vadd.f32 %v4617_v61, %v4616_v5  ;;  %v4681_v22 = vpop.f32.mrb[103].mxu1 }
 0x3dc   :  { %v4682_v36 = vadd.f32 %v4681_v22, %v4680_v34 }
 0x3dd   :  { %v4149_v15 = vadd.f32 %v4679_v31, %v4052_v37  ;;  %v4055_v19 = vadd.f32 %v4618_v41, %v6194_v16 }
 0x3df   :  { %4205 = vst [vmem:[#allocation11 + $0x10] sm:$0xff] %v4149_v15  ;;  %v4152_v33 = vadd.f32 %v4682_v36, %v4055_v19  ;;  %v4619_v45 = vpop.f32.mrb[104].mxu0 }
 0x3e0   :  { %v4683_v57 = vpop.f32.mrb[104].mxu1  ;;  %v4620_v20 = vpop.f32.mrb[105].mxu0 }
 0x3e1   :  { %4206 = vst [vmem:[#allocation11 + $0x18] sm:$0xff] %v4152_v33  ;;  %v4621_v50 = vadd.f32 %v4620_v20, %v4619_v45  ;;  %v4684_v60 = vpop.f32.mrb[105].mxu1  ;;  %v4622_v51 = vpop.f32.mrb[106].mxu0 }
 0x3e2   :  { %v4685_v13 = vadd.f32 %v4684_v60, %v4683_v57  ;;  %v4686_v18 = vpop.f32.mrb[106].mxu1  ;;  %v4623_v21 = vpop.f32.mrb[107].mxu0 }
 0x3e3   :  { %v4060_v24 = vadd.f32 %v4621_v50, %v6194_v16  ;;  %v4624_v0 = vadd.f32 %v4623_v21, %v4622_v51  ;;  %v4687_v32 = vpop.f32.mrb[107].mxu1 }
 0x3e4   :  { %v4688_v48 = vadd.f32 %v4687_v32, %v4686_v18 }
 0x3e5   :  { %v4157_v3 = vadd.f32 %v4685_v13, %v4060_v24  ;;  %v4063_v54 = vadd.f32 %v4624_v0, %v6194_v16 }
 0x3e7   :  { %4207 = vst [vmem:[#allocation11 + $0x20] sm:$0xff] %v4157_v3  ;;  %v4160_v17 = vadd.f32 %v4688_v48, %v4063_v54  ;;  %v4625_v47 = vpop.f32.mrb[108].mxu0 }
 0x3e8   :  { %v4689_v25 = vpop.f32.mrb[108].mxu1  ;;  %v4626_v28 = vpop.f32.mrb[109].mxu0 }
 0x3e9   :  { %4208 = vst [vmem:[#allocation11 + $0x28] sm:$0xff] %v4160_v17  ;;  %v4627_v9 = vadd.f32 %v4626_v28, %v4625_v47  ;;  %v4690_v30 = vpop.f32.mrb[109].mxu1  ;;  %v4628_v7 = vpop.f32.mrb[110].mxu0 }
 0x3ea   :  { %v4691_v6 = vadd.f32 %v4690_v30, %v4689_v25  ;;  %v4692_v39 = vpop.f32.mrb[110].mxu1  ;;  %v4629_v29 = vpop.f32.mrb[111].mxu0 }
 0x3eb   :  { %v4068_v43 = vadd.f32 %v4627_v9, %v6194_v16  ;;  %v4630_v35 = vadd.f32 %v4629_v29, %v4628_v7  ;;  %v4693_v46 = vpop.f32.mrb[111].mxu1 }
 0x3ec   :  { %v4694_v4 = vadd.f32 %v4693_v46, %v4692_v39 }
 0x3ed   :  { %v4165_v49 = vadd.f32 %v4691_v6, %v4068_v43  ;;  %v4071_v1 = vadd.f32 %v4630_v35, %v6194_v16 }
 0x3ef   :  { %4209 = vst [vmem:[#allocation11 + $0x30] sm:$0xff] %v4165_v49  ;;  %v4168_v10 = vadd.f32 %v4694_v4, %v4071_v1  ;;  %v4631_v14 = vpop.f32.mrb[112].mxu0 }
 0x3f0   :  { %v4695_v12 = vpop.f32.mrb[112].mxu1  ;;  %v4632_v55 = vpop.f32.mrb[113].mxu0 }
 0x3f1   :  { %4210 = vst [vmem:[#allocation11 + $0x38] sm:$0xff] %v4168_v10  ;;  %v4633_v52 = vadd.f32 %v4632_v55, %v4631_v14  ;;  %v4696_v27 = vpop.f32.mrb[113].mxu1  ;;  %v4634_v62 = vpop.f32.mrb[114].mxu0 }
 0x3f2   :  { %v4697_v40 = vadd.f32 %v4696_v27, %v4695_v12  ;;  %v4698_v53 = vpop.f32.mrb[114].mxu1  ;;  %v4635_v23 = vpop.f32.mrb[115].mxu0 }
 0x3f3   :  { %v4076_v59 = vadd.f32 %v4633_v52, %v6194_v16  ;;  %v4636_v8 = vadd.f32 %v4635_v23, %v4634_v62  ;;  %v4699_v63 = vpop.f32.mrb[115].mxu1 }
 0x3f4   :  { %v4700_v11 = vadd.f32 %v4699_v63, %v4698_v53 }
 0x3f5   :  { %v4173_v38 = vadd.f32 %v4697_v40, %v4076_v59  ;;  %v4079_v26 = vadd.f32 %v4636_v8, %v6194_v16 }
 0x3f7   :  { %4211 = vst [vmem:[#allocation11 + $0x40] sm:$0xff] %v4173_v38  ;;  %v4176_v58 = vadd.f32 %v4700_v11, %v4079_v26  ;;  %v4637_v44 = vpop.f32.mrb[116].mxu0 }
 0x3f8   :  { %v4701_v2 = vpop.f32.mrb[116].mxu1  ;;  %v4638_v42 = vpop.f32.mrb[117].mxu0 }
 0x3f9   :  { %4212 = vst [vmem:[#allocation11 + $0x48] sm:$0xff] %v4176_v58  ;;  %v4639_v56 = vadd.f32 %v4638_v42, %v4637_v44  ;;  %v4702_v5 = vpop.f32.mrb[117].mxu1  ;;  %v4640_v31 = vpop.f32.mrb[118].mxu0 }
 0x3fa   :  { %v4703_v34 = vadd.f32 %v4702_v5, %v4701_v2  ;;  %v4704_v61 = vpop.f32.mrb[118].mxu1  ;;  %v4641_v37 = vpop.f32.mrb[119].mxu0 }
 0x3fb   :  { %v4084_v41 = vadd.f32 %v4639_v56, %v6194_v16  ;;  %v4642_v22 = vadd.f32 %v4641_v37, %v4640_v31  ;;  %v4705_v36 = vpop.f32.mrb[119].mxu1 }
 0x3fc   :  { %v4706_v15 = vadd.f32 %v4705_v36, %v4704_v61 }
 0x3fd   :  { %v4181_v19 = vadd.f32 %v4703_v34, %v4084_v41  ;;  %v4087_v33 = vadd.f32 %v4642_v22, %v6194_v16 }
 0x3ff   :  { %4213 = vst [vmem:[#allocation11 + $0x50] sm:$0xff] %v4181_v19  ;;  %v4184_v45 = vadd.f32 %v4706_v15, %v4087_v33  ;;  %v4643_v57 = vpop.f32.mrb[120].mxu0 }
 0x400   :  { %v4707_v20 = vpop.f32.mrb[120].mxu1  ;;  %v4644_v50 = vpop.f32.mrb[121].mxu0 }
 0x401   :  { %4214 = vst [vmem:[#allocation11 + $0x58] sm:$0xff] %v4184_v45  ;;  %v4645_v60 = vadd.f32 %v4644_v50, %v4643_v57  ;;  %v4708_v51 = vpop.f32.mrb[121].mxu1  ;;  %v4646_v13 = vpop.f32.mrb[122].mxu0 }
 0x402   :  { %v4709_v18 = vadd.f32 %v4708_v51, %v4707_v20  ;;  %v4710_v21 = vpop.f32.mrb[122].mxu1  ;;  %v4647_v24 = vpop.f32.mrb[123].mxu0 }
 0x403   :  { %v4092_v0 = vadd.f32 %v4645_v60, %v6194_v16  ;;  %v4648_v32 = vadd.f32 %v4647_v24, %v4646_v13  ;;  %v4711_v48 = vpop.f32.mrb[123].mxu1 }
 0x404   :  { %v4712_v3 = vadd.f32 %v4711_v48, %v4710_v21 }
 0x405   :  { %v4189_v54 = vadd.f32 %v4709_v18, %v4092_v0  ;;  %v4095_v17 = vadd.f32 %v4648_v32, %v6194_v16 }
 0x407   :  { %4215 = vst [vmem:[#allocation11 + $0x60] sm:$0xff] %v4189_v54  ;;  %v4192_v47 = vadd.f32 %v4712_v3, %v4095_v17  ;;  %v4649_v25 = vpop.f32.mrb[124].mxu0 }
 0x408   :  { %v4713_v28 = vpop.f32.mrb[124].mxu1  ;;  %v4650_v9 = vpop.f32.mrb[125].mxu0 }
 0x409   :  { %4216 = vst [vmem:[#allocation11 + $0x68] sm:$0xff] %v4192_v47  ;;  %v4651_v30 = vadd.f32 %v4650_v9, %v4649_v25  ;;  %v4714_v7 = vpop.f32.mrb[125].mxu1  ;;  %v4652_v6 = vpop.f32.mrb[126].mxu0 }
 0x40a   :  { %v4715_v39 = vadd.f32 %v4714_v7, %v4713_v28  ;;  %v4716_v29 = vpop.f32.mrb[126].mxu1  ;;  %v4653_v43 = vpop.f32.mrb[127].mxu0 }
 0x40b   :  { %v4100_v35 = vadd.f32 %v4651_v30, %v6194_v16  ;;  %v4654_v46 = vadd.f32 %v4653_v43, %v4652_v6  ;;  %v4717_v4 = vpop.f32.mrb[127].mxu1 }
 0x40c   :  { %v4718_v49 = vadd.f32 %v4717_v4, %v4716_v29 }
 0x40d   :  { %v4197_v1 = vadd.f32 %v4715_v39, %v4100_v35  ;;  %v4103_v10 = vadd.f32 %v4654_v46, %v6194_v16 }
 0x40f   :  { %4217 = vst [vmem:[#allocation11 + $0x70] sm:$0xff] %v4197_v1  ;;  %v4200_v14 = vadd.f32 %v4718_v49, %v4103_v10 }
 0x411   :  { %4218 = vst [vmem:[#allocation11 + $0x78] sm:$0xff] %v4200_v14 }
 0x412   :  { %5527 = shalt.err (!%p5524_p2)
}
 0x413   :  { %s5528_s1 = scalar_lea.hbm %s6234_s7, 2048 }
 0x414   :  { %p5529_p3 = scmp.ne.s32.totalorder %s6234_s7, %s5528_s1  ;;  %p5532_p4 = scmp.lt.u32.totalorder %s5528_s1, %s6234_s7 }
 0x416   :  { %p5534_p5 = pnand %p5532_p4, %p5529_p3 }
 0x418   :  { %5537 = shalt.err (!%p5534_p5)
}
 0x419   :  { %4230 = dma.vmem_to_hbm [thread:$0]  %s4225_s21, 2048, %s6234_s7, [#allocation4], %s5553_s3, %s5553_s3, %s5554_s15  }
 0x41a   :  { %5544 = dma.done.wait [#allocation4], 2048  }
 0x41b   :  { %5545 = vsyncadd [#allocation4], 4294965248 }
 0x41c   :  { %4234 = vsyncpa [#allocation3], 1 }
 0x41d   :  { %4235 = vsyncpa [#allocation6], 1 }
 0x41e   :  { %4236 = vsyncpa [#allocation9], 1 }
 0x41f   :  { %4237 = vsyncpa [#allocation4], 1 }

</bundles_post_ra>
